<compile_context>
chip_gen: v6e
topology: v6e:2x2x1
jax: 0.10.0
libtpu: 0.0.40
codegen_flags: <defaults>
</compile_context>

<pallas_src>
import functools

import jax
import jax.numpy as jnp
from jax.experimental import pallas as pl
from jax.experimental.pallas import tpu as pltpu

EPS = 1e-5


def _conv_bn_relu_kernel(x_ref, w_ref, gamma_ref, beta_ref, o_ref, *, true_count):
    # x_ref:     (M_pad, C_in)   bf16, constant block index -> resident across grid
    # w_ref:     (C_in, TC_OUT)  bf16, current C_out tile (double-buffered stream)
    # gamma_ref: (1, TC_OUT)     f32
    # beta_ref:  (1, TC_OUT)     f32
    # o_ref:     (M_pad, TC_OUT) bf16
    y = jnp.dot(x_ref[...], w_ref[...], preferred_element_type=jnp.float32)

    # BatchNorm2d (training mode): per-channel batch stats over the true N*H*W
    # rows.  Padded x rows are zero -> padded y rows are zero -> they add
    # nothing to the mean sum; divide by the true count.
    inv_count = jnp.float32(1.0 / true_count)
    mean = jnp.sum(y, axis=0, keepdims=True) * inv_count          # (1, TC_OUT)

    # Masked two-pass variance: exclude padded rows ((0 - mean)^2 would bias it).
    row_ids = jax.lax.broadcasted_iota(jnp.int32, (y.shape[0], 1), 0)
    centered = jnp.where(row_ids < true_count, y - mean, 0.0)     # (M_pad, TC_OUT)
    var = jnp.sum(centered * centered, axis=0, keepdims=True) * inv_count
    inv_std = jax.lax.rsqrt(var + EPS)

    scale = inv_std * gamma_ref[...]
    y_norm = centered * scale + beta_ref[...]

    # ReLU, cast to bf16 only at the final store.
    o_ref[...] = jnp.maximum(y_norm, 0.0).astype(o_ref.dtype)


def pack_conv_bn_params(weight_oihw, gamma, beta):
    """One-time repack (call once, outside the per-step path)."""
    # (C_out, C_in, 1, 1) -> (C_in, C_out), bf16 storage (f32 accumulate on MXU).
    w_mat = jnp.transpose(weight_oihw[:, :, 0, 0], (1, 0)).astype(jnp.bfloat16)
    gamma2d = gamma.reshape(1, -1).astype(jnp.float32)
    beta2d = beta.reshape(1, -1).astype(jnp.float32)
    return w_mat, gamma2d, beta2d


def conv_bn_relu_mat(x_mat_pad, w_mat, gamma2d, beta2d, *, true_count,
                     c_out_tile=1024):
    """Primary (channels-last / matrix) entry point.

    x_mat_pad: (M_pad, C_in) bf16, rows >= true_count must be zero.
    Returns (M_pad, C_out) bf16.
    """
    M_pad, C_in = x_mat_pad.shape
    C_in_w, C_out = w_mat.shape
    assert C_in == C_in_w, (C_in, C_in_w)
    assert C_out % c_out_tile == 0, (C_out, c_out_tile)
    num_tiles = C_out // c_out_tile

    grid_spec = pltpu.PrefetchScalarGridSpec(
        num_scalar_prefetch=0,
        grid=(num_tiles,),
        in_specs=[
            # x: constant block index -> DMA'd once, resident across the grid.
            pl.BlockSpec((M_pad, C_in), lambda j: (0, 0)),
            # weight: streamed one C_out tile per grid step (double-buffered).
            pl.BlockSpec((C_in, c_out_tile), lambda j: (0, j)),
            pl.BlockSpec((1, c_out_tile), lambda j: (0, j)),
            pl.BlockSpec((1, c_out_tile), lambda j: (0, j)),
        ],
        out_specs=pl.BlockSpec((M_pad, c_out_tile), lambda j: (0, j)),
    )

    cost = pl.CostEstimate(
        flops=2 * M_pad * C_in * C_out,
        bytes_accessed=(x_mat_pad.size * 2 + w_mat.size * 2
                        + gamma2d.size * 4 + beta2d.size * 4
                        + M_pad * C_out * 2),
        transcendentals=C_out,
    )

    return pl.pallas_call(
        functools.partial(_conv_bn_relu_kernel, true_count=int(true_count)),
        out_shape=jax.ShapeDtypeStruct((M_pad, C_out), jnp.bfloat16),
        grid_spec=grid_spec,
        compiler_params=pltpu.CompilerParams(
            dimension_semantics=("parallel",)),
        cost_estimate=cost,
    )(x_mat_pad, w_mat, gamma2d, beta2d)


def conv2d_bn_relu_nchw(x_nchw, w_mat, gamma2d, beta2d, *, c_out_tile=1024):
    """NCHW compatibility wrapper (matches the PyTorch module interface).

    Prefer conv_bn_relu_mat / channels-last in a real pipeline so these
    layout transposes disappear entirely.
    """
    N, C_in, H, W = x_nchw.shape
    C_out = w_mat.shape[1]
    M = N * H * W
    M_pad = max(16, ((M + 15) // 16) * 16)  # multiple of 16 (bf16 sublane pairs)

    x_mat = jnp.transpose(x_nchw, (0, 2, 3, 1)).reshape(M, C_in).astype(jnp.bfloat16)
    if M_pad > M:
        # Zero padding is required for the in-kernel batch statistics.
        x_mat = jnp.pad(x_mat, ((0, M_pad - M), (0, 0)))

    out_mat = conv_bn_relu_mat(x_mat, w_mat, gamma2d, beta2d,
                               true_count=M, c_out_tile=c_out_tile)

    out_mat = out_mat[:M]
    return jnp.transpose(out_mat.reshape(N, H, W, C_out), (0, 3, 1, 2))


if __name__ == "__main__":
    # Shapes implied by the module: x [1, 976, 7, 7], conv weight [2048, 976, 1, 1].
    N, C_in, H, W = 1, 976, 7, 7
    C_out = 2048

    key = jax.random.PRNGKey(0)
    kx, kw = jax.random.split(key)

    x = jax.random.normal(kx, (N, C_in, H, W), dtype=jnp.float32)
    weight = jax.random.normal(kw, (C_out, C_in, 1, 1), dtype=jnp.float32) * 0.02
    gamma = jnp.ones((C_out,), dtype=jnp.float32)
    beta = jnp.zeros((C_out,), dtype=jnp.float32)

    # Hoisted one-time weight/param repack (not part of the per-call path).
    w_mat, gamma2d, beta2d = jax.block_until_ready(
        pack_conv_bn_params(weight, gamma, beta))

    # TODO(synk): BatchNorm running_mean/running_var updates (track_running_stats)
    # are not produced; only the forward output (batch-stats BN) is computed.
    out = conv2d_bn_relu_nchw(x, w_mat, gamma2d, beta2d)
    out = jax.block_until_ready(out)
    assert out.shape == (N, C_out, H, W), out.shape
    assert out.dtype == jnp.bfloat16, out.dtype
    print("KERNEL_OK")
</pallas_src>

<mosaic_0001>
module attributes {stable_mosaic.version = 11 : i64} {
  func.func @_conv_bn_relu_kernel(%arg0: i32, %arg1: memref<64x976xbf16, #tpu.memory_space<vmem>>, %arg2: memref<976x1024xbf16, #tpu.memory_space<vmem>>, %arg3: memref<1x1024xf32, #tpu.memory_space<vmem>>, %arg4: memref<1x1024xf32, #tpu.memory_space<vmem>>, %arg5: memref<64x1024xbf16, #tpu.memory_space<vmem>>) attributes {dimension_semantics = [#tpu.dimension_semantics<parallel>], iteration_bounds = array<i64: 2>, scalar_prefetch = 0 : i64, scratch_operands = 0 : i64, tpu.core_type = #tpu.core_type<tc>, window_params = [{pipeline_mode = #tpu.pipeline_mode<synchronous>, transform_indices = @transform_0, window_bounds = array<i64: 64, 976>}, {transform_indices = @transform_1, window_bounds = array<i64: 976, 1024>}, {transform_indices = @transform_2, window_bounds = array<i64: 1, 1024>}, {transform_indices = @transform_3, window_bounds = array<i64: 1, 1024>}, {transform_indices = @transform_4, window_bounds = array<i64: 64, 1024>}]} {
    %c0 = arith.constant 0 : index
    %c0_0 = arith.constant 0 : index
    %0 = vector.load %arg1[%c0, %c0_0] : memref<64x976xbf16, #tpu.memory_space<vmem>>, vector<64x976xbf16>
    %c0_1 = arith.constant 0 : index
    %c0_2 = arith.constant 0 : index
    %1 = vector.load %arg2[%c0_1, %c0_2] : memref<976x1024xbf16, #tpu.memory_space<vmem>>, vector<976x1024xbf16>
    %cst = arith.constant dense<0.000000e+00> : vector<64x1024xf32>
    %2 = tpu.matmul %0, %1, %cst {dimension_numbers = #tpu.dot_dimension_numbers<[1], [0], [0], [1], [0, 0, 1, 1], [], []>} : vector<64x976xbf16>, vector<976x1024xbf16>, vector<64x1024xf32> -> vector<64x1024xf32>
    %cst_3 = arith.constant dense<0.000000e+00> : vector<1024xf32>
    %3 = vector.multi_reduction <add>, %2, %cst_3 [0] : vector<64x1024xf32> to vector<1024xf32>
    %4 = vector.shape_cast %3 : vector<1024xf32> to vector<1x1024xf32>
    %cst_4 = arith.constant 0.0204081628 : f32
    %5 = vector.broadcast %cst_4 : f32 to vector<1x1024xf32>
    %6 = arith.mulf %4, %5 : vector<1x1024xf32>
    %7 = tpu.iota {dimensions = array<i32: 0>} : vector<64x1xi32>
    %c49_i32 = arith.constant 49 : i32
    %8 = vector.broadcast %c49_i32 : i32 to vector<64x1xi32>
    %9 = arith.cmpi slt, %7, %8 : vector<64x1xi32>
    %10 = vector.broadcast %6 : vector<1x1024xf32> to vector<64x1024xf32>
    %11 = arith.subf %2, %10 : vector<64x1024xf32>
    %cst_5 = arith.constant 0.000000e+00 : f32
    %12 = vector.shape_cast %9 : vector<64x1xi1> to vector<64x1xi1>
    %13 = vector.broadcast %12 : vector<64x1xi1> to vector<64x1024xi1>
    %14 = vector.broadcast %cst_5 : f32 to vector<64x1024xf32>
    %15 = arith.select %13, %11, %14 : vector<64x1024xi1>, vector<64x1024xf32>
    %16 = arith.mulf %15, %15 : vector<64x1024xf32>
    %cst_6 = arith.constant dense<0.000000e+00> : vector<1024xf32>
    %17 = vector.multi_reduction <add>, %16, %cst_6 [0] : vector<64x1024xf32> to vector<1024xf32>
    %18 = vector.shape_cast %17 : vector<1024xf32> to vector<1x1024xf32>
    %cst_7 = arith.constant 0.0204081628 : f32
    %19 = vector.broadcast %cst_7 : f32 to vector<1x1024xf32>
    %20 = arith.mulf %18, %19 : vector<1x1024xf32>
    %cst_8 = arith.constant 9.99999974E-6 : f32
    %21 = vector.broadcast %cst_8 : f32 to vector<1x1024xf32>
    %22 = arith.addf %20, %21 : vector<1x1024xf32>
    %23 = math.rsqrt %22 : vector<1x1024xf32>
    %c0_9 = arith.constant 0 : index
    %c0_10 = arith.constant 0 : index
    %24 = vector.load %arg3[%c0_9, %c0_10] : memref<1x1024xf32, #tpu.memory_space<vmem>>, vector<1x1024xf32>
    %25 = arith.mulf %23, %24 : vector<1x1024xf32>
    %26 = vector.broadcast %25 : vector<1x1024xf32> to vector<64x1024xf32>
    %27 = arith.mulf %15, %26 : vector<64x1024xf32>
    %c0_11 = arith.constant 0 : index
    %c0_12 = arith.constant 0 : index
    %28 = vector.load %arg4[%c0_11, %c0_12] : memref<1x1024xf32, #tpu.memory_space<vmem>>, vector<1x1024xf32>
    %29 = vector.broadcast %28 : vector<1x1024xf32> to vector<64x1024xf32>
    %30 = arith.addf %27, %29 : vector<64x1024xf32>
    %cst_13 = arith.constant 0.000000e+00 : f32
    %31 = vector.broadcast %cst_13 : f32 to vector<64x1024xf32>
    %32 = arith.maximumf %30, %31 : vector<64x1024xf32>
    %33 = arith.truncf %32 : vector<64x1024xf32> to vector<64x1024xbf16>
    %c0_14 = arith.constant 0 : index
    %c0_15 = arith.constant 0 : index
    %34 = vector.load %arg5[%c0_14, %c0_15] : memref<64x1024xbf16, #tpu.memory_space<vmem>>, vector<64x1024xbf16>
    tpu.vector_store %arg5[%c0_14, %c0_15], %33 {strides = array<i32>} : memref<64x1024xbf16, #tpu.memory_space<vmem>>, vector<64x1024xbf16>,
    return
  }
  func.func @transform_0(%arg0: i32) -> (i32, i32) {
    %c0_i32 = arith.constant 0 : i32
    %c0_i32_0 = arith.constant 0 : i32
    %c0_i32_1 = arith.constant 0 : i32
    return %c0_i32, %c0_i32_0 : i32, i32
  }
  func.func @transform_1(%arg0: i32) -> (i32, i32) {
    %c0_i32 = arith.constant 0 : i32
    %c0_i32_0 = arith.constant 0 : i32
    return %c0_i32, %arg0 : i32, i32
  }
  func.func @transform_2(%arg0: i32) -> (i32, i32) {
    %c0_i32 = arith.constant 0 : i32
    %c0_i32_0 = arith.constant 0 : i32
    return %c0_i32, %arg0 : i32, i32
  }
  func.func @transform_3(%arg0: i32) -> (i32, i32) {
    %c0_i32 = arith.constant 0 : i32
    %c0_i32_0 = arith.constant 0 : i32
    return %c0_i32, %arg0 : i32, i32
  }
  func.func @transform_4(%arg0: i32) -> (i32, i32) {
    %c0_i32 = arith.constant 0 : i32
    %c0_i32_0 = arith.constant 0 : i32
    return %c0_i32, %arg0 : i32, i32
  }
}

</mosaic_0001>

<bundles_post_ra>
// kernel: tpu_custom_call.1
= control target key start
LH: loop header
LB: loop body
LE: loop exit
PB: predicated region body
PF: predicated region fallthrough
CT: control target
= control target key end

     0   :  { %s9023_s0 = inlined_call_operand.hbm [shape: bf16[64,976], index: 0, kind: input, shape index: {}]   ;;  %s9024_s1 = inlined_call_operand.hbm [shape: bf16[976,2048], index: 1, kind: input, shape index: {}]   ;;  %s9025_s2 = inlined_call_operand.hbm [shape: f32[1,2048], index: 2, kind: input, shape index: {}]   ;;  %s9026_s3 = inlined_call_operand.hbm [shape: f32[1,2048], index: 3, kind: input, shape index: {}]   ;;  %s9027_s4 = inlined_call_operand.hbm [shape: bf16[64,2048], index: 4, kind: output, shape index: {}]  }
   0x1   :  { %9086 = sst [smem:[#allocation60_spill]] %s9024_s1 }
   0x2   :  { %9 = vsyncpa [#allocation3], 0 }
   0x3   :  { %10 = vsyncpa [#allocation6], 0 }
   0x4   :  { %12 = vsyncpa [#allocation6 + $0x1], 0 }
   0x5   :  { %13 = vsyncpa [#allocation9], 0 }
   0x6   :  { %15 = vsyncpa [#allocation9 + $0x1], 0 }
   0x7   :  { %16 = vsyncpa [#allocation4], 0 }
   0x8   :  { %18 = vsyncpa [#allocation4 + $0x1], 0  ;;  %s6694_s15 = smov 0   ;;  %s6696_s16 = smov 0  }
   0x9   :  { %s6698_s17 = smov 0   ;;  %s6700_s18 = smov 0  }
   0xa LB: > { %s6715_s19 = sadd.s32 1, %s6656_s18   ;;  %s52_s20 = sadd.s32 1, %s6652_s17  ;;  %s6656_s18 = sphi %s6700_s18, %s9253_s18   ;;  %s6652_s17 = sphi %s6698_s17, %s9252_s17   ;;  %s6648_s16 = sphi %s6696_s16, %s9251_s16   ;;  %s6644_s15 = sphi %s6694_s15, %s9250_s15  }
   0xb   : > { %s49_s21 = ssub.s32 %s6656_s18, %s6715_s19  ;;  %p9028_p0 = scmp.ne.s32.totalorder %s6652_s17, %s6648_s16 }
   0xc   : > { %p50_p1 = scmp.eq.s32.totalorder %s49_s21, 0  ;;  %p60_p2 = scmp.eq.s32.totalorder %s6656_s18, 0 }
   0xd   : > { %p6412_p5 = scmp.lt.s32.totalorder %s6656_s18, 2  ;;  %s180_s23 = sand.u32 1, %s6656_s18  }
   0xe   : > { %s6724_s22 = scalar_select %p50_p1, %s6652_s17, %s52_s20  }
   0xf   : > { %p61_p3 = por %p60_p2, %p9028_p0  ;;  %s6733_s24 = sand.u32 1, %s6652_s17  }
  0x10   : > { %9087 = sst [smem:[#allocation15_spill]] %s6724_s22  ;;  %s6379_s25 = smul.u32 3904, %s6733_s24 }
  0x11   : > { %s6343_s26 = sshll.u32 %s6656_s18, 9  ;;  %s9088_s1 = sld [smem:[#allocation60_spill]] }
  0x12   : > { %p6742_p6 = pnand %p6412_p5, %p61_p3  ;;  %s184_s5 = scalar_lea.vmem [#allocation5], %s6379_s25 }
  0x13   : > { %s191_s6 = sshll.u32 %s184_s5, 4  ;;  %s6748_s7 = scalar_lea.sflag [#allocation6], %s180_s23  ;;  %s6746_s6 = int_to_ptr.vmem [resolvable:$true] %s191_s6 }
  0x14   : > { %p6754_p8 = pneg %p6742_p6 }
  0x17   : > { %s6740_s29 = scalar_lea.hbm %s9088_s1, %s6343_s26  ;;  %s6479_s12 = scalar_lea.hbm %s9088_s1, 124928 }
  0x18   : > { %s6474_s8 = scalar_lea.hbm %s6740_s29, 62464  ;;  %p6480_p11 = scmp.lt.s32.totalorder %s6740_s29, %s9088_s1 }
  0x19   : > { %p6475_p7 = scmp.ne.s32.totalorder %s6740_s29, %s6474_s8  ;;  %p6481_p12 = scmp.lt.s32.totalorder %s6479_s12, %s6474_s8 }
  0x1b   : > { %p6477_p9 = pnand %p6754_p8, %p6475_p7  ;;  %p6482_p13 = por %p6481_p12, %p6480_p11 }
  0x1d   : > { %p6478_p10 = pneg %p6477_p9 }
  0x1f   : > { %p6483_p1 = pnand %p6482_p13, %p6478_p10 }
  0x21   : > { %6486 = shalt.err (!%p6483_p1)
}
  0x22   : > { %s6487_s20 = scalar_lea.vmem %s6746_s6, 62464  ;;  %s6658_s21 = smov [#allocation5]  }
  0x23   : > { %p6488_p2 = scmp.ne.s32.totalorder %s6746_s6, %s6487_s20  ;;  %s6492_s23 = sshll.u32 %s6658_s21, 4  ;;  %s6493_s23 = int_to_ptr.vmem [resolvable:$false] %s6492_s23 }
  0x24   : > { %s6494_s25 = scalar_lea.vmem %s6493_s23, 124928  ;;  %p6495_p7 = scmp.lt.s32.totalorder %s6746_s6, %s6493_s23 }
  0x25   : > { %p6490_p3 = pnand %p6488_p2, %p6754_p8  ;;  %p6496_p9 = scmp.lt.s32.totalorder %s6494_s25, %s6487_s20 }
  0x27   : > { %p6491_p5 = pneg %p6490_p3  ;;  %p6497_p4 = por %p6496_p9, %p6495_p7 }
  0x29   : > { %p6498_p0 = pnand %p6497_p4, %p6491_p5 }
  0x2b   : > { %6501 = shalt.err (!%p6498_p0)
}
  0x2c   : > { %s6659_s26 = smov 1024   ;;  %s6660_s27 = smov 512  }
  0x2d   : > { %s6661_s28 = smov 32   ;;  %s6780_s5 = sadd.s32 4294967295, %s6656_s18  }
  0x2e   : > { %6400 = dma.hbm_to_vmem [thread:$0]  (!%p6742_p6), %s6740_s29, 62464, %s6746_s6, %s6748_s7, %s6659_s26, %s6660_s27, %s6661_s28  }
  0x2f   : > { %s5753_s8 = sadd.s32 4294967294, %s6656_s18   ;;  %p65_p0 = scmp.ne.s32.totalorder %s6648_s16, %s6644_s15 }
  0x30   : > { %p9033_p4 = scmp.eq.s32.totalorder %s6780_s5, 0  ;;  %p141_p10 = scmp.eq.s32.totalorder %s6780_s5, 1 }
  0x31   : > { %p147_p11 = scmp.eq.s32.totalorder %s5753_s8, 1  ;;  %p5754_p12 = scmp.ge.s32.totalorder %s6656_s18, 1 }
  0x32   : > { %p6790_p13 = por %p9033_p4, %p65_p0  ;;  %p9092_p1 = scmp.ne.s32.totalorder %s6652_s17, %s6648_s16 }
  0x33   : > { %p6801_p3 = por %p147_p11, %p65_p0  ;;  %p154_p5 = scmp.lt.s32.totalorder %s6656_s18, 3 }
  0x34   : > { %s9091_s10 = scalar_select %p6790_p13, 1, 0 }
  0x35   : > { %p6797_p2 = por %p141_p10, %p9092_p1  ;;  %p6806_p7 = pnand %p5754_p12, %p154_p5 }
  0x36   : > { %s9094_s6 = scalar_select %p6801_p3, 1, 0 }
  0x37   : > { %s9093_s29 = scalar_select %p6797_p2, 1, 0 }
  0x38   : > { %s9095_s11 = scalar_select %p6806_p7, 1, 0 }
  0x39   : > { %s6662_s12 = smov [#allocation2]   ;;  %s9031_s14 = sshll.u32 %s6733_s24, 3 }
  0x3a   : > { %s166_s13 = sshll.u32 %s6662_s12, 4  ;;  %p6393_p9 = pneg %p6806_p7  ;;  %s167_s13 = int_to_ptr.vmem [resolvable:$true] %s166_s13 }
  0x3b   : > { %s9032_s20 = sshll.u32 %s6656_s18, 7  ;;  %s205_s21 = scalar_lea.vmem [#allocation7], %s9031_s14 }
  0x3c   : > { %s213_s23 = sshll.u32 %s205_s21, 4  ;;  %p6394_p0 = pnand %p6393_p9, %p9033_p4  ;;  %s6825_s23 = int_to_ptr.vmem [resolvable:$true] %s213_s23 }
  0x3d   : > { %s6823_s8 = scalar_lea.hbm %s9025_s2, %s9032_s20  ;;  %s6513_s12 = scalar_lea.vmem %s167_s13, 4096 }
  0x3e   : > { %p6504_p10 = pneg %p6394_p0  ;;  %p6514_p11 = scmp.ne.s32.totalorder %s167_s13, %s6513_s12 }
  0x3f   : > { %p6521_p5 = scmp.lt.s32.totalorder %s167_s13, %s167_s13  ;;  %p6522_p3 = scmp.lt.s32.totalorder %s6513_s12, %s6513_s12 }
  0x40   : > { %p6516_p12 = pnand %p6514_p11, %p6504_p10 }
  0x41   : > { %p6523_p2 = por %p6522_p3, %p6521_p5 }
  0x42   : > { %p6517_p1 = pneg %p6516_p12 }
  0x44   : > { %p6524_p13 = pnand %p6523_p2, %p6517_p1 }
  0x46   : > { %6527 = shalt.err (!%p6524_p13)
}
  0x47   : > { %6396 = dma.hbm_to_vmem [thread:$0]  (!%p6394_p0), %s9023_s0, 4096, %s167_s13, [#allocation3], %s6660_s27, %s6660_s27, %s6661_s28  }
  0x48   : > { %s6528_s25 = scalar_lea.hbm %s6823_s8, 128  ;;  %s6533_s20 = scalar_lea.hbm %s9025_s2, 256 }
  0x49   : > { %p6529_p9 = scmp.ne.s32.totalorder %s6823_s8, %s6528_s25  ;;  %p6534_p13 = scmp.lt.s32.totalorder %s6823_s8, %s9025_s2 }
  0x4a   : > { %p6535_p2 = scmp.lt.s32.totalorder %s6533_s20, %s6528_s25 }
  0x4b   : > { %p6531_p10 = pnand %p6529_p9, %p6754_p8 }
  0x4c   : > { %p6536_p3 = por %p6535_p2, %p6534_p13 }
  0x4d   : > { %p6532_p11 = pneg %p6531_p10 }
  0x4f   : > { %p6537_p12 = pnand %p6536_p3, %p6532_p11 }
  0x51   : > { %6540 = shalt.err (!%p6537_p12)
}
  0x52   : > { %s6541_s27 = scalar_lea.vmem %s6825_s23, 128  ;;  %s6663_s28 = smov [#allocation7]  }
  0x53   : > { %p6542_p0 = scmp.ne.s32.totalorder %s6825_s23, %s6541_s27  ;;  %s6546_s13 = sshll.u32 %s6663_s28, 4  ;;  %s6547_s13 = int_to_ptr.vmem [resolvable:$false] %s6546_s13 }
  0x54   : > { %s6548_s14 = scalar_lea.vmem %s6547_s13, 256  ;;  %p6549_p9 = scmp.lt.s32.totalorder %s6825_s23, %s6547_s13 }
  0x55   : > { %p6544_p1 = pnand %p6542_p0, %p6754_p8  ;;  %p6550_p10 = scmp.lt.s32.totalorder %s6548_s14, %s6541_s27 }
  0x57   : > { %p6545_p5 = pneg %p6544_p1  ;;  %p6551_p4 = por %p6550_p10, %p6549_p9 }
  0x59   : > { %p6552_p7 = pnand %p6551_p4, %p6545_p5 }
  0x5b   : > { %6555 = shalt.err (!%p6552_p7)
}
  0x5c   : > { %6403 = dma.hbm_to_vmem [thread:$0]  (!%p6742_p6), %s6823_s8, 128, %s6825_s23, %s6748_s7  }
  0x5d   : > { %s9096_s1 = sshll.u32 %s6656_s18, 7  ;;  %s9097_s25 = sshll.u32 %s6733_s24, 3 }
  0x5e   : > { %s6859_s21 = scalar_lea.hbm %s9026_s3, %s9096_s1  ;;  %s224_s26 = scalar_lea.vmem [#allocation8], %s9097_s25 }
  0x5f   : > { %s232_s12 = sshll.u32 %s224_s26, 4  ;;  %s221_s27 = scalar_lea.sflag [#allocation9], %s6733_s24  ;;  %s233_s12 = int_to_ptr.vmem [resolvable:$true] %s232_s12 }
  0x60   : > { %s6556_s28 = scalar_lea.hbm %s6859_s21, 128  ;;  %s6561_s8 = scalar_lea.hbm %s9026_s3, 256 }
  0x61   : > { %p6557_p4 = scmp.ne.s32.totalorder %s6859_s21, %s6556_s28  ;;  %p6562_p13 = scmp.lt.s32.totalorder %s6859_s21, %s9026_s3 }
  0x62   : > { %p6563_p2 = scmp.lt.s32.totalorder %s6561_s8, %s6556_s28 }
  0x63   : > { %p6559_p7 = pnand %p6557_p4, %p6754_p8 }
  0x64   : > { %p6564_p3 = por %p6563_p2, %p6562_p13 }
  0x65   : > { %p6560_p11 = pneg %p6559_p7 }
  0x67   : > { %p6565_p12 = pnand %p6564_p3, %p6560_p11 }
  0x69   : > { %6568 = shalt.err (!%p6565_p12)
}
  0x6a   : > { %s6569_s1 = scalar_lea.vmem %s233_s12, 128  ;;  %s6664_s24 = smov [#allocation8]  }
  0x6b   : > { %p6570_p0 = scmp.ne.s32.totalorder %s233_s12, %s6569_s1  ;;  %s6574_s22 = sshll.u32 %s6664_s24, 4  ;;  %s6575_s22 = int_to_ptr.vmem [resolvable:$false] %s6574_s22 }
  0x6c   : > { %s6576_s20 = scalar_lea.vmem %s6575_s22, 256  ;;  %p6577_p9 = scmp.lt.s32.totalorder %s233_s12, %s6575_s22 }
  0x6d   : > { %p6572_p1 = pnand %p6570_p0, %p6754_p8  ;;  %p6578_p10 = scmp.lt.s32.totalorder %s6576_s20, %s6569_s1 }
  0x6f   : > { %p6573_p5 = pneg %p6572_p1  ;;  %p6579_p4 = por %p6578_p10, %p6577_p9 }
  0x71   : > { %p6580_p7 = pnand %p6579_p4, %p6573_p5 }
  0x73   : > { %6583 = shalt.err (!%p6580_p7)
}
  0x74   : > { %6406 = dma.hbm_to_vmem [thread:$0]  (!%p6742_p6), %s6859_s21, 128, %s233_s12, %s221_s27  }
  0x75   : > { %p9098_p11 = scmp.ne.s32.totalorder %s9095_s11, 0 }
  0x77   : > { %241 = sbr.rel (%p9098_p11) target bundleno = 964 (0x3c4), region = 36 }
  0x7c   : > { %p9099_p13 = scmp.eq.s32.totalorder %s6780_s5, 0 }
  0x7e   : > { %6627 = dma.done.wait (%p9099_p13), [#allocation3], 4096   ;;  %p9100_p8 = pmov %p9099_p13 }
  0x7f   : > { %s247_s9 = sand.u32 1, %s6780_s5   ;;  %s6888_s25 = sand.u32 1, %s6648_s16  }
  0x80   : > { %6629 = vsyncadd (%p9100_p8), [#allocation3], 4294963200  ;;  %s6380_s26 = smul.u32 3904, %s6888_s25  ;;  %s248_s30 = scalar_lea.sflag [#allocation6], %s247_s9 }
  0x81   : > { %p9101_p6 = scmp.ne.s32.totalorder %s9091_s10, 0 }
  0x82   : > { %s6891_s28 = scalar_lea.vmem [#allocation5], %s6380_s26 }
  0x83   : > { %6631 = dma.done.wait (%p9101_p6), %s248_s30, 62592  }
  0x84   : > { %6633 = vsyncadd (%p9101_p6), %s248_s30, 4294904704  ;;  %s5767_s11 = sshll.u32 %s6888_s25, 3  ;;  %s266_s12 = scalar_lea.sflag [#allocation9], %s6888_s25 }
  0x85   : > { %s6898_s21 = scalar_lea.vmem [#allocation7], %s5767_s11  ;;  %s6901_s27 = scalar_lea.vmem [#allocation8], %s5767_s11 }
  0x86   : > { %6635 = dma.done.wait (%p9101_p6), %s266_s12, 128  }
  0x87   : > { %6637 = vsyncadd (%p9101_p6), %s266_s12, 4294967168  ;;  %v397_v0 = vld [vmem:[%s6891_s28 + $0x1c0] sm:$0xff]  ;;  %v6945_v59 = vld [vmem:[#allocation2 + $0x8] sm:$0xff]  ;;  %vm3425_vm0 = vcmask 654336   ;;  %s5769_s10 = sshll.u32 %s6888_s25, 8  ;;  %s6378_s23 = sshll.u32 %s6780_s5, 9 }
  0x88   : > { %v401_v1 = vld [vmem:[%s6891_s28 + $0x1e0] sm:$0xff]  ;;  %v6947_v60 = vld [vmem:[#allocation2 + $0x28] sm:$0xff]  ;;  %s8153_s7 = scalar_lea.vmem [#allocation10], %s5769_s10  ;;  %s8970_s14 = scalar_lea.hbm %s9027_s4, %s6378_s23 }
  0x89   : > { %v525_v2 = vld [vmem:[%s6891_s28 + $0x5c0] sm:$0xff]  ;;  %v5859_v3 = vcombine.high %v397_v0, %v401_v1  ;;  %v5858_v5 = vcombine.low %v397_v0, %v401_v1  ;;  %v6953_v63 = vcombine.high %v6945_v59, %v6947_v60  ;;  %s5625_s8 = sshll.u32 %s8153_s7, 4  ;;  %s5612_s1 = scalar_lea.sflag [#allocation4], %s6888_s25  ;;  %s8972_s8 = int_to_ptr.vmem [resolvable:$true] %s5625_s8 }
  0x8a   : > { %v529_v4 = vld [vmem:[%s6891_s28 + $0x5e0] sm:$0xff]  ;;  %s6584_s24 = scalar_lea.vmem %s8972_s8, 4096  ;;  %p9246_p3 = scmp.ne.s32.totalorder %s9093_s29, 0 }
  0x8b   : > { %v389_v6 = vld [vmem:[%s6891_s28 + $0x180] sm:$0xff]  ;;  %v5987_v8 = vcombine.high %v525_v2, %v529_v4  ;;  %v5986_v9 = vcombine.low %v525_v2, %v529_v4  ;;  %3438 = vmatprep.subr.bf16.mxu0 %v5859_v3  ;;  %9103 = vst [vmem:[#allocation17_spill] sm:$0xff] %v6953_v63  ;;  %3543 = vmatprep.mubr.bf16.mxu1 %v6953_v63  ;;  %p6585_p2 = scmp.ne.s32.totalorder %s8972_s8, %s6584_s24  ;;  %s6665_s22 = smov [#allocation10]  }
  0x8c   : > { %v393_v7 = vld [vmem:[%s6891_s28 + $0x1a0] sm:$0xff]  ;;  %3439 = vmatpush1.bf16.msra.mxu0 %v5858_v5  ;;  %s6588_s20 = sshll.u32 %s6665_s22, 4  ;;  %s6589_s20 = int_to_ptr.vmem [resolvable:$false] %s6588_s20 }
  0x8d   : > { %v5851_v10 = vcombine.high %v389_v6, %v393_v7  ;;  %v517_v11 = vld [vmem:[%s6891_s28 + $0x580] sm:$0xff]  ;;  %3511 = vmatprep.subr.bf16.mxu1 %v5987_v8  ;;  %v5850_v18 = vcombine.low %v389_v6, %v393_v7  ;;  %p6586_p12 = pnand %p6585_p2, %p9246_p3  ;;  %s6590_s9 = scalar_lea.vmem %s6589_s20, 8192 }
  0x8e   : > { %v521_v12 = vld [vmem:[%s6891_s28 + $0x5a0] sm:$0xff]  ;;  %3512 = vmatpush1.bf16.msra.mxu1 %v5986_v9  ;;  %p6591_p1 = scmp.lt.s32.totalorder %s8972_s8, %s6589_s20  ;;  %p6592_p5 = scmp.lt.s32.totalorder %s6590_s9, %s6584_s24 }
  0x8f   : > { %v381_v13 = vld [vmem:[%s6891_s28 + $0x140] sm:$0xff]  ;;  %v5979_v14 = vcombine.high %v517_v11, %v521_v12  ;;  %3440 = vmatprep.subr.bf16.mxu0 %v5851_v10  ;;  %v5978_v19 = vcombine.low %v517_v11, %v521_v12  ;;  %p6587_p0 = pneg %p6586_p12 }
  0x90   : > { %v385_v15 = vld [vmem:[%s6891_s28 + $0x160] sm:$0xff]  ;;  %3441 = vmatpush1.bf16.msra.mxu0 %v5850_v18  ;;  %p6593_p9 = por %p6592_p5, %p6591_p1 }
  0x91   : > { %v509_v16 = vld [vmem:[%s6891_s28 + $0x540] sm:$0xff]  ;;  %v5843_v20 = vcombine.high %v381_v13, %v385_v15  ;;  %3513 = vmatprep.subr.bf16.mxu1 %v5979_v14  ;;  %v5842_v26 = vcombine.low %v381_v13, %v385_v15 }
  0x92   : > { %v513_v17 = vld [vmem:[%s6891_s28 + $0x560] sm:$0xff]  ;;  %3514 = vmatpush1.bf16.msra.mxu1 %v5978_v19  ;;  %p6594_p10 = pnand %p6593_p9, %p6587_p0 }
  0x93   : > { %v5971_v21 = vcombine.high %v509_v16, %v513_v17  ;;  %v373_v22 = vld [vmem:[%s6891_s28 + $0x100] sm:$0xff]  ;;  %3442 = vmatprep.subr.bf16.mxu0 %v5843_v20  ;;  %v5970_v27 = vcombine.low %v509_v16, %v513_v17 }
  0x94   : > { %v377_v23 = vld [vmem:[%s6891_s28 + $0x120] sm:$0xff]  ;;  %3443 = vmatpush1.bf16.msra.mxu0 %v5842_v26 }
  0x95   : > { %v501_v24 = vld [vmem:[%s6891_s28 + $0x500] sm:$0xff]  ;;  %v5835_v28 = vcombine.high %v373_v22, %v377_v23  ;;  %3515 = vmatprep.subr.bf16.mxu1 %v5971_v21  ;;  %v5834_v34 = vcombine.low %v373_v22, %v377_v23 }
  0x96   : > { %v505_v25 = vld [vmem:[%s6891_s28 + $0x520] sm:$0xff]  ;;  %3516 = vmatpush1.bf16.msra.mxu1 %v5970_v27 }
  0x97   : > { %v5963_v29 = vcombine.high %v501_v24, %v505_v25  ;;  %v365_v30 = vld [vmem:[%s6891_s28 + $0xc0] sm:$0xff]  ;;  %3444 = vmatprep.subr.bf16.mxu0 %v5835_v28  ;;  %v5962_v35 = vcombine.low %v501_v24, %v505_v25 }
  0x98   : > { %v369_v31 = vld [vmem:[%s6891_s28 + $0xe0] sm:$0xff]  ;;  %3445 = vmatpush1.bf16.msra.mxu0 %v5834_v34 }
  0x99   : > { %v493_v32 = vld [vmem:[%s6891_s28 + $0x4c0] sm:$0xff]  ;;  %v5827_v36 = vcombine.high %v365_v30, %v369_v31  ;;  %3517 = vmatprep.subr.bf16.mxu1 %v5963_v29  ;;  %v5826_v42 = vcombine.low %v365_v30, %v369_v31 }
  0x9a   : > { %v497_v33 = vld [vmem:[%s6891_s28 + $0x4e0] sm:$0xff]  ;;  %3518 = vmatpush1.bf16.msra.mxu1 %v5962_v35 }
  0x9b   : > { %v5955_v37 = vcombine.high %v493_v32, %v497_v33  ;;  %v357_v38 = vld [vmem:[%s6891_s28 + $0x80] sm:$0xff]  ;;  %3446 = vmatprep.subr.bf16.mxu0 %v5827_v36  ;;  %v5954_v43 = vcombine.low %v493_v32, %v497_v33 }
  0x9c   : > { %v361_v39 = vld [vmem:[%s6891_s28 + $0xa0] sm:$0xff]  ;;  %3447 = vmatpush1.bf16.msra.mxu0 %v5826_v42 }
  0x9d   : > { %v485_v40 = vld [vmem:[%s6891_s28 + $0x480] sm:$0xff]  ;;  %v5819_v44 = vcombine.high %v357_v38, %v361_v39  ;;  %3519 = vmatprep.subr.bf16.mxu1 %v5955_v37  ;;  %v5818_v50 = vcombine.low %v357_v38, %v361_v39 }
  0x9e   : > { %v489_v41 = vld [vmem:[%s6891_s28 + $0x4a0] sm:$0xff]  ;;  %3520 = vmatpush1.bf16.msra.mxu1 %v5954_v43 }
  0x9f   : > { %v5947_v45 = vcombine.high %v485_v40, %v489_v41  ;;  %v349_v46 = vld [vmem:[%s6891_s28 + $0x40] sm:$0xff]  ;;  %3448 = vmatprep.subr.bf16.mxu0 %v5819_v44  ;;  %v5946_v51 = vcombine.low %v485_v40, %v489_v41 }
  0xa0   : > { %v353_v47 = vld [vmem:[%s6891_s28 + $0x60] sm:$0xff]  ;;  %3449 = vmatpush1.bf16.msra.mxu0 %v5818_v50 }
  0xa1   : > { %v477_v48 = vld [vmem:[%s6891_s28 + $0x440] sm:$0xff]  ;;  %v5811_v52 = vcombine.high %v349_v46, %v353_v47  ;;  %3521 = vmatprep.subr.bf16.mxu1 %v5947_v45  ;;  %v5810_v0 = vcombine.low %v349_v46, %v353_v47 }
  0xa2   : > { %v481_v49 = vld [vmem:[%s6891_s28 + $0x460] sm:$0xff]  ;;  %3522 = vmatpush1.bf16.msra.mxu1 %v5946_v51 }
  0xa3   : > { %v341_v53 = vld [vmem:[%s6891_s28] sm:$0xff]  ;;  %v5939_v56 = vcombine.high %v477_v48, %v481_v49  ;;  %3450 = vmatprep.subr.bf16.mxu0 %v5811_v52  ;;  %v5938_v1 = vcombine.low %v477_v48, %v481_v49 }
  0xa4   : > { %v6936_v54 = vld [vmem:[#allocation2] sm:$0xff]  ;;  %3451 = vmatpush1.bf16.msra.mxu0 %v5810_v0 }
  0xa5   : > { %v6938_v55 = vld [vmem:[#allocation2 + $0x20] sm:$0xff]  ;;  %3523 = vmatprep.subr.bf16.mxu1 %v5939_v56 }
  0xa6   : > { %v345_v57 = vld [vmem:[%s6891_s28 + $0x20] sm:$0xff]  ;;  %v6943_v58 = vcombine.high %v6936_v54, %v6938_v55  ;;  %3524 = vmatpush1.bf16.msra.mxu1 %v5938_v1 }
  0xa7   : > { %v469_v61 = vld [vmem:[%s6891_s28 + $0x400] sm:$0xff]  ;;  %v5803_v2 = vcombine.high %v341_v53, %v345_v57  ;;  %v5802_v8 = vcombine.low %v341_v53, %v345_v57 }
  0xa8   : > { %9102 = vst [vmem:[#allocation16_spill] sm:$0xff] %v6943_v58  ;;  %v473_v62 = vld [vmem:[%s6891_s28 + $0x420] sm:$0xff]  ;;  %3470 = vmatprep.mubr.bf16.mxu0 %v6943_v58 }
  0xa9   : > { %v5931_v3 = vcombine.high %v469_v61, %v473_v62  ;;  %v461_v4 = vld [vmem:[%s6891_s28 + $0x3c0] sm:$0xff]  ;;  %3452 = vmatprep.subr.bf16.mxu0 %v5803_v2  ;;  %v5930_v9 = vcombine.low %v469_v61, %v473_v62 }
  0xaa   : > { %v465_v5 = vld [vmem:[%s6891_s28 + $0x3e0] sm:$0xff]  ;;  %3453 = vmatpush1.bf16.msra.mxu0 %v5802_v8 }
  0xab   : > { %v589_v6 = vld [vmem:[%s6891_s28 + $0x7c0] sm:$0xff]  ;;  %v5923_v10 = vcombine.high %v461_v4, %v465_v5  ;;  %3525 = vmatprep.subr.bf16.mxu1 %v5931_v3  ;;  %v5922_v16 = vcombine.low %v461_v4, %v465_v5 }
  0xac   : > { %v593_v7 = vld [vmem:[%s6891_s28 + $0x7e0] sm:$0xff]  ;;  %3526 = vmatpush1.bf16.msra.mxu1 %v5930_v9 }
  0xad   : > { %v6051_v11 = vcombine.high %v589_v6, %v593_v7  ;;  %v453_v12 = vld [vmem:[%s6891_s28 + $0x380] sm:$0xff]  ;;  %3454 = vmatprep.subr.bf16.mxu0 %v5923_v10  ;;  %v6050_v17 = vcombine.low %v589_v6, %v593_v7 }
  0xae   : > { %v457_v13 = vld [vmem:[%s6891_s28 + $0x3a0] sm:$0xff]  ;;  %3455 = vmatpush2.bf16.msra.mxu0 %v5922_v16 }
  0xaf   : > { %v581_v14 = vld [vmem:[%s6891_s28 + $0x780] sm:$0xff]  ;;  %v5915_v18 = vcombine.high %v453_v12, %v457_v13  ;;  %3527 = vmatprep.subr.bf16.mxu1 %v6051_v11  ;;  %v5914_v24 = vcombine.low %v453_v12, %v457_v13 }
  0xb0   : > { %v585_v15 = vld [vmem:[%s6891_s28 + $0x7a0] sm:$0xff]  ;;  %3528 = vmatpush2.bf16.msra.mxu1 %v6050_v17 }
  0xb1   : > { %v6043_v19 = vcombine.high %v581_v14, %v585_v15  ;;  %v445_v20 = vld [vmem:[%s6891_s28 + $0x340] sm:$0xff]  ;;  %3456 = vmatprep.subr.bf16.mxu0 %v5915_v18  ;;  %v6042_v25 = vcombine.low %v581_v14, %v585_v15 }
  0xb2   : > { %v449_v21 = vld [vmem:[%s6891_s28 + $0x360] sm:$0xff]  ;;  %3457 = vmatpush2.bf16.msra.mxu0 %v5914_v24 }
  0xb3   : > { %v573_v22 = vld [vmem:[%s6891_s28 + $0x740] sm:$0xff]  ;;  %v5907_v26 = vcombine.high %v445_v20, %v449_v21  ;;  %3529 = vmatprep.subr.bf16.mxu1 %v6043_v19  ;;  %v5906_v32 = vcombine.low %v445_v20, %v449_v21  ;;  %v6998_v21 = vcombine.low %v6936_v54, %v6938_v55 }
  0xb4   : > { %v577_v23 = vld [vmem:[%s6891_s28 + $0x760] sm:$0xff]  ;;  %3530 = vmatpush2.bf16.msra.mxu1 %v6042_v25  ;;  %v7003_v25 = vcombine.low %v6945_v59, %v6947_v60 }
  0xb5   : > { %v6035_v27 = vcombine.high %v573_v22, %v577_v23  ;;  %v437_v28 = vld [vmem:[%s6891_s28 + $0x300] sm:$0xff]  ;;  %3458 = vmatprep.subr.bf16.mxu0 %v5907_v26  ;;  %v6034_v33 = vcombine.low %v573_v22, %v577_v23  ;;  %9104 = vst [vmem:[#allocation18_spill] sm:$0xff] %v6998_v21 }
  0xb6   : > { %v441_v29 = vld [vmem:[%s6891_s28 + $0x320] sm:$0xff]  ;;  %3459 = vmatpush2.bf16.msra.mxu0 %v5906_v32  ;;  %9105 = vst [vmem:[#allocation19_spill] sm:$0xff] %v7003_v25 }
  0xb7   : > { %v565_v30 = vld [vmem:[%s6891_s28 + $0x700] sm:$0xff]  ;;  %v5899_v34 = vcombine.high %v437_v28, %v441_v29  ;;  %3531 = vmatprep.subr.bf16.mxu1 %v6035_v27  ;;  %v5898_v40 = vcombine.low %v437_v28, %v441_v29  ;;  %v318_v27 = vld [vmem:[#allocation2 + $0x48] sm:$0xff] }
  0xb8   : > { %v569_v31 = vld [vmem:[%s6891_s28 + $0x720] sm:$0xff]  ;;  %3532 = vmatpush2.bf16.msra.mxu1 %v6034_v33  ;;  %v322_v28 = vld [vmem:[#allocation2 + $0x68] sm:$0xff] }
  0xb9   : > { %v6027_v35 = vcombine.high %v565_v30, %v569_v31  ;;  %v429_v36 = vld [vmem:[%s6891_s28 + $0x2c0] sm:$0xff]  ;;  %3460 = vmatprep.subr.bf16.mxu0 %v5899_v34  ;;  %v6026_v41 = vcombine.low %v565_v30, %v569_v31  ;;  %v7012_v33 = vcombine.high %v318_v27, %v322_v28 }
  0xba   : > { %v433_v37 = vld [vmem:[%s6891_s28 + $0x2e0] sm:$0xff]  ;;  %3461 = vmatpush2.bf16.msra.mxu0 %v5898_v40 }
  0xbb   : > { %v557_v38 = vld [vmem:[%s6891_s28 + $0x6c0] sm:$0xff]  ;;  %v5891_v42 = vcombine.high %v429_v36, %v433_v37  ;;  %3533 = vmatprep.subr.bf16.mxu1 %v6027_v35  ;;  %v5890_v48 = vcombine.low %v429_v36, %v433_v37  ;;  %9107 = vst [vmem:[#allocation21_spill] sm:$0xff] %v7012_v33 }
  0xbc   : > { %v561_v39 = vld [vmem:[%s6891_s28 + $0x6e0] sm:$0xff]  ;;  %3534 = vmatpush2.bf16.msra.mxu1 %v6026_v41 }
  0xbd   : > { %v6019_v43 = vcombine.high %v557_v38, %v561_v39  ;;  %v421_v44 = vld [vmem:[%s6891_s28 + $0x280] sm:$0xff]  ;;  %3462 = vmatprep.subr.bf16.mxu0 %v5891_v42  ;;  %v6018_v49 = vcombine.low %v557_v38, %v561_v39 }
  0xbe   : > { %v425_v45 = vld [vmem:[%s6891_s28 + $0x2a0] sm:$0xff]  ;;  %3463 = vmatpush2.bf16.msra.mxu0 %v5890_v48  ;;  %v330_v48 = vld [vmem:[#allocation2 + $0xa8] sm:$0xff] }
  0xbf   : > { %v549_v46 = vld [vmem:[%s6891_s28 + $0x680] sm:$0xff]  ;;  %v5883_v50 = vcombine.high %v421_v44, %v425_v45  ;;  %3535 = vmatprep.subr.bf16.mxu1 %v6019_v43  ;;  %v5882_v61 = vcombine.low %v421_v44, %v425_v45 }
  0xc0   : > { %v553_v47 = vld [vmem:[%s6891_s28 + $0x6a0] sm:$0xff]  ;;  %3536 = vmatpush2.bf16.msra.mxu1 %v6018_v49 }
  0xc1   : > { %v6011_v51 = vcombine.high %v549_v46, %v553_v47  ;;  %v413_v52 = vld [vmem:[%s6891_s28 + $0x240] sm:$0xff]  ;;  %3464 = vmatprep.subr.bf16.mxu0 %v5883_v50  ;;  %v6010_v62 = vcombine.low %v549_v46, %v553_v47  ;;  %v7023_v46 = vcombine.low %v318_v27, %v322_v28  ;;  %v326_v47 = vld [vmem:[#allocation2 + $0x88] sm:$0xff] }
  0xc2   : > { %v417_v53 = vld [vmem:[%s6891_s28 + $0x260] sm:$0xff]  ;;  %3465 = vmatpush2.bf16.msra.mxu0 %v5882_v61 }
  0xc3   : > { %v541_v56 = vld [vmem:[%s6891_s28 + $0x640] sm:$0xff]  ;;  %v5875_v0 = vcombine.high %v413_v52, %v417_v53  ;;  %3537 = vmatprep.subr.bf16.mxu1 %v6011_v51  ;;  %v5874_v6 = vcombine.low %v413_v52, %v417_v53  ;;  %9109 = vst [vmem:[#allocation23_spill] sm:$0xff] %v7023_v46 }
  0xc4   : > { %v545_v57 = vld [vmem:[%s6891_s28 + $0x660] sm:$0xff]  ;;  %3538 = vmatpush2.bf16.msra.mxu1 %v6010_v62  ;;  %v7032_v62 = vcombine.high %v326_v47, %v330_v48 }
  0xc5   : > { %v6003_v1 = vcombine.high %v541_v56, %v545_v57  ;;  %v405_v2 = vld [vmem:[%s6891_s28 + $0x200] sm:$0xff]  ;;  %3466 = vmatprep.subr.bf16.mxu0 %v5875_v0  ;;  %v6002_v7 = vcombine.low %v541_v56, %v545_v57 }
  0xc6   : > { %v409_v3 = vld [vmem:[%s6891_s28 + $0x220] sm:$0xff]  ;;  %3467 = vmatpush2.bf16.msra.mxu0 %v5874_v6  ;;  %9111 = vst [vmem:[#allocation25_spill] sm:$0xff] %v7032_v62 }
  0xc7   : > { %v533_v4 = vld [vmem:[%s6891_s28 + $0x600] sm:$0xff]  ;;  %v5867_v8 = vcombine.high %v405_v2, %v409_v3  ;;  %3539 = vmatprep.subr.bf16.mxu1 %v6003_v1  ;;  %v5866_v14 = vcombine.low %v405_v2, %v409_v3 }
  0xc8   : > { %v537_v5 = vld [vmem:[%s6891_s28 + $0x620] sm:$0xff]  ;;  %3540 = vmatpush2.bf16.msra.mxu1 %v6002_v7 }
  0xc9   : > { %v5995_v9 = vcombine.high %v533_v4, %v537_v5  ;;  %v653_v10 = vld [vmem:[%s6891_s28 + $0x9c0] sm:$0xff]  ;;  %3468 = vmatprep.subr.bf16.mxu0 %v5867_v8  ;;  %v5994_v15 = vcombine.low %v533_v4, %v537_v5 }
  0xca   : > { %v657_v11 = vld [vmem:[%s6891_s28 + $0x9e0] sm:$0xff]  ;;  %3469 = vmatpush2.bf16.msra.mxu0 %v5866_v14  ;;  %v338_v14 = vld [vmem:[#allocation2 + $0xe8] sm:$0xff] }
  0xcb   : > { %v781_v12 = vld [vmem:[%s6891_s28 + $0xdc0] sm:$0xff]  ;;  %v6115_v16 = vcombine.high %v653_v10, %v657_v11  ;;  %3541 = vmatprep.subr.bf16.mxu1 %v5995_v9  ;;  %v6114_v26 = vcombine.low %v653_v10, %v657_v11 }
  0xcc   : > { %v785_v13 = vld [vmem:[%s6891_s28 + $0xde0] sm:$0xff]  ;;  %3542 = vmatpush2.bf16.msra.mxu1 %v5994_v15 }
  0xcd   : > { %v6243_v17 = vcombine.high %v781_v12, %v785_v13  ;;  %v645_v18 = vld [vmem:[%s6891_s28 + $0x980] sm:$0xff]  ;;  %3584 = vmatprep.subr.bf16.mxu0 %v6115_v16  ;;  %v6242_v29 = vcombine.low %v781_v12, %v785_v13  ;;  %3471 = vmatmul.mubr.bf16.vlgmr.msra.gmra.mxu0 %v6998_v21  ;;  %v7043_v12 = vcombine.low %v326_v47, %v330_v48  ;;  %v334_v13 = vld [vmem:[#allocation2 + $0xc8] sm:$0xff] }
  0xce   : > { %v649_v19 = vld [vmem:[%s6891_s28 + $0x9a0] sm:$0xff]  ;;  %3585 = vmatpush1.bf16.msra.mxu0 %v6114_v26 }
  0xcf   : > { %v773_v20 = vld [vmem:[%s6891_s28 + $0xd80] sm:$0xff]  ;;  %v6107_v30 = vcombine.high %v645_v18, %v649_v19  ;;  %3657 = vmatprep.subr.bf16.mxu1 %v6243_v17  ;;  %3544 = vmatmul.mubr.bf16.vlgmr.msra.gmra.mxu1 %v7003_v25  ;;  %v6106_v34 = vcombine.low %v645_v18, %v649_v19  ;;  %9113 = vst [vmem:[#allocation27_spill] sm:$0xff] %v7043_v12 }
  0xd0   : > { %v777_v22 = vld [vmem:[%s6891_s28 + $0xda0] sm:$0xff]  ;;  %3658 = vmatpush1.bf16.msra.mxu1 %v6242_v29  ;;  %3553 = vmatprep.mubr.bf16.mxu1 %v7012_v33 }
  0xd1   : > { %v317_v23 = vld [vmem:[#allocation2 + $0x40] sm:$0xff]  ;;  %v6235_v54 = vcombine.high %v773_v20, %v777_v22  ;;  %3586 = vmatprep.subr.bf16.mxu0 %v6107_v30  ;;  %v6234_v35 = vcombine.low %v773_v20, %v777_v22 }
  0xd2   : > { %v321_v24 = vld [vmem:[#allocation2 + $0x60] sm:$0xff]  ;;  %3587 = vmatpush1.bf16.msra.mxu0 %v6106_v34  ;;  %v7065_v34 = vld [vmem:[#allocation2 + $0x38] sm:$0xff] }
  0xd3   : > { %v637_v55 = vld [vmem:[%s6891_s28 + $0x940] sm:$0xff]  ;;  %v7007_v32 = vcombine.high %v317_v23, %v321_v24  ;;  %3659 = vmatprep.subr.bf16.mxu1 %v6235_v54  ;;  %v7021_v42 = vcombine.low %v317_v23, %v321_v24  ;;  %v7052_v24 = vcombine.high %v334_v13, %v338_v14 }
  0xd4   : > { %v641_v31 = vld [vmem:[%s6891_s28 + $0x960] sm:$0xff]  ;;  %3660 = vmatpush1.bf16.msra.mxu1 %v6234_v35 }
  0xd5   : > { %9106 = vst [vmem:[#allocation20_spill] sm:$0xff] %v7007_v32  ;;  %v765_v59 = vld [vmem:[%s6891_s28 + $0xd40] sm:$0xff]  ;;  %v6099_v36 = vcombine.high %v637_v55, %v641_v31  ;;  %3480 = vmatprep.mubr.bf16.mxu0 %v7007_v32  ;;  %9108 = vst [vmem:[#allocation22_spill] sm:$0xff] %v7021_v42  ;;  %v6098_v45 = vcombine.low %v637_v55, %v641_v31 }
  0xd6   : > { %v769_v60 = vld [vmem:[%s6891_s28 + $0xd60] sm:$0xff]  ;;  %3481 = vmatmul.mubr.bf16.gmra.mxu0 %v7021_v42  ;;  %9115 = vst [vmem:[#allocation29_spill] sm:$0xff] %v7052_v24 }
  0xd7   : > { %v6227_v37 = vcombine.high %v765_v59, %v769_v60  ;;  %v629_v38 = vld [vmem:[%s6891_s28 + $0x900] sm:$0xff]  ;;  %3588 = vmatprep.subr.bf16.mxu0 %v6099_v36  ;;  %v6226_v49 = vcombine.low %v765_v59, %v769_v60  ;;  %3554 = vmatmul.mubr.bf16.gmra.mxu1 %v7023_v46  ;;  %v7063_v60 = vld [vmem:[#allocation2 + $0x18] sm:$0xff]  ;;  %v7067_v36 = vcombine.low %v334_v13, %v338_v14 }
  0xd8   : > { %v633_v39 = vld [vmem:[%s6891_s28 + $0x920] sm:$0xff]  ;;  %3589 = vmatpush1.bf16.msra.mxu0 %v6098_v45  ;;  %3563 = vmatprep.mubr.bf16.mxu1 %v7032_v62  ;;  %v7077_v45 = vcombine.high %v7063_v60, %v7065_v34 }
  0xd9   : > { %v757_v40 = vld [vmem:[%s6891_s28 + $0xd00] sm:$0xff]  ;;  %v6091_v50 = vcombine.high %v629_v38, %v633_v39  ;;  %3661 = vmatprep.subr.bf16.mxu1 %v6227_v37  ;;  %v6090_v0 = vcombine.low %v629_v38, %v633_v39  ;;  %9116 = vst [vmem:[#allocation30_spill] sm:$0xff] %v7067_v36  ;;  %v7069_v37 = vld [vmem:[#allocation2 + $0x10] sm:$0xff] }
  0xda   : > { %v761_v41 = vld [vmem:[%s6891_s28 + $0xd20] sm:$0xff]  ;;  %3662 = vmatpush1.bf16.msra.mxu1 %v6226_v49  ;;  %v7071_v38 = vld [vmem:[#allocation2 + $0x30] sm:$0xff]  ;;  %9117 = vst [vmem:[#allocation31_spill] sm:$0xff] %v7077_v45 }
  0xdb   : > { %v325_v43 = vld [vmem:[#allocation2 + $0x80] sm:$0xff]  ;;  %v6219_v51 = vcombine.high %v757_v40, %v761_v41  ;;  %3590 = vmatprep.subr.bf16.mxu0 %v6091_v50  ;;  %v6218_v1 = vcombine.low %v757_v40, %v761_v41  ;;  %v7084_v49 = vcombine.high %v7069_v37, %v7071_v38 }
  0xdc   : > { %v329_v44 = vld [vmem:[#allocation2 + $0xa0] sm:$0xff]  ;;  %3591 = vmatpush1.bf16.msra.mxu0 %v6090_v0 }
  0xdd   : > { %v621_v52 = vld [vmem:[%s6891_s28 + $0x8c0] sm:$0xff]  ;;  %v7027_v56 = vcombine.high %v325_v43, %v329_v44  ;;  %3663 = vmatprep.subr.bf16.mxu1 %v6219_v51  ;;  %v7041_v8 = vcombine.low %v325_v43, %v329_v44 }
  0xde   : > { %v625_v53 = vld [vmem:[%s6891_s28 + $0x8e0] sm:$0xff]  ;;  %3664 = vmatpush1.bf16.msra.mxu1 %v6218_v1 }
  0xdf   : > { %9110 = vst [vmem:[#allocation24_spill] sm:$0xff] %v7027_v56  ;;  %v749_v57 = vld [vmem:[%s6891_s28 + $0xcc0] sm:$0xff]  ;;  %v6083_v2 = vcombine.high %v621_v52, %v625_v53  ;;  %3490 = vmatprep.mubr.bf16.mxu0 %v7027_v56  ;;  %9112 = vst [vmem:[#allocation26_spill] sm:$0xff] %v7041_v8  ;;  %v6082_v11 = vcombine.low %v621_v52, %v625_v53  ;;  %3564 = vmatmul.mubr.bf16.gmra.mxu1 %v7043_v12 }
  0xe0   : > { %v753_v61 = vld [vmem:[%s6891_s28 + $0xce0] sm:$0xff]  ;;  %3491 = vmatmul.mubr.bf16.gmra.mxu0 %v7041_v8  ;;  %3573 = vmatprep.mubr.bf16.mxu1 %v7052_v24 }
  0xe1   : > { %v6211_v3 = vcombine.high %v749_v57, %v753_v61  ;;  %v613_v4 = vld [vmem:[%s6891_s28 + $0x880] sm:$0xff]  ;;  %3592 = vmatprep.subr.bf16.mxu0 %v6083_v2  ;;  %v6210_v15 = vcombine.low %v749_v57, %v753_v61 }
  0xe2   : > { %v617_v5 = vld [vmem:[%s6891_s28 + $0x8a0] sm:$0xff]  ;;  %3593 = vmatpush1.bf16.msra.mxu0 %v6082_v11 }
  0xe3   : > { %v741_v6 = vld [vmem:[%s6891_s28 + $0xc80] sm:$0xff]  ;;  %v6075_v16 = vcombine.high %v613_v4, %v617_v5  ;;  %3665 = vmatprep.subr.bf16.mxu1 %v6211_v3  ;;  %v6074_v26 = vcombine.low %v613_v4, %v617_v5 }
  0xe4   : > { %v745_v7 = vld [vmem:[%s6891_s28 + $0xca0] sm:$0xff]  ;;  %3666 = vmatpush1.bf16.msra.mxu1 %v6210_v15 }
  0xe5   : > { %v333_v9 = vld [vmem:[#allocation2 + $0xc0] sm:$0xff]  ;;  %v6203_v17 = vcombine.high %v741_v6, %v745_v7  ;;  %3594 = vmatprep.subr.bf16.mxu0 %v6075_v16  ;;  %v6202_v27 = vcombine.low %v741_v6, %v745_v7 }
  0xe6   : > { %v337_v10 = vld [vmem:[#allocation2 + $0xe0] sm:$0xff]  ;;  %3595 = vmatpush1.bf16.msra.mxu0 %v6074_v26 }
  0xe7   : > { %v605_v18 = vld [vmem:[%s6891_s28 + $0x840] sm:$0xff]  ;;  %v7047_v20 = vcombine.high %v333_v9, %v337_v10  ;;  %3667 = vmatprep.subr.bf16.mxu1 %v6203_v17  ;;  %v7061_v59 = vcombine.low %v333_v9, %v337_v10  ;;  %3574 = vmatmul.mubr.bf16.gmra.mxu1 %v7067_v36 }
  0xe8   : > { %v609_v19 = vld [vmem:[%s6891_s28 + $0x860] sm:$0xff]  ;;  %3668 = vmatpush1.bf16.msra.mxu1 %v6202_v27  ;;  %6290 = vmatprep.mubr.msk.bf16.mxu1 %vm3425_vm0, %v7077_v45 }
  0xe9   : > { %9114 = vst [vmem:[#allocation28_spill] sm:$0xff] %v7047_v20  ;;  %v733_v22 = vld [vmem:[%s6891_s28 + $0xc40] sm:$0xff]  ;;  %v6067_v28 = vcombine.high %v605_v18, %v609_v19  ;;  %3500 = vmatprep.mubr.bf16.mxu0 %v7047_v20  ;;  %v6066_v35 = vcombine.low %v605_v18, %v609_v19 }
  0xea   : > { %v737_v23 = vld [vmem:[%s6891_s28 + $0xc60] sm:$0xff]  ;;  %3501 = vmatmul.mubr.bf16.gmra.mxu0 %v7061_v59 }
  0xeb   : > { %v6195_v29 = vcombine.high %v733_v22, %v737_v23  ;;  %v597_v30 = vld [vmem:[%s6891_s28 + $0x800] sm:$0xff]  ;;  %3596 = vmatprep.subr.bf16.mxu0 %v6067_v28  ;;  %v6194_v39 = vcombine.low %v733_v22, %v737_v23  ;;  %3616 = vmatprep.mubr.bf16.mxu0 %v7084_v49 }
  0xec   : > { %v601_v54 = vld [vmem:[%s6891_s28 + $0x820] sm:$0xff]  ;;  %3597 = vmatpush1.bf16.msra.mxu0 %v6066_v35 }
  0xed   : > { %v725_v55 = vld [vmem:[%s6891_s28 + $0xc00] sm:$0xff]  ;;  %v6059_v40 = vcombine.high %v597_v30, %v601_v54  ;;  %3669 = vmatprep.subr.bf16.mxu1 %v6195_v29  ;;  %v6058_v50 = vcombine.low %v597_v30, %v601_v54 }
  0xee   : > { %v729_v31 = vld [vmem:[%s6891_s28 + $0xc20] sm:$0xff]  ;;  %3670 = vmatpush1.bf16.msra.mxu1 %v6194_v39 }
  0xef   : > { %v6187_v41 = vcombine.high %v725_v55, %v729_v31  ;;  %v717_v43 = vld [vmem:[%s6891_s28 + $0xbc0] sm:$0xff]  ;;  %3598 = vmatprep.subr.bf16.mxu0 %v6059_v40  ;;  %v6186_v51 = vcombine.low %v725_v55, %v729_v31 }
  0xf0   : > { %v721_v44 = vld [vmem:[%s6891_s28 + $0xbe0] sm:$0xff]  ;;  %3599 = vmatpush1.bf16.msra.mxu0 %v6058_v50 }
  0xf1   : > { %v821_v47 = vld [vmem:[%s6891_s28 + $0xf00] sm:$0xff]  ;;  %v6179_v52 = vcombine.high %v717_v43, %v721_v44  ;;  %3671 = vmatprep.subr.bf16.mxu1 %v6187_v41  ;;  %v6178_v2 = vcombine.low %v717_v43, %v721_v44  ;;  %v398_v43 = vld [vmem:[%s6891_s28 + $0x1c8] sm:$0xff] }
  0xf2   : > { %v825_v48 = vld [vmem:[%s6891_s28 + $0xf20] sm:$0xff]  ;;  %3672 = vmatpush1.bf16.msra.mxu1 %v6186_v51  ;;  %v402_v44 = vld [vmem:[%s6891_s28 + $0x1e8] sm:$0xff] }
  0xf3   : > { %v6283_v53 = vcombine.high %v821_v47, %v825_v48  ;;  %v709_v57 = vld [vmem:[%s6891_s28 + $0xb80] sm:$0xff]  ;;  %3600 = vmatprep.subr.bf16.mxu0 %v6179_v52  ;;  %v6282_v3 = vcombine.low %v821_v47, %v825_v48  ;;  %v5861_v51 = vcombine.high %v398_v43, %v402_v44 }
  0xf4   : > { %v713_v61 = vld [vmem:[%s6891_s28 + $0xba0] sm:$0xff]  ;;  %3601 = vmatpush2.bf16.msra.mxu0 %v6178_v2  ;;  %v7116_v2 = vcombine.low %v7063_v60, %v7065_v34 }
  0xf5   : > { %v813_v0 = vld [vmem:[%s6891_s28 + $0xec0] sm:$0xff]  ;;  %v6171_v4 = vcombine.high %v709_v57, %v713_v61  ;;  %3679 = vmatprep.subr.bf16.mxu1 %v6283_v53  ;;  %v6170_v11 = vcombine.low %v709_v57, %v713_v61  ;;  %v390_v57 = vld [vmem:[%s6891_s28 + $0x188] sm:$0xff] }
  0xf6   : > { %v817_v1 = vld [vmem:[%s6891_s28 + $0xee0] sm:$0xff]  ;;  %3680 = vmatpush2.bf16.msra.mxu1 %v6282_v3  ;;  %v394_v61 = vld [vmem:[%s6891_s28 + $0x1a8] sm:$0xff]  ;;  %9118 = vst [vmem:[#allocation32_spill] sm:$0xff] %v7116_v2 }
  0xf7   : > { %v6275_v5 = vcombine.high %v813_v0, %v817_v1  ;;  %v701_v6 = vld [vmem:[%s6891_s28 + $0xb40] sm:$0xff]  ;;  %3602 = vmatprep.subr.bf16.mxu0 %v6171_v4  ;;  %v6274_v13 = vcombine.low %v813_v0, %v817_v1  ;;  %v320_v0 = vld [vmem:[#allocation2 + $0x58] sm:$0xff]  ;;  %v5860_v4 = vcombine.low %v398_v43, %v402_v44  ;;  %v5852_v34 = vcombine.low %v390_v57, %v394_v61  ;;  %v370_v43 = vld [vmem:[%s6891_s28 + $0xe8] sm:$0xff] }
  0xf8   : > { %v705_v7 = vld [vmem:[%s6891_s28 + $0xb60] sm:$0xff]  ;;  %3603 = vmatpush2.bf16.msra.mxu0 %v6170_v11  ;;  %v324_v1 = vld [vmem:[#allocation2 + $0x78] sm:$0xff]  ;;  %v382_v11 = vld [vmem:[%s6891_s28 + $0x148] sm:$0xff] }
  0xf9   : > { %v805_v9 = vld [vmem:[%s6891_s28 + $0xe80] sm:$0xff]  ;;  %v6163_v14 = vcombine.high %v701_v6, %v705_v7  ;;  %3681 = vmatprep.subr.bf16.mxu1 %v6275_v5  ;;  %v6162_v22 = vcombine.low %v701_v6, %v705_v7  ;;  %v5853_v6 = vcombine.high %v390_v57, %v394_v61  ;;  %v514_v57 = vld [vmem:[%s6891_s28 + $0x568] sm:$0xff]  ;;  %v340_v61 = vld [vmem:[#allocation2 + $0xf8] sm:$0xff] }
  0xfa   : > { %v809_v10 = vld [vmem:[%s6891_s28 + $0xea0] sm:$0xff]  ;;  %3682 = vmatpush2.bf16.msra.mxu1 %v6274_v13  ;;  %v386_v13 = vld [vmem:[%s6891_s28 + $0x168] sm:$0xff] }
  0xfb   : > { %v6267_v15 = vcombine.high %v805_v9, %v809_v10  ;;  %v693_v16 = vld [vmem:[%s6891_s28 + $0xb00] sm:$0xff]  ;;  %3604 = vmatprep.subr.bf16.mxu0 %v6163_v14  ;;  %v6266_v23 = vcombine.low %v805_v9, %v809_v10  ;;  %v7120_v10 = vcombine.high %v320_v0, %v324_v1 }
  0xfc   : > { %v697_v17 = vld [vmem:[%s6891_s28 + $0xb20] sm:$0xff]  ;;  %3605 = vmatpush2.bf16.msra.mxu0 %v6162_v22  ;;  %v328_v22 = vld [vmem:[#allocation2 + $0x98] sm:$0xff] }
  0xfd   : > { %v797_v18 = vld [vmem:[%s6891_s28 + $0xe40] sm:$0xff]  ;;  %v6155_v26 = vcombine.high %v693_v16, %v697_v17  ;;  %3683 = vmatprep.subr.bf16.mxu1 %v6267_v15  ;;  %v6154_v55 = vcombine.low %v693_v16, %v697_v17  ;;  %9119 = vst [vmem:[#allocation33_spill] sm:$0xff] %v7120_v10  ;;  %v5845_v15 = vcombine.high %v382_v11, %v386_v13  ;;  %v374_v16 = vld [vmem:[%s6891_s28 + $0x108] sm:$0xff] }
  0xfe   : > { %v801_v19 = vld [vmem:[%s6891_s28 + $0xe60] sm:$0xff]  ;;  %3684 = vmatpush2.bf16.msra.mxu1 %v6266_v23  ;;  %v526_v17 = vld [vmem:[%s6891_s28 + $0x5c8] sm:$0xff]  ;;  %v332_v23 = vld [vmem:[#allocation2 + $0xb8] sm:$0xff] }
  0xff   : > { %v6259_v27 = vcombine.high %v797_v18, %v801_v19  ;;  %v685_v28 = vld [vmem:[%s6891_s28 + $0xac0] sm:$0xff]  ;;  %3606 = vmatprep.subr.bf16.mxu0 %v6155_v26  ;;  %v6258_v31 = vcombine.low %v797_v18, %v801_v19  ;;  %v530_v18 = vld [vmem:[%s6891_s28 + $0x5e8] sm:$0xff] }
 0x100   : > { %v689_v29 = vld [vmem:[%s6891_s28 + $0xae0] sm:$0xff]  ;;  %3607 = vmatpush2.bf16.msra.mxu0 %v6154_v55  ;;  %v378_v19 = vld [vmem:[%s6891_s28 + $0x128] sm:$0xff]  ;;  %v5988_v44 = vcombine.low %v526_v17, %v530_v18 }
 0x101   : > { %v789_v30 = vld [vmem:[%s6891_s28 + $0xe00] sm:$0xff]  ;;  %v6147_v35 = vcombine.high %v685_v28, %v689_v29  ;;  %3685 = vmatprep.subr.bf16.mxu1 %v6259_v27  ;;  %v6146_v47 = vcombine.low %v685_v28, %v689_v29  ;;  %v7131_v27 = vcombine.low %v320_v0, %v324_v1  ;;  %v5844_v28 = vcombine.low %v382_v11, %v386_v13  ;;  %v506_v11 = vld [vmem:[%s6891_s28 + $0x528] sm:$0xff] }
 0x102   : > { %v793_v54 = vld [vmem:[%s6891_s28 + $0xe20] sm:$0xff]  ;;  %3686 = vmatpush2.bf16.msra.mxu1 %v6258_v31  ;;  %v5989_v29 = vcombine.high %v526_v17, %v530_v18  ;;  %v5837_v55 = vcombine.high %v374_v16, %v378_v19  ;;  %v518_v31 = vld [vmem:[%s6891_s28 + $0x588] sm:$0xff]  ;;  %v7154_v1 = vcombine.low %v328_v22, %v332_v23 }
 0x103   : > { %v6251_v39 = vcombine.high %v789_v30, %v793_v54  ;;  %v677_v40 = vld [vmem:[%s6891_s28 + $0xa80] sm:$0xff]  ;;  %3608 = vmatprep.subr.bf16.mxu0 %v6147_v35  ;;  %v6250_v48 = vcombine.low %v789_v30, %v793_v54  ;;  %9120 = vst [vmem:[#allocation34_spill] sm:$0xff] %v7131_v27  ;;  %v319_v30 = vld [vmem:[#allocation2 + $0x50] sm:$0xff]  ;;  %v522_v35 = vld [vmem:[%s6891_s28 + $0x5a8] sm:$0xff] }
 0x104   : > { %v681_v41 = vld [vmem:[%s6891_s28 + $0xaa0] sm:$0xff]  ;;  %3609 = vmatpush2.bf16.msra.mxu0 %v6146_v47  ;;  %v323_v54 = vld [vmem:[#allocation2 + $0x70] sm:$0xff]  ;;  %v5980_v0 = vcombine.low %v518_v31, %v522_v35  ;;  %9124 = vst [vmem:[#allocation38_spill] sm:$0xff] %v7154_v1 }
 0x105   : > { %v6139_v50 = vcombine.high %v677_v40, %v681_v41  ;;  %3687 = vmatprep.subr.bf16.mxu1 %v6251_v39  ;;  %v669_v52 = vld [vmem:[%s6891_s28 + $0xa40] sm:$0xff]  ;;  %v6138_v3 = vcombine.low %v677_v40, %v681_v41  ;;  %v7135_v39 = vcombine.high %v328_v22, %v332_v23  ;;  %v7139_v40 = vcombine.low %v7069_v37, %v7071_v38  ;;  %v366_v41 = vld [vmem:[%s6891_s28 + $0xc8] sm:$0xff]  ;;  %v336_v38 = vld [vmem:[#allocation2 + $0xd8] sm:$0xff] }
 0x106   : > { %v673_v53 = vld [vmem:[%s6891_s28 + $0xa60] sm:$0xff]  ;;  %3688 = vmatpush2.bf16.msra.mxu1 %v6250_v48  ;;  %v7143_v47 = vcombine.high %v319_v30, %v323_v54  ;;  %v5836_v48 = vcombine.low %v374_v16, %v378_v19  ;;  %v362_v37 = vld [vmem:[%s6891_s28 + $0xa8] sm:$0xff]  ;;  %v7158_v13 = vcombine.high %v336_v38, %v340_v61 }
 0x107   : > { %3610 = vmatprep.subr.bf16.mxu0 %v6139_v50  ;;  %v6131_v5 = vcombine.high %v669_v52, %v673_v53  ;;  %3730 = vmatprep.subr.bf16.mxu1 %v5861_v51  ;;  %v661_v7 = vld [vmem:[%s6891_s28 + $0xa00] sm:$0xff]  ;;  %v6130_v60 = vcombine.low %v669_v52, %v673_v53  ;;  %9121 = vst [vmem:[#allocation35_spill] sm:$0xff] %v7135_v39  ;;  %9122 = vst [vmem:[#allocation36_spill] sm:$0xff] %v7139_v40  ;;  %v358_v52 = vld [vmem:[%s6891_s28 + $0x88] sm:$0xff] }
 0x108   : > { %v665_v9 = vld [vmem:[%s6891_s28 + $0xa20] sm:$0xff]  ;;  %3611 = vmatpush2.bf16.msra.mxu0 %v6138_v3  ;;  %9123 = vst [vmem:[#allocation37_spill] sm:$0xff] %v7143_v47  ;;  %v5981_v50 = vcombine.high %v518_v31, %v522_v35  ;;  %v5829_v51 = vcombine.high %v366_v41, %v370_v43  ;;  %v510_v53 = vld [vmem:[%s6891_s28 + $0x548] sm:$0xff]  ;;  %v5828_v3 = vcombine.low %v366_v41, %v370_v43  ;;  %9125 = vst [vmem:[#allocation39_spill] sm:$0xff] %v7158_v13 }
 0x109   : > { %3690 = vmatmul.mubr.bf16.vlgmr.msra.gmra.mxu1 %v7116_v2  ;;  %3612 = vmatprep.subr.bf16.mxu0 %v6131_v5  ;;  %v6123_v14 = vcombine.high %v661_v7, %v665_v9  ;;  %v6122_v26 = vcombine.low %v661_v7, %v665_v9  ;;  %v327_v5 = vld [vmem:[#allocation2 + $0x90] sm:$0xff]  ;;  %v5821_v7 = vcombine.high %v358_v52, %v362_v37  ;;  %v502_v9 = vld [vmem:[%s6891_s28 + $0x508] sm:$0xff] }
 0x10a   : > { %3731 = vmatpush1.bf16.msra.mxu1 %v5860_v4  ;;  %6291 = vmatprep.mubr.msk.bf16.mxu1 %vm3425_vm0, %v7120_v10  ;;  %v5973_v4 = vcombine.high %v510_v53, %v514_v57  ;;  %v5820_v17 = vcombine.low %v358_v52, %v362_v37  ;;  %v5965_v18 = vcombine.high %v502_v9, %v506_v11  ;;  %v494_v22 = vld [vmem:[%s6891_s28 + $0x4c8] sm:$0xff]  ;;  %v335_v31 = vld [vmem:[#allocation2 + $0xd0] sm:$0xff] }
 0x10b   : > { %3732 = vmatprep.subr.bf16.mxu1 %v5853_v6  ;;  %v331_v6 = vld [vmem:[#allocation2 + $0xb0] sm:$0xff]  ;;  %v498_v23 = vld [vmem:[%s6891_s28 + $0x4e8] sm:$0xff] }
 0x10c   : > { %3613 = vmatpush2.bf16.msra.mxu0 %v6130_v60  ;;  %v7160_v60 = vcombine.low %v319_v30, %v323_v54  ;;  %v7164_v16 = vcombine.high %v327_v5, %v331_v6  ;;  %v7175_v30 = vcombine.low %v336_v38, %v340_v61  ;;  %v339_v35 = vld [vmem:[#allocation2 + $0xf0] sm:$0xff]  ;;  %v486_v43 = vld [vmem:[%s6891_s28 + $0x488] sm:$0xff]  ;;  %v5956_v52 = vcombine.low %v494_v22, %v498_v23 }
 0x10d   : > { %3614 = vmatprep.subr.bf16.mxu0 %v6123_v14  ;;  %v354_v14 = vld [vmem:[%s6891_s28 + $0x68] sm:$0xff] }
 0x10e   : > { %3733 = vmatpush1.bf16.msra.mxu1 %v5852_v34  ;;  %9126 = vst [vmem:[#allocation40_spill] sm:$0xff] %v7160_v60  ;;  %v350_v34 = vld [vmem:[%s6891_s28 + $0x48] sm:$0xff]  ;;  %9127 = vst [vmem:[#allocation41_spill] sm:$0xff] %v7164_v16 }
 0x10f   : > { %3734 = vmatprep.subr.bf16.mxu1 %v5845_v15  ;;  %v5972_v15 = vcombine.low %v510_v53, %v514_v57  ;;  %v5813_v19 = vcombine.high %v350_v34, %v354_v14  ;;  %9128 = vst [vmem:[#allocation42_spill] sm:$0xff] %v7175_v30  ;;  %v5812_v54 = vcombine.low %v350_v34, %v354_v14  ;;  %v478_v61 = vld [vmem:[%s6891_s28 + $0x448] sm:$0xff] }
 0x110   : > { %3615 = vmatpush2.bf16.msra.mxu0 %v6122_v26  ;;  %v342_v26 = vld [vmem:[%s6891_s28 + $0x8] sm:$0xff]  ;;  %v7183_v53 = vcombine.high %v335_v31, %v339_v35  ;;  %v7195_v14 = vcombine.low %v335_v31, %v339_v35 }
 0x111   : > { %3700 = vmatmul.mubr.bf16.gmra.mxu1 %v7131_v27  ;;  %3803 = vmatprep.subr.bf16.mxu0 %v5989_v29  ;;  %v5964_v29 = vcombine.low %v502_v9, %v506_v11  ;;  %v470_v11 = vld [vmem:[%s6891_s28 + $0x408] sm:$0xff] }
 0x112   : > { %3735 = vmatpush1.bf16.msra.mxu1 %v5844_v28  ;;  %6292 = vmatprep.mubr.msk.bf16.mxu1 %vm3425_vm0, %v7135_v39  ;;  %v346_v28 = vld [vmem:[%s6891_s28 + $0x28] sm:$0xff]  ;;  %9130 = vst [vmem:[#allocation44_spill] sm:$0xff] %v7183_v53  ;;  %9131 = vst [vmem:[#allocation45_spill] sm:$0xff] %v7195_v14 }
 0x113   : > { %3736 = vmatprep.subr.bf16.mxu1 %v5837_v55  ;;  %3617 = vmatmul.mubr.bf16.vlgmr.msra.gmra.mxu0 %v7139_v40  ;;  %v5957_v55 = vcombine.high %v494_v22, %v498_v23  ;;  %v5805_v41 = vcombine.high %v342_v26, %v346_v28  ;;  %v5804_v57 = vcombine.low %v342_v26, %v346_v28  ;;  %v474_v34 = vld [vmem:[%s6891_s28 + $0x428] sm:$0xff] }
 0x114   : > { %3804 = vmatpush1.bf16.msra.mxu0 %v5988_v44  ;;  %3626 = vmatprep.mubr.bf16.mxu0 %v7143_v47  ;;  %v490_v44 = vld [vmem:[%s6891_s28 + $0x4a8] sm:$0xff]  ;;  %v5933_v22 = vcombine.high %v470_v11, %v474_v34 }
 0x115   : > { %3805 = vmatprep.subr.bf16.mxu0 %v5981_v50  ;;  %v462_v50 = vld [vmem:[%s6891_s28 + $0x3c8] sm:$0xff]  ;;  %v5949_v37 = vcombine.high %v486_v43, %v490_v44 }
 0x116   : > { %3737 = vmatpush1.bf16.msra.mxu1 %v5836_v48  ;;  %v7179_v48 = vcombine.low %v327_v5, %v331_v6  ;;  %v5948_v5 = vcombine.low %v486_v43, %v490_v44  ;;  %v590_v26 = vld [vmem:[%s6891_s28 + $0x7c8] sm:$0xff] }
 0x117   : > { %3738 = vmatprep.subr.bf16.mxu1 %v5829_v51  ;;  %v466_v51 = vld [vmem:[%s6891_s28 + $0x3e8] sm:$0xff] }
 0x118   : > { %3806 = vmatpush1.bf16.msra.mxu0 %v5980_v0  ;;  %9129 = vst [vmem:[#allocation43_spill] sm:$0xff] %v7179_v48  ;;  %v5925_v38 = vcombine.high %v462_v50, %v466_v51  ;;  %v482_v0 = vld [vmem:[%s6891_s28 + $0x468] sm:$0xff]  ;;  %v5924_v6 = vcombine.low %v462_v50, %v466_v51 }
 0x119   : > { %3710 = vmatmul.mubr.bf16.gmra.mxu1 %v7154_v1  ;;  %3807 = vmatprep.subr.bf16.mxu0 %v5973_v4  ;;  %v458_v4 = vld [vmem:[%s6891_s28 + $0x3a8] sm:$0xff] }
 0x11a   : > { %3739 = vmatpush1.bf16.msra.mxu1 %v5828_v3  ;;  %6293 = vmatprep.mubr.msk.bf16.mxu1 %vm3425_vm0, %v7158_v13  ;;  %v454_v3 = vld [vmem:[%s6891_s28 + $0x388] sm:$0xff] }
 0x11b   : > { %3740 = vmatprep.subr.bf16.mxu1 %v5821_v7  ;;  %3627 = vmatmul.mubr.bf16.gmra.mxu0 %v7160_v60  ;;  %v5941_v7 = vcombine.high %v478_v61, %v482_v0  ;;  %v5917_v9 = vcombine.high %v454_v3, %v458_v4  ;;  %v594_v28 = vld [vmem:[%s6891_s28 + $0x7e8] sm:$0xff] }
 0x11c   : > { %3808 = vmatpush1.bf16.msra.mxu0 %v5972_v15  ;;  %3636 = vmatprep.mubr.bf16.mxu0 %v7164_v16  ;;  %v446_v15 = vld [vmem:[%s6891_s28 + $0x348] sm:$0xff]  ;;  %v6053_v35 = vcombine.high %v590_v26, %v594_v28 }
 0x11d   : > { %3809 = vmatprep.subr.bf16.mxu0 %v5965_v18  ;;  %v5940_v18 = vcombine.low %v478_v61, %v482_v0  ;;  %v582_v43 = vld [vmem:[%s6891_s28 + $0x788] sm:$0xff] }
 0x11e   : > { %3741 = vmatpush1.bf16.msra.mxu1 %v5820_v17  ;;  %v450_v17 = vld [vmem:[%s6891_s28 + $0x368] sm:$0xff] }
 0x11f   : > { %3742 = vmatprep.subr.bf16.mxu1 %v5813_v19  ;;  %v5916_v19 = vcombine.low %v454_v3, %v458_v4  ;;  %v5909_v23 = vcombine.high %v446_v15, %v450_v17  ;;  %v5908_v31 = vcombine.low %v446_v15, %v450_v17  ;;  %v586_v44 = vld [vmem:[%s6891_s28 + $0x7a8] sm:$0xff] }
 0x120   : > { %3810 = vmatpush1.bf16.msra.mxu0 %v5964_v29  ;;  %v438_v29 = vld [vmem:[%s6891_s28 + $0x308] sm:$0xff] }
 0x121   : > { %3720 = vmatmul.mubr.bf16.gmra.mxu1 %v7175_v30  ;;  %3811 = vmatprep.subr.bf16.mxu0 %v5957_v55  ;;  %v5932_v55 = vcombine.low %v470_v11, %v474_v34  ;;  %v430_v50 = vld [vmem:[%s6891_s28 + $0x2c8] sm:$0xff] }
 0x122   : > { %3743 = vmatpush1.bf16.msra.mxu1 %v5812_v54  ;;  %3762 = vmatprep.mubr.bf16.mxu1 %v6943_v58  ;;  %v442_v54 = vld [vmem:[%s6891_s28 + $0x328] sm:$0xff] }
 0x123   : > { %3744 = vmatprep.subr.bf16.mxu1 %v5805_v41  ;;  %3637 = vmatmul.mubr.bf16.gmra.mxu0 %v7179_v48  ;;  %v5901_v41 = vcombine.high %v438_v29, %v442_v54  ;;  %v434_v51 = vld [vmem:[%s6891_s28 + $0x2e8] sm:$0xff] }
 0x124   : > { %3812 = vmatpush1.bf16.msra.mxu0 %v5956_v52  ;;  %3646 = vmatprep.mubr.bf16.mxu0 %v7183_v53  ;;  %v6052_v52 = vcombine.low %v590_v26, %v594_v28  ;;  %v574_v61 = vld [vmem:[%s6891_s28 + $0x748] sm:$0xff] }
 0x125   : > { %3813 = vmatprep.subr.bf16.mxu0 %v5949_v37  ;;  %v6045_v37 = vcombine.high %v582_v43, %v586_v44  ;;  %v578_v0 = vld [vmem:[%s6891_s28 + $0x768] sm:$0xff] }
 0x126   : > { %3745 = vmatpush1.bf16.msra.mxu1 %v5804_v57  ;;  %v5900_v57 = vcombine.low %v438_v29, %v442_v54  ;;  %v422_v3 = vld [vmem:[%s6891_s28 + $0x288] sm:$0xff] }
 0x127   : > { %3746 = vmatprep.subr.bf16.mxu1 %v5925_v38  ;;  %v5893_v38 = vcombine.high %v430_v50, %v434_v51  ;;  %v426_v4 = vld [vmem:[%s6891_s28 + $0x2a8] sm:$0xff] }
 0x128   : > { %3814 = vmatpush1.bf16.msra.mxu0 %v5948_v5  ;;  %v6044_v5 = vcombine.low %v582_v43, %v586_v44  ;;  %v566_v11 = vld [vmem:[%s6891_s28 + $0x708] sm:$0xff] }
 0x129   : > { %3815 = vmatprep.subr.bf16.mxu0 %v5941_v7  ;;  %v6037_v7 = vcombine.high %v574_v61, %v578_v0  ;;  %v570_v34 = vld [vmem:[%s6891_s28 + $0x728] sm:$0xff] }
 0x12a   : > { %3747 = vmatpush2.bf16.msra.mxu1 %v5924_v6  ;;  %v5892_v6 = vcombine.low %v430_v50, %v434_v51  ;;  %v414_v15 = vld [vmem:[%s6891_s28 + $0x248] sm:$0xff] }
 0x12b   : > { %3748 = vmatprep.subr.bf16.mxu1 %v5917_v9  ;;  %3647 = vmatmul.mubr.bf16.gmra.mxu0 %v7195_v14  ;;  %v5885_v9 = vcombine.high %v422_v3, %v426_v4  ;;  %v418_v17 = vld [vmem:[%s6891_s28 + $0x268] sm:$0xff] }
 0x12c   : > { %3816 = vmatpush1.bf16.msra.mxu0 %v5940_v18  ;;  %3835 = vmatprep.mubr.bf16.mxu0 %v6953_v63  ;;  %v6036_v18 = vcombine.low %v574_v61, %v578_v0  ;;  %v558_v26 = vld [vmem:[%s6891_s28 + $0x6c8] sm:$0xff] }
 0x12d   : > { %3817 = vmatprep.subr.bf16.mxu0 %v5933_v22  ;;  %v6029_v22 = vcombine.high %v566_v11, %v570_v34  ;;  %v562_v28 = vld [vmem:[%s6891_s28 + $0x6e8] sm:$0xff] }
 0x12e   : > { %3749 = vmatpush2.bf16.msra.mxu1 %v5916_v19  ;;  %v5884_v19 = vcombine.low %v422_v3, %v426_v4  ;;  %v406_v29 = vld [vmem:[%s6891_s28 + $0x208] sm:$0xff] }
 0x12f   : > { %3750 = vmatprep.subr.bf16.mxu1 %v5909_v23  ;;  %v5877_v23 = vcombine.high %v414_v15, %v418_v17  ;;  %v410_v54 = vld [vmem:[%s6891_s28 + $0x228] sm:$0xff] }
 0x130   : > { %3818 = vmatpush1.bf16.msra.mxu0 %v5932_v55  ;;  %v6028_v55 = vcombine.low %v566_v11, %v570_v34  ;;  %v550_v43 = vld [vmem:[%s6891_s28 + $0x688] sm:$0xff] }
 0x131   : > { %3819 = vmatprep.subr.bf16.mxu0 %v6053_v35  ;;  %v6021_v35 = vcombine.high %v558_v26, %v562_v28  ;;  %v554_v44 = vld [vmem:[%s6891_s28 + $0x6a8] sm:$0xff] }
 0x132   : > { %3751 = vmatpush2.bf16.msra.mxu1 %v5908_v31  ;;  %v5876_v31 = vcombine.low %v414_v15, %v418_v17  ;;  %v654_v50 = vld [vmem:[%s6891_s28 + $0x9c8] sm:$0xff] }
 0x133   : > { %3752 = vmatprep.subr.bf16.mxu1 %v5901_v41  ;;  %v5869_v41 = vcombine.high %v406_v29, %v410_v54  ;;  %v658_v51 = vld [vmem:[%s6891_s28 + $0x9e8] sm:$0xff] }
 0x134   : > { %3820 = vmatpush2.bf16.msra.mxu0 %v6052_v52  ;;  %v6020_v52 = vcombine.low %v558_v26, %v562_v28  ;;  %v542_v61 = vld [vmem:[%s6891_s28 + $0x648] sm:$0xff] }
 0x135   : > { %3821 = vmatprep.subr.bf16.mxu0 %v6045_v37  ;;  %v6013_v37 = vcombine.high %v550_v43, %v554_v44  ;;  %v546_v0 = vld [vmem:[%s6891_s28 + $0x668] sm:$0xff] }
 0x136   : > { %3753 = vmatpush2.bf16.msra.mxu1 %v5900_v57  ;;  %v5868_v57 = vcombine.low %v406_v29, %v410_v54  ;;  %v646_v3 = vld [vmem:[%s6891_s28 + $0x988] sm:$0xff] }
 0x137   : > { %3754 = vmatprep.subr.bf16.mxu1 %v5893_v38  ;;  %v6117_v38 = vcombine.high %v654_v50, %v658_v51  ;;  %v650_v4 = vld [vmem:[%s6891_s28 + $0x9a8] sm:$0xff] }
 0x138   : > { %3822 = vmatpush2.bf16.msra.mxu0 %v6044_v5  ;;  %v6012_v5 = vcombine.low %v550_v43, %v554_v44  ;;  %v534_v11 = vld [vmem:[%s6891_s28 + $0x608] sm:$0xff] }
 0x139   : > { %3823 = vmatprep.subr.bf16.mxu0 %v6037_v7  ;;  %v6005_v7 = vcombine.high %v542_v61, %v546_v0  ;;  %v538_v34 = vld [vmem:[%s6891_s28 + $0x628] sm:$0xff] }
 0x13a   : > { %3755 = vmatpush2.bf16.msra.mxu1 %v5892_v6  ;;  %v6116_v6 = vcombine.low %v654_v50, %v658_v51  ;;  %v638_v15 = vld [vmem:[%s6891_s28 + $0x948] sm:$0xff] }
 0x13b   : > { %3756 = vmatprep.subr.bf16.mxu1 %v5885_v9  ;;  %v6109_v9 = vcombine.high %v646_v3, %v650_v4  ;;  %v642_v17 = vld [vmem:[%s6891_s28 + $0x968] sm:$0xff] }
 0x13c   : > { %3824 = vmatpush2.bf16.msra.mxu0 %v6036_v18  ;;  %v6004_v18 = vcombine.low %v542_v61, %v546_v0  ;;  %v782_v26 = vld [vmem:[%s6891_s28 + $0xdc8] sm:$0xff] }
 0x13d   : > { %3825 = vmatprep.subr.bf16.mxu0 %v6029_v22  ;;  %v5997_v22 = vcombine.high %v534_v11, %v538_v34  ;;  %v786_v28 = vld [vmem:[%s6891_s28 + $0xde8] sm:$0xff] }
 0x13e   : > { %3757 = vmatpush2.bf16.msra.mxu1 %v5884_v19  ;;  %v6108_v19 = vcombine.low %v646_v3, %v650_v4  ;;  %v630_v29 = vld [vmem:[%s6891_s28 + $0x908] sm:$0xff] }
 0x13f   : > { %3758 = vmatprep.subr.bf16.mxu1 %v5877_v23  ;;  %v6101_v23 = vcombine.high %v638_v15, %v642_v17  ;;  %v634_v54 = vld [vmem:[%s6891_s28 + $0x928] sm:$0xff] }
 0x140   : > { %3826 = vmatpush2.bf16.msra.mxu0 %v6028_v55  ;;  %v5996_v55 = vcombine.low %v534_v11, %v538_v34  ;;  %v774_v43 = vld [vmem:[%s6891_s28 + $0xd88] sm:$0xff] }
 0x141   : > { %3827 = vmatprep.subr.bf16.mxu0 %v6021_v35  ;;  %v6245_v35 = vcombine.high %v782_v26, %v786_v28  ;;  %v778_v44 = vld [vmem:[%s6891_s28 + $0xda8] sm:$0xff] }
 0x142   : > { %3759 = vmatpush2.bf16.msra.mxu1 %v5876_v31  ;;  %v6100_v31 = vcombine.low %v638_v15, %v642_v17  ;;  %v622_v50 = vld [vmem:[%s6891_s28 + $0x8c8] sm:$0xff] }
 0x143   : > { %3760 = vmatprep.subr.bf16.mxu1 %v5869_v41  ;;  %v6093_v41 = vcombine.high %v630_v29, %v634_v54  ;;  %v626_v51 = vld [vmem:[%s6891_s28 + $0x8e8] sm:$0xff] }
 0x144   : > { %3828 = vmatpush2.bf16.msra.mxu0 %v6020_v52  ;;  %v6244_v52 = vcombine.low %v782_v26, %v786_v28  ;;  %v766_v61 = vld [vmem:[%s6891_s28 + $0xd48] sm:$0xff] }
 0x145   : > { %3829 = vmatprep.subr.bf16.mxu0 %v6013_v37  ;;  %v6237_v37 = vcombine.high %v774_v43, %v778_v44  ;;  %v770_v0 = vld [vmem:[%s6891_s28 + $0xd68] sm:$0xff] }
 0x146   : > { %3761 = vmatpush2.bf16.msra.mxu1 %v5868_v57  ;;  %v6092_v57 = vcombine.low %v630_v29, %v634_v54  ;;  %v614_v3 = vld [vmem:[%s6891_s28 + $0x888] sm:$0xff] }
 0x147   : > { %3876 = vmatprep.subr.bf16.mxu1 %v6117_v38  ;;  %v6085_v38 = vcombine.high %v622_v50, %v626_v51  ;;  %v618_v4 = vld [vmem:[%s6891_s28 + $0x8a8] sm:$0xff] }
 0x148   : > { %3830 = vmatpush2.bf16.msra.mxu0 %v6012_v5  ;;  %v6236_v5 = vcombine.low %v774_v43, %v778_v44  ;;  %v758_v11 = vld [vmem:[%s6891_s28 + $0xd08] sm:$0xff] }
 0x149   : > { %3763 = vmatmul.mubr.bf16.vlgmr.msra.gmra.mxu1 %v6998_v21  ;;  %3831 = vmatprep.subr.bf16.mxu0 %v6005_v7  ;;  %v6229_v7 = vcombine.high %v766_v61, %v770_v0  ;;  %v762_v34 = vld [vmem:[%s6891_s28 + $0xd28] sm:$0xff] }
 0x14a   : > { %3877 = vmatpush1.bf16.msra.mxu1 %v6116_v6  ;;  %3772 = vmatprep.mubr.bf16.mxu1 %v7007_v32  ;;  %v6084_v6 = vcombine.low %v622_v50, %v626_v51  ;;  %v606_v15 = vld [vmem:[%s6891_s28 + $0x848] sm:$0xff] }
 0x14b   : > { %3878 = vmatprep.subr.bf16.mxu1 %v6109_v9  ;;  %v6077_v9 = vcombine.high %v614_v3, %v618_v4  ;;  %v610_v17 = vld [vmem:[%s6891_s28 + $0x868] sm:$0xff] }
 0x14c   : > { %3832 = vmatpush2.bf16.msra.mxu0 %v6004_v18  ;;  %v6228_v18 = vcombine.low %v766_v61, %v770_v0  ;;  %v750_v26 = vld [vmem:[%s6891_s28 + $0xcc8] sm:$0xff] }
 0x14d   : > { %3833 = vmatprep.subr.bf16.mxu0 %v5997_v22  ;;  %v6221_v22 = vcombine.high %v758_v11, %v762_v34  ;;  %v754_v28 = vld [vmem:[%s6891_s28 + $0xce8] sm:$0xff] }
 0x14e   : > { %3879 = vmatpush1.bf16.msra.mxu1 %v6108_v19  ;;  %v6076_v19 = vcombine.low %v614_v3, %v618_v4  ;;  %v598_v29 = vld [vmem:[%s6891_s28 + $0x808] sm:$0xff] }
 0x14f   : > { %3880 = vmatprep.subr.bf16.mxu1 %v6101_v23  ;;  %v6069_v23 = vcombine.high %v606_v15, %v610_v17  ;;  %v602_v54 = vld [vmem:[%s6891_s28 + $0x828] sm:$0xff] }
 0x150   : > { %3834 = vmatpush2.bf16.msra.mxu0 %v5996_v55  ;;  %v6220_v55 = vcombine.low %v758_v11, %v762_v34  ;;  %v742_v43 = vld [vmem:[%s6891_s28 + $0xc88] sm:$0xff] }
 0x151   : > { %3773 = vmatmul.mubr.bf16.gmra.mxu1 %v7021_v42  ;;  %3949 = vmatprep.subr.bf16.mxu0 %v6245_v35  ;;  %v6213_v35 = vcombine.high %v750_v26, %v754_v28  ;;  %v746_v44 = vld [vmem:[%s6891_s28 + $0xca8] sm:$0xff] }
 0x152   : > { %3881 = vmatpush1.bf16.msra.mxu1 %v6100_v31  ;;  %3782 = vmatprep.mubr.bf16.mxu1 %v7027_v56  ;;  %v6068_v31 = vcombine.low %v606_v15, %v610_v17  ;;  %v718_v50 = vld [vmem:[%s6891_s28 + $0xbc8] sm:$0xff] }
 0x153   : > { %3882 = vmatprep.subr.bf16.mxu1 %v6093_v41  ;;  %3836 = vmatmul.mubr.bf16.vlgmr.msra.gmra.mxu0 %v7003_v25  ;;  %v6061_v41 = vcombine.high %v598_v29, %v602_v54  ;;  %v722_v51 = vld [vmem:[%s6891_s28 + $0xbe8] sm:$0xff] }
 0x154   : > { %3950 = vmatpush1.bf16.msra.mxu0 %v6244_v52  ;;  %3845 = vmatprep.mubr.bf16.mxu0 %v7012_v33  ;;  %v6212_v52 = vcombine.low %v750_v26, %v754_v28  ;;  %v734_v61 = vld [vmem:[%s6891_s28 + $0xc48] sm:$0xff] }
 0x155   : > { %3951 = vmatprep.subr.bf16.mxu0 %v6237_v37  ;;  %v6205_v37 = vcombine.high %v742_v43, %v746_v44  ;;  %v738_v0 = vld [vmem:[%s6891_s28 + $0xc68] sm:$0xff] }
 0x156   : > { %3883 = vmatpush1.bf16.msra.mxu1 %v6092_v57  ;;  %v6060_v57 = vcombine.low %v598_v29, %v602_v54  ;;  %v710_v3 = vld [vmem:[%s6891_s28 + $0xb88] sm:$0xff] }
 0x157   : > { %3884 = vmatprep.subr.bf16.mxu1 %v6085_v38  ;;  %v6181_v38 = vcombine.high %v718_v50, %v722_v51  ;;  %v714_v4 = vld [vmem:[%s6891_s28 + $0xba8] sm:$0xff] }
 0x158   : > { %3952 = vmatpush1.bf16.msra.mxu0 %v6236_v5  ;;  %v6204_v5 = vcombine.low %v742_v43, %v746_v44  ;;  %v726_v11 = vld [vmem:[%s6891_s28 + $0xc08] sm:$0xff] }
 0x159   : > { %3783 = vmatmul.mubr.bf16.gmra.mxu1 %v7041_v8  ;;  %3953 = vmatprep.subr.bf16.mxu0 %v6229_v7  ;;  %v6197_v7 = vcombine.high %v734_v61, %v738_v0  ;;  %v730_v34 = vld [vmem:[%s6891_s28 + $0xc28] sm:$0xff] }
 0x15a   : > { %3885 = vmatpush1.bf16.msra.mxu1 %v6084_v6  ;;  %3792 = vmatprep.mubr.bf16.mxu1 %v7047_v20  ;;  %v6180_v6 = vcombine.low %v718_v50, %v722_v51  ;;  %v702_v15 = vld [vmem:[%s6891_s28 + $0xb48] sm:$0xff] }
 0x15b   : > { %3886 = vmatprep.subr.bf16.mxu1 %v6077_v9  ;;  %3846 = vmatmul.mubr.bf16.gmra.mxu0 %v7023_v46  ;;  %v6173_v9 = vcombine.high %v710_v3, %v714_v4  ;;  %v706_v17 = vld [vmem:[%s6891_s28 + $0xb68] sm:$0xff] }
 0x15c   : > { %3954 = vmatpush1.bf16.msra.mxu0 %v6228_v18  ;;  %3855 = vmatprep.mubr.bf16.mxu0 %v7032_v62  ;;  %v6196_v18 = vcombine.low %v734_v61, %v738_v0  ;;  %v822_v26 = vld [vmem:[%s6891_s28 + $0xf08] sm:$0xff] }
 0x15d   : > { %3955 = vmatprep.subr.bf16.mxu0 %v6221_v22  ;;  %v6189_v22 = vcombine.high %v726_v11, %v730_v34  ;;  %v826_v28 = vld [vmem:[%s6891_s28 + $0xf28] sm:$0xff] }
 0x15e   : > { %3887 = vmatpush1.bf16.msra.mxu1 %v6076_v19  ;;  %v6172_v19 = vcombine.low %v710_v3, %v714_v4  ;;  %v694_v29 = vld [vmem:[%s6891_s28 + $0xb08] sm:$0xff] }
 0x15f   : > { %3888 = vmatprep.subr.bf16.mxu1 %v6069_v23  ;;  %v6165_v23 = vcombine.high %v702_v15, %v706_v17  ;;  %v698_v54 = vld [vmem:[%s6891_s28 + $0xb28] sm:$0xff] }
 0x160   : > { %3956 = vmatpush1.bf16.msra.mxu0 %v6220_v55  ;;  %v6188_v55 = vcombine.low %v726_v11, %v730_v34  ;;  %v814_v43 = vld [vmem:[%s6891_s28 + $0xec8] sm:$0xff] }
 0x161   : > { %3793 = vmatmul.mubr.bf16.gmra.mxu1 %v7061_v59  ;;  %3957 = vmatprep.subr.bf16.mxu0 %v6213_v35  ;;  %v6285_v35 = vcombine.high %v822_v26, %v826_v28  ;;  %v818_v44 = vld [vmem:[%s6891_s28 + $0xee8] sm:$0xff] }
 0x162   : > { %3889 = vmatpush1.bf16.msra.mxu1 %v6068_v31  ;;  %3908 = vmatprep.mubr.bf16.mxu1 %v7084_v49  ;;  %v6164_v31 = vcombine.low %v702_v15, %v706_v17  ;;  %v686_v50 = vld [vmem:[%s6891_s28 + $0xac8] sm:$0xff] }
 0x163   : > { %3890 = vmatprep.subr.bf16.mxu1 %v6061_v41  ;;  %3856 = vmatmul.mubr.bf16.gmra.mxu0 %v7043_v12  ;;  %v6157_v41 = vcombine.high %v694_v29, %v698_v54  ;;  %v690_v51 = vld [vmem:[%s6891_s28 + $0xae8] sm:$0xff] }
 0x164   : > { %3958 = vmatpush1.bf16.msra.mxu0 %v6212_v52  ;;  %3865 = vmatprep.mubr.bf16.mxu0 %v7052_v24  ;;  %v6284_v52 = vcombine.low %v822_v26, %v826_v28  ;;  %v806_v61 = vld [vmem:[%s6891_s28 + $0xe88] sm:$0xff] }
 0x165   : > { %3959 = vmatprep.subr.bf16.mxu0 %v6205_v37  ;;  %v6277_v37 = vcombine.high %v814_v43, %v818_v44  ;;  %v810_v0 = vld [vmem:[%s6891_s28 + $0xea8] sm:$0xff] }
 0x166   : > { %3891 = vmatpush1.bf16.msra.mxu1 %v6060_v57  ;;  %v6156_v57 = vcombine.low %v694_v29, %v698_v54  ;;  %v678_v3 = vld [vmem:[%s6891_s28 + $0xa88] sm:$0xff] }
 0x167   : > { %3892 = vmatprep.subr.bf16.mxu1 %v6181_v38  ;;  %v6149_v38 = vcombine.high %v686_v50, %v690_v51  ;;  %v682_v4 = vld [vmem:[%s6891_s28 + $0xaa8] sm:$0xff] }
 0x168   : > { %3960 = vmatpush1.bf16.msra.mxu0 %v6204_v5  ;;  %v6276_v5 = vcombine.low %v814_v43, %v818_v44  ;;  %v798_v11 = vld [vmem:[%s6891_s28 + $0xe48] sm:$0xff]  ;;  %v399_v43 = vld [vmem:[%s6891_s28 + $0x1d0] sm:$0xff] }
 0x169   : > { %3961 = vmatprep.subr.bf16.mxu0 %v6197_v7  ;;  %v6269_v7 = vcombine.high %v806_v61, %v810_v0  ;;  %v802_v34 = vld [vmem:[%s6891_s28 + $0xe68] sm:$0xff]  ;;  %v403_v44 = vld [vmem:[%s6891_s28 + $0x1f0] sm:$0xff] }
 0x16a   : > { %3893 = vmatpush2.bf16.msra.mxu1 %v6180_v6  ;;  %v6148_v6 = vcombine.low %v686_v50, %v690_v51  ;;  %v670_v15 = vld [vmem:[%s6891_s28 + $0xa48] sm:$0xff]  ;;  %v527_v50 = vld [vmem:[%s6891_s28 + $0x5d0] sm:$0xff] }
 0x16b   : > { %3894 = vmatprep.subr.bf16.mxu1 %v6173_v9  ;;  %3866 = vmatmul.mubr.bf16.gmra.mxu0 %v7067_v36  ;;  %v6141_v9 = vcombine.high %v678_v3, %v682_v4  ;;  %v674_v17 = vld [vmem:[%s6891_s28 + $0xa68] sm:$0xff]  ;;  %v531_v51 = vld [vmem:[%s6891_s28 + $0x5f0] sm:$0xff] }
 0x16c   : > { %3962 = vmatpush1.bf16.msra.mxu0 %v6196_v18  ;;  %6294 = vmatprep.mubr.msk.bf16.mxu0 %vm3425_vm0, %v7077_v45  ;;  %v6268_v18 = vcombine.low %v806_v61, %v810_v0  ;;  %v790_v26 = vld [vmem:[%s6891_s28 + $0xe08] sm:$0xff]  ;;  %v391_v61 = vld [vmem:[%s6891_s28 + $0x190] sm:$0xff] }
 0x16d   : > { %3963 = vmatprep.subr.bf16.mxu0 %v6189_v22  ;;  %v6261_v22 = vcombine.high %v798_v11, %v802_v34  ;;  %v794_v28 = vld [vmem:[%s6891_s28 + $0xe28] sm:$0xff]  ;;  %v395_v0 = vld [vmem:[%s6891_s28 + $0x1b0] sm:$0xff] }
 0x16e   : > { %3895 = vmatpush2.bf16.msra.mxu1 %v6172_v19  ;;  %v6140_v19 = vcombine.low %v678_v3, %v682_v4  ;;  %v662_v29 = vld [vmem:[%s6891_s28 + $0xa08] sm:$0xff]  ;;  %v519_v3 = vld [vmem:[%s6891_s28 + $0x590] sm:$0xff] }
 0x16f   : > { %3896 = vmatprep.subr.bf16.mxu1 %v6165_v23  ;;  %v6133_v23 = vcombine.high %v670_v15, %v674_v17  ;;  %v666_v54 = vld [vmem:[%s6891_s28 + $0xa28] sm:$0xff]  ;;  %v523_v4 = vld [vmem:[%s6891_s28 + $0x5b0] sm:$0xff] }
 0x170   : > { %3964 = vmatpush1.bf16.msra.mxu0 %v6188_v55  ;;  %v6260_v55 = vcombine.low %v798_v11, %v802_v34  ;;  %v383_v11 = vld [vmem:[%s6891_s28 + $0x150] sm:$0xff] }
 0x171   : > { %3971 = vmatprep.subr.bf16.mxu0 %v6285_v35  ;;  %v6253_v35 = vcombine.high %v790_v26, %v794_v28  ;;  %v387_v34 = vld [vmem:[%s6891_s28 + $0x170] sm:$0xff] }
 0x172   : > { %3897 = vmatpush2.bf16.msra.mxu1 %v6164_v31  ;;  %v6132_v31 = vcombine.low %v670_v15, %v674_v17  ;;  %v511_v15 = vld [vmem:[%s6891_s28 + $0x550] sm:$0xff] }
 0x173   : > { %3898 = vmatprep.subr.bf16.mxu1 %v6157_v41  ;;  %v6125_v41 = vcombine.high %v662_v29, %v666_v54  ;;  %v515_v17 = vld [vmem:[%s6891_s28 + $0x570] sm:$0xff] }
 0x174   : > { %3972 = vmatpush2.bf16.msra.mxu0 %v6284_v52  ;;  %v6252_v52 = vcombine.low %v790_v26, %v794_v28  ;;  %v375_v26 = vld [vmem:[%s6891_s28 + $0x110] sm:$0xff] }
 0x175   : > { %3973 = vmatprep.subr.bf16.mxu0 %v6277_v37  ;;  %v5863_v37 = vcombine.high %v399_v43, %v403_v44  ;;  %v379_v28 = vld [vmem:[%s6891_s28 + $0x130] sm:$0xff] }
 0x176   : > { %3899 = vmatpush2.bf16.msra.mxu1 %v6156_v57  ;;  %v6124_v57 = vcombine.low %v662_v29, %v666_v54  ;;  %v503_v29 = vld [vmem:[%s6891_s28 + $0x510] sm:$0xff] }
 0x177   : > { %3900 = vmatprep.subr.bf16.mxu1 %v6149_v38  ;;  %v5991_v38 = vcombine.high %v527_v50, %v531_v51  ;;  %v507_v54 = vld [vmem:[%s6891_s28 + $0x530] sm:$0xff] }
 0x178   : > { %3974 = vmatpush2.bf16.msra.mxu0 %v6276_v5  ;;  %v5862_v5 = vcombine.low %v399_v43, %v403_v44  ;;  %v367_v43 = vld [vmem:[%s6891_s28 + $0xd0] sm:$0xff] }
 0x179   : > { %3975 = vmatprep.subr.bf16.mxu0 %v6269_v7  ;;  %v5855_v7 = vcombine.high %v391_v61, %v395_v0  ;;  %v371_v44 = vld [vmem:[%s6891_s28 + $0xf0] sm:$0xff] }
 0x17a   : > { %3901 = vmatpush2.bf16.msra.mxu1 %v6148_v6  ;;  %v5990_v6 = vcombine.low %v527_v50, %v531_v51  ;;  %v495_v50 = vld [vmem:[%s6891_s28 + $0x4d0] sm:$0xff] }
 0x17b   : > { %3902 = vmatprep.subr.bf16.mxu1 %v6141_v9  ;;  %v5983_v9 = vcombine.high %v519_v3, %v523_v4  ;;  %v499_v51 = vld [vmem:[%s6891_s28 + $0x4f0] sm:$0xff] }
 0x17c   : > { %3976 = vmatpush2.bf16.msra.mxu0 %v6268_v18  ;;  %v5854_v18 = vcombine.low %v391_v61, %v395_v0  ;;  %v359_v61 = vld [vmem:[%s6891_s28 + $0x90] sm:$0xff] }
 0x17d   : > { %3977 = vmatprep.subr.bf16.mxu0 %v6261_v22  ;;  %v5847_v22 = vcombine.high %v383_v11, %v387_v34  ;;  %v363_v0 = vld [vmem:[%s6891_s28 + $0xb0] sm:$0xff] }
 0x17e   : > { %3903 = vmatpush2.bf16.msra.mxu1 %v6140_v19  ;;  %v5982_v19 = vcombine.low %v519_v3, %v523_v4  ;;  %v487_v3 = vld [vmem:[%s6891_s28 + $0x490] sm:$0xff] }
 0x17f   : > { %3904 = vmatprep.subr.bf16.mxu1 %v6133_v23  ;;  %v5975_v23 = vcombine.high %v511_v15, %v515_v17  ;;  %v491_v4 = vld [vmem:[%s6891_s28 + $0x4b0] sm:$0xff] }
 0x180   : > { %3978 = vmatpush2.bf16.msra.mxu0 %v6260_v55  ;;  %v5846_v55 = vcombine.low %v383_v11, %v387_v34  ;;  %v5951_v34 = vcombine.high %v487_v3, %v491_v4 }
 0x181   : > { %3979 = vmatprep.subr.bf16.mxu0 %v6253_v35  ;;  %v5839_v35 = vcombine.high %v375_v26, %v379_v28 }
 0x182   : > { %3905 = vmatpush2.bf16.msra.mxu1 %v6132_v31  ;;  %v5974_v31 = vcombine.low %v511_v15, %v515_v17  ;;  %v351_v15 = vld [vmem:[%s6891_s28 + $0x50] sm:$0xff] }
 0x183   : > { %3906 = vmatprep.subr.bf16.mxu1 %v6125_v41  ;;  %v5967_v41 = vcombine.high %v503_v29, %v507_v54  ;;  %v355_v17 = vld [vmem:[%s6891_s28 + $0x70] sm:$0xff] }
 0x184   : > { %3980 = vmatpush2.bf16.msra.mxu0 %v6252_v52  ;;  %v5838_v52 = vcombine.low %v375_v26, %v379_v28  ;;  %v5822_v26 = vcombine.low %v359_v61, %v363_v0  ;;  %v5950_v28 = vcombine.low %v487_v3, %v491_v4  ;;  %v591_v4 = vld [vmem:[%s6891_s28 + $0x7d0] sm:$0xff] }
 0x185   : > { %4022 = vmatprep.subr.bf16.mxu0 %v5863_v37  ;;  %v5831_v37 = vcombine.high %v367_v43, %v371_v44 }
 0x186   : > { %3907 = vmatpush2.bf16.msra.mxu1 %v6124_v57  ;;  %v5966_v57 = vcombine.low %v503_v29, %v507_v54  ;;  %v5815_v29 = vcombine.high %v351_v15, %v355_v17 }
 0x187   : > { %4095 = vmatprep.subr.bf16.mxu1 %v5991_v38  ;;  %3982 = vmatmul.mubr.bf16.vlgmr.msra.gmra.mxu0 %v7116_v2  ;;  %v5959_v38 = vcombine.high %v495_v50, %v499_v51  ;;  %v767_v2 = vld [vmem:[%s6891_s28 + $0xd50] sm:$0xff] }
 0x188   : > { %4023 = vmatpush1.bf16.msra.mxu0 %v5862_v5  ;;  %6295 = vmatprep.mubr.msk.bf16.mxu0 %vm3425_vm0, %v7120_v10  ;;  %v779_v10 = vld [vmem:[%s6891_s28 + $0xdb0] sm:$0xff] }
 0x189   : > { %3909 = vmatmul.mubr.bf16.vlgmr.msra.gmra.mxu1 %v7139_v40  ;;  %4024 = vmatprep.subr.bf16.mxu0 %v5855_v7  ;;  %v5958_v7 = vcombine.low %v495_v50, %v499_v51  ;;  %v5814_v50 = vcombine.low %v351_v15, %v355_v17  ;;  %v455_v17 = vld [vmem:[%s6891_s28 + $0x390] sm:$0xff] }
 0x18a   : > { %4096 = vmatpush1.bf16.msra.mxu1 %v5990_v6  ;;  %3918 = vmatprep.mubr.bf16.mxu1 %v7143_v47  ;;  %v5830_v6 = vcombine.low %v367_v43, %v371_v44  ;;  %v471_v43 = vld [vmem:[%s6891_s28 + $0x410] sm:$0xff] }
 0x18b   : > { %4097 = vmatprep.subr.bf16.mxu1 %v5983_v9  ;;  %v5823_v9 = vcombine.high %v359_v61, %v363_v0  ;;  %v475_v44 = vld [vmem:[%s6891_s28 + $0x430] sm:$0xff] }
 0x18c   : > { %4025 = vmatpush1.bf16.msra.mxu0 %v5854_v18  ;;  %v467_v61 = vld [vmem:[%s6891_s28 + $0x3f0] sm:$0xff] }
 0x18d   : > { %4026 = vmatprep.subr.bf16.mxu0 %v5847_v22  ;;  %v7342_v18 = vpop.f32.mrf.mxu0  ;;  %v483_v22 = vld [vmem:[%s6891_s28 + $0x470] sm:$0xff] }
 0x18e   : > { %4098 = vmatpush1.bf16.msra.mxu1 %v5982_v19  ;;  %v479_v19 = vld [vmem:[%s6891_s28 + $0x450] sm:$0xff] }
 0x18f   : > { %4099 = vmatprep.subr.bf16.mxu1 %v5975_v23  ;;  %3992 = vmatmul.mubr.bf16.gmra.mxu0 %v7131_v27  ;;  %v7336_v5 = vpop.f32.mrf.mxu1  ;;  %v783_v47 = vld [vmem:[%s6891_s28 + $0xdd0] sm:$0xff] }
 0x190   : > { %4027 = vmatpush1.bf16.msra.mxu0 %v5846_v55  ;;  %6296 = vmatprep.mubr.msk.bf16.mxu0 %vm3425_vm0, %v7135_v39  ;;  %v5943_v55 = vcombine.high %v479_v19, %v483_v22  ;;  %v539_v39 = vld [vmem:[%s6891_s28 + $0x630] sm:$0xff] }
 0x191   : > { %3919 = vmatmul.mubr.bf16.gmra.mxu1 %v7160_v60  ;;  %4028 = vmatprep.subr.bf16.mxu0 %v5839_v35  ;;  %v7338_v11 = vpop.f32.mrf.mxu1  ;;  %v347_v35 = vld [vmem:[%s6891_s28 + $0x30] sm:$0xff] }
 0x192   : > { %4100 = vmatpush1.bf16.msra.mxu1 %v5974_v31  ;;  %3928 = vmatprep.mubr.bf16.mxu1 %v7164_v16  ;;  %v343_v31 = vld [vmem:[%s6891_s28 + $0x10] sm:$0xff] }
 0x193   : > { %4101 = vmatprep.subr.bf16.mxu1 %v5967_v41  ;;  %v7347_v23 = vpop.f32.mrf.mxu1  ;;  %v7355_v41 = vpop.f32.mrf.mxu0  ;;  %v543_v16 = vld [vmem:[%s6891_s28 + $0x650] sm:$0xff] }
 0x194   : > { %4029 = vmatpush1.bf16.msra.mxu0 %v5838_v52  ;;  %v5942_v52 = vcombine.low %v479_v19, %v483_v22  ;;  %v459_v19 = vld [vmem:[%s6891_s28 + $0x3b0] sm:$0xff] }
 0x195   : > { %4030 = vmatprep.subr.bf16.mxu0 %v5831_v37  ;;  %v7350_v54 = vpop.f32.mrf.mxu1  ;;  %v5935_v37 = vcombine.high %v471_v43, %v475_v44  ;;  %v7367_v3 = vpop.f32.mrf.mxu0  ;;  %v535_v60 = vld [vmem:[%s6891_s28 + $0x610] sm:$0xff] }
 0x196   : > { %4102 = vmatpush1.bf16.msra.mxu1 %v5966_v57  ;;  %v5807_v57 = vcombine.high %v343_v31, %v347_v35  ;;  %v787_v27 = vld [vmem:[%s6891_s28 + $0xdf0] sm:$0xff] }
 0x197   : > { %4103 = vmatprep.subr.bf16.mxu1 %v5959_v38  ;;  %4002 = vmatmul.mubr.bf16.gmra.mxu0 %v7154_v1  ;;  %v7361_v51 = vpop.f32.mrf.mxu1  ;;  %v463_v38 = vld [vmem:[%s6891_s28 + $0x3d0] sm:$0xff] }
 0x198   : > { %4031 = vmatpush1.bf16.msra.mxu0 %v5830_v6  ;;  %6297 = vmatprep.mubr.msk.bf16.mxu0 %vm3425_vm0, %v7158_v13  ;;  %v595_v6 = vld [vmem:[%s6891_s28 + $0x7f0] sm:$0xff] }
 0x199   : > { %3929 = vmatmul.mubr.bf16.gmra.mxu1 %v7179_v48  ;;  %4032 = vmatprep.subr.bf16.mxu0 %v5823_v9  ;;  %v7365_v0 = vpop.f32.mrf.mxu1  ;;  %v5934_v9 = vcombine.low %v471_v43, %v475_v44  ;;  %v6055_v15 = vcombine.high %v591_v4, %v595_v6  ;;  %v5919_v43 = vcombine.high %v455_v17, %v459_v19  ;;  %v551_v48 = vld [vmem:[%s6891_s28 + $0x690] sm:$0xff] }
 0x19a   : > { %4104 = vmatpush1.bf16.msra.mxu1 %v5958_v7  ;;  %3938 = vmatprep.mubr.bf16.mxu1 %v7183_v53  ;;  %v5806_v7 = vcombine.low %v343_v31, %v347_v35  ;;  %v6054_v31 = vcombine.low %v591_v4, %v595_v6  ;;  %v559_v53 = vld [vmem:[%s6891_s28 + $0x6d0] sm:$0xff] }
 0x19b   : > { %4105 = vmatprep.subr.bf16.mxu1 %v5951_v34  ;;  %v5927_v34 = vcombine.high %v463_v38, %v467_v61  ;;  %v7375_v22 = vpop.f32.mrf.mxu1  ;;  %v555_v13 = vld [vmem:[%s6891_s28 + $0x6b0] sm:$0xff] }
 0x19c   : > { %4033 = vmatpush1.bf16.msra.mxu0 %v5822_v26  ;;  %v7378_v26 = vpop.f32.mrf.mxu0  ;;  %v547_v1 = vld [vmem:[%s6891_s28 + $0x670] sm:$0xff] }
 0x19d   : > { %4034 = vmatprep.subr.bf16.mxu0 %v5815_v29  ;;  %v587_v29 = vld [vmem:[%s6891_s28 + $0x7b0] sm:$0xff] }
 0x19e   : > { %4106 = vmatpush1.bf16.msra.mxu1 %v5950_v28  ;;  %v583_v28 = vld [vmem:[%s6891_s28 + $0x790] sm:$0xff]  ;;  %v7383_v35 = vpop.f32.mrf.mxu0 }
 0x19f   : > { %4107 = vmatprep.subr.bf16.mxu1 %v5943_v55  ;;  %4012 = vmatmul.mubr.bf16.gmra.mxu0 %v7175_v30  ;;  %v5926_v55 = vcombine.low %v463_v38, %v467_v61  ;;  %v6047_v44 = vcombine.high %v583_v28, %v587_v29  ;;  %v5918_v38 = vcombine.low %v455_v17, %v459_v19  ;;  %v563_v30 = vld [vmem:[%s6891_s28 + $0x6f0] sm:$0xff] }
 0x1a0   : > { %4035 = vmatpush1.bf16.msra.mxu0 %v5814_v50  ;;  %4054 = vmatprep.mubr.bf16.mxu0 %v6943_v58  ;;  %v447_v50 = vld [vmem:[%s6891_s28 + $0x350] sm:$0xff]  ;;  %v6046_v61 = vcombine.low %v583_v28, %v587_v29  ;;  %v7391_v4 = vpop.f32.mrf.mxu0 }
 0x1a1   : > { %3939 = vmatmul.mubr.bf16.gmra.mxu1 %v7195_v14  ;;  %4036 = vmatprep.subr.bf16.mxu0 %v5807_v57  ;;  %v7387_v57 = vpop.f32.mrf.mxu1  ;;  %v567_v14 = vld [vmem:[%s6891_s28 + $0x710] sm:$0xff] }
 0x1a2   : > { %4108 = vmatpush1.bf16.msra.mxu1 %v5942_v52  ;;  %4127 = vmatprep.mubr.bf16.mxu1 %v6953_v63  ;;  %v451_v52 = vld [vmem:[%s6891_s28 + $0x370] sm:$0xff]  ;;  %v7399_v19 = vpop.f32.mrf.mxu0 }
 0x1a3   : > { %4109 = vmatprep.subr.bf16.mxu1 %v5935_v37  ;;  %v575_v37 = vld [vmem:[%s6891_s28 + $0x750] sm:$0xff]  ;;  %v5911_v6 = vcombine.high %v447_v50, %v451_v52  ;;  %v5910_v17 = vcombine.low %v447_v50, %v451_v52 }
 0x1a4   : > { %4037 = vmatpush1.bf16.msra.mxu0 %v5806_v7  ;;  %v579_v63 = vld [vmem:[%s6891_s28 + $0x770] sm:$0xff]  ;;  %v7407_v52 = vpop.f32.mrf.mxu0 }
 0x1a5   : > { %4038 = vmatprep.subr.bf16.mxu0 %v5927_v34  ;;  %v6039_v7 = vcombine.high %v575_v37, %v579_v63  ;;  %v439_v34 = vld [vmem:[%s6891_s28 + $0x310] sm:$0xff]  ;;  %v6038_v28 = vcombine.low %v575_v37, %v579_v63 }
 0x1a6   : > { %4110 = vmatpush1.bf16.msra.mxu1 %v5934_v9  ;;  %v7393_v9 = vpop.f32.mrf.mxu1  ;;  %v571_v58 = vld [vmem:[%s6891_s28 + $0x730] sm:$0xff] }
 0x1a7   : > { %4111 = vmatprep.subr.bf16.mxu1 %v6055_v15  ;;  %v443_v15 = vld [vmem:[%s6891_s28 + $0x330] sm:$0xff]  ;;  %v6030_v63 = vcombine.low %v567_v14, %v571_v58 }
 0x1a8   : > { %4039 = vmatpush2.bf16.msra.mxu0 %v5926_v55  ;;  %v5903_v29 = vcombine.high %v439_v34, %v443_v15  ;;  %v6031_v55 = vcombine.high %v567_v14, %v571_v58  ;;  %v5902_v50 = vcombine.low %v439_v34, %v443_v15  ;;  %v7415_v15 = vpop.f32.mrf.mxu0  ;;  %v6022_v58 = vcombine.low %v559_v53, %v563_v30  ;;  %v775_v40 = vld [vmem:[%s6891_s28 + $0xd90] sm:$0xff] }
 0x1a9   : > { %4040 = vmatprep.subr.bf16.mxu0 %v5919_v43  ;;  %v431_v43 = vld [vmem:[%s6891_s28 + $0x2d0] sm:$0xff] }
 0x1aa   : > { %4112 = vmatpush2.bf16.msra.mxu1 %v6054_v31  ;;  %v7401_v31 = vpop.f32.mrf.mxu1 }
 0x1ab   : > { %4113 = vmatprep.subr.bf16.mxu1 %v6047_v44  ;;  %v435_v44 = vld [vmem:[%s6891_s28 + $0x2f0] sm:$0xff] }
 0x1ac   : > { %4041 = vmatpush2.bf16.msra.mxu0 %v5918_v38  ;;  %v5895_v37 = vcombine.high %v431_v43, %v435_v44  ;;  %v7409_v38 = vpop.f32.mrf.mxu1  ;;  %v5894_v34 = vcombine.low %v431_v43, %v435_v44  ;;  %v7423_v44 = vpop.f32.mrf.mxu0 }
 0x1ad   : > { %4042 = vmatprep.subr.bf16.mxu0 %v5911_v6  ;;  %v423_v6 = vld [vmem:[%s6891_s28 + $0x290] sm:$0xff] }
 0x1ae   : > { %4114 = vmatpush2.bf16.msra.mxu1 %v6046_v61  ;;  %v6023_v61 = vcombine.high %v559_v53, %v563_v30  ;;  %v6014_v30 = vcombine.low %v551_v48, %v555_v13 }
 0x1af   : > { %4115 = vmatprep.subr.bf16.mxu1 %v6039_v7  ;;  %v427_v7 = vld [vmem:[%s6891_s28 + $0x2b0] sm:$0xff] }
 0x1b0   : > { %4043 = vmatpush2.bf16.msra.mxu0 %v5910_v17  ;;  %v5887_v14 = vcombine.high %v423_v6, %v427_v7  ;;  %v7417_v17 = vpop.f32.mrf.mxu1  ;;  %v5886_v43 = vcombine.low %v423_v6, %v427_v7  ;;  %v7431_v7 = vpop.f32.mrf.mxu0 }
 0x1b1   : > { %4044 = vmatprep.subr.bf16.mxu0 %v5903_v29  ;;  %v415_v29 = vld [vmem:[%s6891_s28 + $0x250] sm:$0xff] }
 0x1b2   : > { %4116 = vmatpush2.bf16.msra.mxu1 %v6038_v28  ;;  %v6015_v28 = vcombine.high %v551_v48, %v555_v13  ;;  %v6006_v13 = vcombine.low %v543_v16, %v547_v1 }
 0x1b3   : > { %4117 = vmatprep.subr.bf16.mxu1 %v6031_v55  ;;  %v419_v55 = vld [vmem:[%s6891_s28 + $0x270] sm:$0xff] }
 0x1b4   : > { %4045 = vmatpush2.bf16.msra.mxu0 %v5902_v50  ;;  %v5879_v53 = vcombine.high %v415_v29, %v419_v55  ;;  %v7425_v50 = vpop.f32.mrf.mxu1  ;;  %v5878_v6 = vcombine.low %v415_v29, %v419_v55  ;;  %v7439_v55 = vpop.f32.mrf.mxu0 }
 0x1b5   : > { %4046 = vmatprep.subr.bf16.mxu0 %v5895_v37  ;;  %9132 = vst [vmem:[#allocation46_spill] sm:$0xff] %v7425_v50  ;;  %v407_v37 = vld [vmem:[%s6891_s28 + $0x210] sm:$0xff] }
 0x1b6   : > { %4118 = vmatpush2.bf16.msra.mxu1 %v6030_v63  ;;  %v6007_v63 = vcombine.high %v543_v16, %v547_v1  ;;  %v5998_v1 = vcombine.low %v535_v60, %v539_v39 }
 0x1b7   : > { %4119 = vmatprep.subr.bf16.mxu1 %v6023_v61  ;;  %v411_v61 = vld [vmem:[%s6891_s28 + $0x230] sm:$0xff] }
 0x1b8   : > { %4047 = vmatpush2.bf16.msra.mxu0 %v5894_v34  ;;  %v5871_v48 = vcombine.high %v407_v37, %v411_v61  ;;  %v7433_v34 = vpop.f32.mrf.mxu1  ;;  %v5870_v29 = vcombine.low %v407_v37, %v411_v61  ;;  %v7447_v61 = vpop.f32.mrf.mxu0 }
 0x1b9   : > { %4048 = vmatprep.subr.bf16.mxu0 %v5887_v14  ;;  %9133 = vst [vmem:[#allocation47_spill] sm:$0xff] %v7433_v34  ;;  %v655_v14 = vld [vmem:[%s6891_s28 + $0x9d0] sm:$0xff]  ;;  %9135 = vst [vmem:[#allocation49_spill] sm:$0xff] %v7447_v61 }
 0x1ba   : > { %4120 = vmatpush2.bf16.msra.mxu1 %v6022_v58  ;;  %v5999_v58 = vcombine.high %v535_v60, %v539_v39  ;;  %v6246_v39 = vcombine.low %v783_v47, %v787_v27  ;;  %v751_v34 = vld [vmem:[%s6891_s28 + $0xcd0] sm:$0xff] }
 0x1bb   : > { %4121 = vmatprep.subr.bf16.mxu1 %v6015_v28  ;;  %v659_v28 = vld [vmem:[%s6891_s28 + $0x9f0] sm:$0xff] }
 0x1bc   : > { %4049 = vmatpush2.bf16.msra.mxu0 %v5886_v43  ;;  %v6119_v16 = vcombine.high %v655_v14, %v659_v28  ;;  %v7441_v43 = vpop.f32.mrf.mxu1  ;;  %v6118_v37 = vcombine.low %v655_v14, %v659_v28  ;;  %v6238_v28 = vcombine.low %v775_v40, %v779_v10 }
 0x1bd   : > { %4050 = vmatprep.subr.bf16.mxu0 %v5879_v53  ;;  %9134 = vst [vmem:[#allocation48_spill] sm:$0xff] %v7441_v43  ;;  %v647_v53 = vld [vmem:[%s6891_s28 + $0x990] sm:$0xff] }
 0x1be   : > { %4122 = vmatpush2.bf16.msra.mxu1 %v6014_v30  ;;  %v6247_v30 = vcombine.high %v783_v47, %v787_v27  ;;  %v771_v43 = vld [vmem:[%s6891_s28 + $0xd70] sm:$0xff]  ;;  %v7459_v47 = vpop.f32.mrf.mxu0 }
 0x1bf   : > { %4123 = vmatprep.subr.bf16.mxu1 %v6007_v63  ;;  %v651_v63 = vld [vmem:[%s6891_s28 + $0x9b0] sm:$0xff]  ;;  %9137 = vst [vmem:[#allocation51_spill] sm:$0xff] %v7459_v47 }
 0x1c0   : > { %4051 = vmatpush2.bf16.msra.mxu0 %v5878_v6  ;;  %v6111_v60 = vcombine.high %v647_v53, %v651_v63  ;;  %v7449_v6 = vpop.f32.mrf.mxu1  ;;  %v6110_v27 = vcombine.low %v647_v53, %v651_v63  ;;  %v6230_v63 = vcombine.low %v767_v2, %v771_v43  ;;  %v7513_v47 = vld [vmem:[%s6891_s28 + $0x830] sm:$0xff] }
 0x1c1   : > { %4052 = vmatprep.subr.bf16.mxu0 %v5871_v48  ;;  %9136 = vst [vmem:[#allocation50_spill] sm:$0xff] %v7449_v6  ;;  %v639_v48 = vld [vmem:[%s6891_s28 + $0x950] sm:$0xff] }
 0x1c2   : > { %4124 = vmatpush2.bf16.msra.mxu1 %v6006_v13  ;;  %v6239_v13 = vcombine.high %v775_v40, %v779_v10  ;;  %v759_v6 = vld [vmem:[%s6891_s28 + $0xd10] sm:$0xff]  ;;  %v7471_v40 = vpop.f32.mrf.mxu0 }
 0x1c3   : > { %4125 = vmatprep.subr.bf16.mxu1 %v5999_v58  ;;  %v643_v58 = vld [vmem:[%s6891_s28 + $0x970] sm:$0xff]  ;;  %9138 = vst [vmem:[#allocation52_spill] sm:$0xff] %v7471_v40 }
 0x1c4   : > { %4053 = vmatpush2.bf16.msra.mxu0 %v5870_v29  ;;  %v6103_v29 = vcombine.high %v639_v48, %v643_v58  ;;  %v6102_v10 = vcombine.low %v639_v48, %v643_v58 }
 0x1c5   : > { %4168 = vmatprep.subr.bf16.mxu0 %v6119_v16  ;;  %v6231_v16 = vcombine.high %v767_v2, %v771_v43  ;;  %v7483_v2 = vpop.f32.mrf.mxu0 }
 0x1c6   : > { %4126 = vmatpush2.bf16.msra.mxu1 %v5998_v1  ;;  %9139 = vst [vmem:[#allocation53_spill] sm:$0xff] %v7483_v2 }
 0x1c7   : > { %4241 = vmatprep.subr.bf16.mxu1 %v6247_v30  ;;  %4055 = vmatmul.mubr.bf16.vlgmr.msra.gmra.mxu0 %v6998_v21  ;;  %v631_v30 = vld [vmem:[%s6891_s28 + $0x910] sm:$0xff] }
 0x1c8   : > { %4169 = vmatpush1.bf16.msra.mxu0 %v6118_v37  ;;  %v635_v21 = vld [vmem:[%s6891_s28 + $0x930] sm:$0xff]  ;;  %4064 = vmatprep.mubr.bf16.mxu0 %v7007_v32 }
 0x1c9   : > { %v7456_v14 = vpop.f32.mrf.mxu1  ;;  %4128 = vmatmul.mubr.bf16.vlgmr.msra.gmra.mxu1 %v7003_v25  ;;  %4170 = vmatprep.subr.bf16.mxu0 %v6111_v60  ;;  %v763_v37 = vld [vmem:[%s6891_s28 + $0xd30] sm:$0xff]  ;;  %v6094_v48 = vcombine.low %v631_v30, %v635_v21 }
 0x1ca   : > { %4242 = vmatpush1.bf16.msra.mxu1 %v6246_v39  ;;  %4137 = vmatprep.mubr.bf16.mxu1 %v7012_v33  ;;  %v6095_v39 = vcombine.high %v631_v30, %v635_v21  ;;  %v623_v25 = vld [vmem:[%s6891_s28 + $0x8d0] sm:$0xff]  ;;  %v6222_v43 = vcombine.low %v759_v6, %v763_v37 }
 0x1cb   : > { %v7461_v1 = vpop.f32.mrf.mxu1  ;;  %4243 = vmatprep.subr.bf16.mxu1 %v6239_v13  ;;  %v6223_v13 = vcombine.high %v759_v6, %v763_v37  ;;  %v627_v32 = vld [vmem:[%s6891_s28 + $0x8f0] sm:$0xff] }
 0x1cc   : > { %4171 = vmatpush1.bf16.msra.mxu0 %v6110_v27  ;;  %v755_v33 = vld [vmem:[%s6891_s28 + $0xcf0] sm:$0xff]  ;;  %v6087_v27 = vcombine.high %v623_v25, %v627_v32  ;;  %v6086_v6 = vcombine.low %v623_v25, %v627_v32 }
 0x1cd   : > { %v7469_v53 = vpop.f32.mrf.mxu1  ;;  %4172 = vmatprep.subr.bf16.mxu0 %v6103_v29  ;;  %v615_v29 = vld [vmem:[%s6891_s28 + $0x890] sm:$0xff] }
 0x1ce   : > { %4244 = vmatpush1.bf16.msra.mxu1 %v6238_v28  ;;  %v6215_v28 = vcombine.high %v751_v34, %v755_v33  ;;  %v743_v30 = vld [vmem:[%s6891_s28 + $0xc90] sm:$0xff] }
 0x1cf   : > { %v7473_v60 = vpop.f32.mrf.mxu1  ;;  %4245 = vmatprep.subr.bf16.mxu1 %v6231_v16  ;;  %4065 = vmatmul.mubr.bf16.gmra.mxu0 %v7021_v42  ;;  %v619_v16 = vld [vmem:[%s6891_s28 + $0x8b0] sm:$0xff] }
 0x1d0   : > { %4173 = vmatpush1.bf16.msra.mxu0 %v6102_v10  ;;  %4074 = vmatprep.mubr.bf16.mxu0 %v7027_v56  ;;  %v747_v10 = vld [vmem:[%s6891_s28 + $0xcb0] sm:$0xff]  ;;  %v6078_v32 = vcombine.low %v615_v29, %v619_v16 }
 0x1d1   : > { %v7480_v58 = vpop.f32.mrf.mxu1  ;;  %4138 = vmatmul.mubr.bf16.gmra.mxu1 %v7023_v46  ;;  %4174 = vmatprep.subr.bf16.mxu0 %v6095_v39  ;;  %v6214_v39 = vcombine.low %v751_v34, %v755_v33  ;;  %v6207_v46 = vcombine.high %v743_v30, %v747_v10  ;;  %v607_v56 = vld [vmem:[%s6891_s28 + $0x850] sm:$0xff] }
 0x1d2   : > { %4246 = vmatpush1.bf16.msra.mxu1 %v6230_v63  ;;  %4147 = vmatprep.mubr.bf16.mxu1 %v7032_v62  ;;  %v611_v42 = vld [vmem:[%s6891_s28 + $0x870] sm:$0xff] }
 0x1d3   : > { %4247 = vmatprep.subr.bf16.mxu1 %v6223_v13  ;;  %v7487_v40 = vpop.f32.mrf.mxu1  ;;  %v7490_v21 = vpop.f32.mrf.mxu0  ;;  %v6079_v13 = vcombine.high %v615_v29, %v619_v16  ;;  %v739_v25 = vld [vmem:[%s6891_s28 + $0xc70] sm:$0xff] }
 0x1d4   : > { %9140 = vst [vmem:[#allocation54_spill] sm:$0xff] %v7487_v40  ;;  %4175 = vmatpush1.bf16.msra.mxu0 %v6094_v48  ;;  %v735_v48 = vld [vmem:[%s6891_s28 + $0xc50] sm:$0xff] }
 0x1d5   : > { %v7495_v37 = vpop.f32.mrf.mxu1  ;;  %v7497_v63 = vpop.f32.mrf.mxu0  ;;  %4176 = vmatprep.subr.bf16.mxu0 %v6087_v27  ;;  %v6071_v27 = vcombine.high %v607_v56, %v611_v42  ;;  %v6199_v29 = vcombine.high %v735_v48, %v739_v25  ;;  %v7519_v16 = vld [vmem:[%s6891_s28 + $0xc30] sm:$0xff]  ;;  %v6198_v50 = vcombine.low %v735_v48, %v739_v25 }
 0x1d6   : > { %9141 = vst [vmem:[#allocation55_spill] sm:$0xff] %v7495_v37  ;;  %4248 = vmatpush1.bf16.msra.mxu1 %v6222_v43  ;;  %v6206_v43 = vcombine.low %v743_v30, %v747_v10  ;;  %v7531_v10 = vld [vmem:[%s6891_s28 + $0xf10] sm:$0xff] }
 0x1d7   : > { %4249 = vmatprep.subr.bf16.mxu1 %v6215_v28  ;;  %v7501_v2 = vpop.f32.mrf.mxu1  ;;  %v3622_v62 = vpop.f32.mrf.mxu0  ;;  %4075 = vmatmul.mubr.bf16.gmra.mxu0 %v7041_v8  ;;  %v7510_v28 = vld [vmem:[%s6891_s28 + $0x810] sm:$0xff] }
 0x1d8   : > { %9142 = vst [vmem:[#allocation56_spill] sm:$0xff] %v7501_v2  ;;  %4177 = vmatpush1.bf16.msra.mxu0 %v6086_v6  ;;  %v7516_v6 = vld [vmem:[%s6891_s28 + $0xc10] sm:$0xff]  ;;  %4084 = vmatprep.mubr.bf16.mxu0 %v7047_v20  ;;  %v6063_v61 = vcombine.high %v7510_v28, %v7513_v47 }
 0x1d9   : > { %v7506_v33 = vpop.f32.mrf.mxu1  ;;  %4148 = vmatmul.mubr.bf16.gmra.mxu1 %v7043_v12  ;;  %v3624_v34 = vpop.f32.mrf.mxu0  ;;  %4178 = vmatprep.subr.bf16.mxu0 %v6079_v13  ;;  %v7524_v12 = vld [vmem:[%s6891_s28 + $0xbd0] sm:$0xff] }
 0x1da   : > { %9143 = vst [vmem:[#allocation57_spill] sm:$0xff] %v7506_v33  ;;  %4250 = vmatpush1.bf16.msra.mxu1 %v6214_v39  ;;  %v7527_v13 = vld [vmem:[%s6891_s28 + $0xbf0] sm:$0xff]  ;;  %4157 = vmatprep.mubr.bf16.mxu1 %v7052_v24  ;;  %v6070_v33 = vcombine.low %v607_v56, %v611_v42  ;;  %v6191_v42 = vcombine.high %v7516_v6, %v7519_v16 }
 0x1db   : > { %4251 = vmatprep.subr.bf16.mxu1 %v6207_v46  ;;  %v7521_v39 = vpop.f32.mrf.mxu1  ;;  %v3628_v30 = vpop.f32.mrf.mxu0  ;;  %v7534_v8 = vld [vmem:[%s6891_s28 + $0xf30] sm:$0xff]  ;;  %v6183_v56 = vcombine.high %v7524_v12, %v7527_v13  ;;  %v6182_v25 = vcombine.low %v7524_v12, %v7527_v13  ;;  %v3558_v13 = vadd.f32 %v7365_v0, %v7391_v4 }
 0x1dc   : > { %9144 = vst [vmem:[#allocation58_spill] sm:$0xff] %v7521_v39  ;;  %v7537_v46 = vld [vmem:[%s6891_s28 + $0xb90] sm:$0xff]  ;;  %4179 = vmatpush1.bf16.msra.mxu0 %v6078_v32  ;;  %v6062_v39 = vcombine.low %v7510_v28, %v7513_v47  ;;  %v6190_v32 = vcombine.low %v7516_v6, %v7519_v16  ;;  %v3550_v47 = vadd.f32 %v7347_v23, %v7367_v3 }
 0x1dd   : > { %v7545_v2 = vld [vmem:[%s6891_s28 + $0xbb0] sm:$0xff]  ;;  %v3630_v40 = vpop.f32.mrf.mxu0  ;;  %4180 = vmatprep.subr.bf16.mxu0 %v6071_v27  ;;  %v7559_v48 = vpop.f32.mrf.mxu1  ;;  %v6287_v27 = vcombine.high %v7531_v10, %v7534_v8  ;;  %v3552_v28 = vadd.f32 %v7350_v54, %v7378_v26  ;;  %v3546_v3 = vadd.f32 %v7336_v5, %v7342_v18  ;;  %v3556_v54 = vadd.f32 %v7361_v51, %v7383_v35 }
 0x1de   : > { %v7548_v20 = vld [vmem:[%s6891_s28 + $0xed0] sm:$0xff]  ;;  %4252 = vmatpush1.bf16.msra.mxu1 %v6206_v43  ;;  %v6175_v23 = vcombine.high %v7537_v46, %v7545_v2  ;;  %v3623_v26 = vadd.f32 %v3622_v62, %v3550_v47  ;;  %v3560_v62 = vadd.f32 %v7375_v22, %v7399_v19  ;;  %v3631_v0 = vadd.f32 %v3630_v40, %v3558_v13 }
 0x1df   : > { %v7551_v37 = vld [vmem:[%s6891_s28 + $0xef0] sm:$0xff]  ;;  %4253 = vmatprep.subr.bf16.mxu1 %v6199_v29  ;;  %v3632_v6 = vpop.f32.mrf.mxu0  ;;  %4085 = vmatmul.mubr.bf16.gmra.mxu0 %v7061_v59  ;;  %v3548_v29 = vadd.f32 %v7338_v11, %v7355_v41  ;;  %v3625_v16 = vadd.f32 %v3624_v34, %v3552_v28  ;;  %v7587_v43 = vpop.f32.mrf.mxu1  ;;  %v3619_v51 = vadd.f32 %v7490_v21, %v3546_v3 }
 0x1e0   : > { %4181 = vmatpush1.bf16.msra.mxu0 %v6070_v33  ;;  %v7590_v5 = vld [vmem:[%s6891_s28 + $0xb50] sm:$0xff]  ;;  %v3629_v35 = vadd.f32 %v3628_v30, %v3556_v54  ;;  %v3562_v11 = vadd.f32 %v7387_v57, %v7407_v52  ;;  %4200 = vmatprep.mubr.bf16.mxu0 %v7084_v49  ;;  %v3566_v22 = vadd.f32 %v7393_v9, %v7415_v15 }
 0x1e1   : > { %4158 = vmatmul.mubr.bf16.gmra.mxu1 %v7067_v36  ;;  %v3634_v12 = vpop.f32.mrf.mxu0  ;;  %4182 = vmatprep.subr.bf16.mxu0 %v6063_v61  ;;  %v7593_v18 = vld [vmem:[%s6891_s28 + $0xb70] sm:$0xff]  ;;  %v3621_v41 = vadd.f32 %v7497_v63, %v3548_v29  ;;  %v7609_v19 = vadd.f32 %v7469_v53, %v3623_v26  ;;  %v3633_v61 = vadd.f32 %v3632_v6, %v3560_v62  ;;  %v3721_v9 = vpop.f32.mrf.mxu1  ;;  %v9151_v13 = vld [vmem:[#allocation57_spill] sm:$0xff] }
 0x1e2   : > { %4254 = vmatpush1.bf16.msra.mxu1 %v6198_v50  ;;  %6298 = vmatprep.mubr.msk.bf16.mxu1 %vm3425_vm0, %v7077_v45  ;;  %v6279_v50 = vcombine.high %v7548_v20, %v7551_v37  ;;  %v6167_v57 = vcombine.high %v7590_v5, %v7593_v18  ;;  %v3568_v52 = vadd.f32 %v7401_v31, %v7423_v44  ;;  %v807_v44 = vld [vmem:[%s6891_s28 + $0xe90] sm:$0xff]  ;;  %v7969_v45 = vld [vmem:[%s6891_s28 + $0x9f8] sm:$0xff] }
 0x1e3   : > { %4255 = vmatprep.subr.bf16.mxu1 %v6191_v42  ;;  %v3638_v4 = vpop.f32.mrf.mxu0  ;;  %v7616_v40 = vadd.f32 %v7473_v60, %v3625_v16  ;;  %v3635_v21 = vadd.f32 %v3634_v12, %v3562_v11  ;;  %v3570_v15 = vadd.f32 %v7409_v38, %v7431_v7  ;;  %v7621_v53 = vadd.f32 %v7456_v14, %v3619_v51  ;;  %v811_v60 = vld [vmem:[%s6891_s28 + $0xeb0] sm:$0xff]  ;;  %v3723_v12 = vpop.f32.mrf.mxu1  ;;  %v9153_v11 = vld [vmem:[#allocation47_spill] sm:$0xff] }
 0x1e4   : > { %4183 = vmatpush1.bf16.msra.mxu0 %v6062_v39  ;;  %v7624_v33 = vadd.f32 %v7480_v58, %v3629_v35  ;;  %v3639_v31 = vadd.f32 %v3638_v4, %v3566_v22  ;;  %v3572_v34 = vadd.f32 %v7417_v17, %v7439_v55  ;;  %v7631_v39 = vadd.f32 %v7461_v1, %v3621_v41  ;;  %v9145_v30 = vld [vmem:[#allocation54_spill] sm:$0xff]  ;;  %v9152_v35 = vld [vmem:[#allocation51_spill] sm:$0xff] }
 0x1e5   : > { %v3640_v63 = vpop.f32.mrf.mxu0  ;;  %4184 = vmatprep.subr.bf16.mxu0 %v6183_v56  ;;  %v7634_v38 = vadd.f32 %v9145_v30, %v3631_v0  ;;  %v6166_v14 = vcombine.low %v7590_v5, %v7593_v18  ;;  %v4606_v58 = vadd.f32 %v7609_v19, %v7621_v53  ;;  %v7644_v17 = vld [vmem:[%s6891_s28 + $0xb10] sm:$0xff]  ;;  %v9148_v6 = vcombine.low %v7531_v10, %v7534_v8 }
 0x1e6   : > { %4256 = vmatpush1.bf16.msra.mxu1 %v6190_v32  ;;  %v9146_v32 = vld [vmem:[#allocation55_spill] sm:$0xff]  ;;  %v3641_v56 = vadd.f32 %v3640_v63, %v3568_v52  ;;  %v7647_v55 = vld [vmem:[%s6891_s28 + $0xb30] sm:$0xff]  ;;  %v4619_v1 = vadd.f32 %v7616_v40, %v7631_v39  ;;  %v6271_v3 = vcombine.high %v807_v44, %v811_v60  ;;  %v7661_v5 = vadd.f32 %v9151_v13, %v3639_v31  ;;  %v9156_v63 = vld [vmem:[#allocation52_spill] sm:$0xff] }
 0x1e7   : > { %4263 = vmatprep.subr.bf16.mxu1 %v6287_v27  ;;  %v3642_v7 = vpop.f32.mrf.mxu0  ;;  %v7641_v42 = vadd.f32 %v9146_v32, %v3633_v61  ;;  %v9147_v27 = vld [vmem:[#allocation56_spill] sm:$0xff]  ;;  %v9150_v54 = vld [vmem:[#allocation46_spill] sm:$0xff]  ;;  %v4607_v29 = vadd.f32 %v4606_v58, %v7624_v33  ;;  %v3578_v8 = vadd.f32 %v9153_v11, %v9152_v35  ;;  %v6270_v41 = vcombine.low %v807_v44, %v811_v60 }
 0x1e8   : > { %v3643_v47 = vadd.f32 %v3642_v7, %v3570_v15  ;;  %4185 = vmatpush2.bf16.msra.mxu0 %v6182_v25  ;;  %v7652_v28 = vadd.f32 %v9147_v27, %v3635_v21  ;;  %v9149_v25 = vld [vmem:[#allocation49_spill] sm:$0xff]  ;;  %v799_v62 = vld [vmem:[%s6891_s28 + $0xe50] sm:$0xff]  ;;  %v4620_v10 = vadd.f32 %v4619_v1, %v7634_v38  ;;  %v6159_v0 = vcombine.high %v7644_v17, %v7647_v55  ;;  %v9157_v15 = vld [vmem:[#allocation48_spill] sm:$0xff] }
 0x1e9   : > { %v3644_v16 = vpop.f32.mrf.mxu0  ;;  %4186 = vmatprep.subr.bf16.mxu0 %v6175_v23  ;;  %v3576_v26 = vadd.f32 %v9150_v54, %v9149_v25  ;;  %v803_v51 = vld [vmem:[%s6891_s28 + $0xe70] sm:$0xff]  ;;  %v4608_v4 = vadd.f32 %v4607_v29, %v7641_v42  ;;  %v9155_v21 = vcombine.low %v7537_v46, %v7545_v2  ;;  %v3580_v31 = vadd.f32 %v9157_v15, %v9156_v63  ;;  %v9159_v27 = vld [vmem:[#allocation53_spill] sm:$0xff]  ;;  %v392_v15 = vld [vmem:[%s6891_s28 + $0x198] sm:$0xff] }
 0x1ea   : > { %4264 = vmatpush2.bf16.msra.mxu1 %v9148_v6  ;;  %v3645_v18 = vadd.f32 %v3644_v16, %v3572_v34  ;;  %v9154_v22 = vld [vmem:[#allocation58_spill] sm:$0xff]  ;;  %v4621_v44 = vadd.f32 %v4620_v10, %v7652_v28  ;;  %v9158_v60 = vcombine.low %v7548_v20, %v7551_v37  ;;  %v6263_v30 = vcombine.high %v799_v62, %v803_v51 }
 0x1eb   : > { %4265 = vmatprep.subr.bf16.mxu1 %v6279_v50  ;;  %v3648_v23 = vpop.f32.mrf.mxu0  ;;  %v7672_v61 = vadd.f32 %v9154_v22, %v3641_v56  ;;  %v7675_v50 = vadd.f32 %v7559_v48, %v3643_v47  ;;  %v3725_v48 = vpop.f32.mrf.mxu1  ;;  %v687_v7 = vld [vmem:[%s6891_s28 + $0xad0] sm:$0xff]  ;;  %v4609_v58 = vadd.f32 %v4608_v4, %v7661_v5 }
 0x1ec   : > { %v3649_v52 = vadd.f32 %v3648_v23, %v3576_v26  ;;  %4187 = vmatpush2.bf16.msra.mxu0 %v9155_v21  ;;  %v7689_v2 = vadd.f32 %v7587_v43, %v3645_v18  ;;  %v691_v56 = vld [vmem:[%s6891_s28 + $0xaf0] sm:$0xff]  ;;  %v6262_v26 = vcombine.low %v799_v62, %v803_v51 }
 0x1ed   : > { %v3650_v34 = vpop.f32.mrf.mxu0  ;;  %4188 = vmatprep.subr.bf16.mxu0 %v6167_v57  ;;  %v791_v47 = vld [vmem:[%s6891_s28 + $0xe10] sm:$0xff]  ;;  %v6158_v57 = vcombine.low %v7644_v17, %v7647_v55  ;;  %v4622_v16 = vadd.f32 %v4621_v44, %v7672_v61  ;;  %v4610_v25 = vadd.f32 %v4609_v58, %v7675_v50  ;;  %v3727_v54 = vpop.f32.mrf.mxu1  ;;  %v6151_v29 = vcombine.high %v687_v7, %v691_v56 }
 0x1ee   : > { %4266 = vmatpush2.bf16.msra.mxu1 %v9158_v60  ;;  %v3651_v46 = vadd.f32 %v3650_v34, %v3578_v8  ;;  %v7691_v32 = vadd.f32 %v3721_v9, %v3649_v52  ;;  %v795_v1 = vld [vmem:[%s6891_s28 + $0xe30] sm:$0xff]  ;;  %v400_v8 = vld [vmem:[%s6891_s28 + $0x1d8] sm:$0xff]  ;;  %v6150_v23 = vcombine.low %v687_v7, %v691_v56 }
 0x1ef   : > { %4267 = vmatprep.subr.bf16.mxu1 %v6271_v3  ;;  %v9160_v20 = vld [vmem:[#allocation50_spill] sm:$0xff]  ;;  %v3652_v6 = vpop.f32.mrf.mxu0  ;;  %v6255_v13 = vcombine.high %v791_v47, %v795_v1  ;;  %v4623_v17 = vadd.f32 %v4622_v16, %v7689_v2 }
 0x1f0   : > { %v3582_v37 = vadd.f32 %v9160_v20, %v9159_v27  ;;  %v3653_v43 = vadd.f32 %v3652_v6, %v3580_v31  ;;  %v7702_v9 = vadd.f32 %v3723_v12, %v3651_v46  ;;  %4189 = vmatpush2.bf16.msra.mxu0 %v6166_v14  ;;  %v4611_v55 = vadd.f32 %v4610_v25, %v7691_v32  ;;  %v679_v11 = vld [vmem:[%s6891_s28 + $0xa90] sm:$0xff]  ;;  %v404_v14 = vld [vmem:[%s6891_s28 + $0x1f8] sm:$0xff] }
 0x1f1   : > { %v3654_v3 = vpop.f32.mrf.mxu0  ;;  %4190 = vmatprep.subr.bf16.mxu0 %v6159_v0  ;;  %v683_v12 = vld [vmem:[%s6891_s28 + $0xab0] sm:$0xff]  ;;  %v5865_v52 = vcombine.high %v400_v8, %v404_v14  ;;  %v396_v31 = vld [vmem:[%s6891_s28 + $0x1b8] sm:$0xff] }
 0x1f2   : > { %4268 = vmatpush2.bf16.msra.mxu1 %v6270_v41  ;;  %v3655_v18 = vadd.f32 %v3654_v3, %v3582_v37  ;;  %v3726_v35 = vadd.f32 %v3725_v48, %v3653_v43  ;;  %v4624_v10 = vadd.f32 %v4623_v17, %v7702_v9  ;;  %v6254_v41 = vcombine.low %v791_v47, %v795_v1  ;;  %v671_v21 = vld [vmem:[%s6891_s28 + $0xa50] sm:$0xff]  ;;  %v384_v27 = vld [vmem:[%s6891_s28 + $0x158] sm:$0xff]  ;;  %v9162_v17 = vld [vmem:[#allocation33_spill] sm:$0xff] }
 0x1f3   : > { %4269 = vmatprep.subr.bf16.mxu1 %v6263_v30  ;;  %v6143_v0 = vcombine.high %v679_v11, %v683_v12  ;;  %v675_v63 = vld [vmem:[%s6891_s28 + $0xa70] sm:$0xff]  ;;  %v6142_v34 = vcombine.low %v679_v11, %v683_v12  ;;  %v5864_v48 = vcombine.low %v400_v8, %v404_v14  ;;  %v5857_v46 = vcombine.high %v392_v15, %v396_v31  ;;  %v388_v20 = vld [vmem:[%s6891_s28 + $0x178] sm:$0xff] }
 0x1f4   : > { %v4612_v62 = vadd.f32 %v4611_v55, %v3726_v35  ;;  %v3728_v51 = vadd.f32 %v3727_v54, %v3655_v18  ;;  %4191 = vmatpush2.bf16.msra.mxu0 %v6158_v57  ;;  %v6135_v30 = vcombine.high %v671_v21, %v675_v63  ;;  %v663_v56 = vld [vmem:[%s6891_s28 + $0xa10] sm:$0xff]  ;;  %v4718_v1 = vlaneseq  ;;  %v9161_v57 = vld [vmem:[#allocation32_spill] sm:$0xff]  ;;  %v376_v18 = vld [vmem:[%s6891_s28 + $0x118] sm:$0xff] }
 0x1f5   : > { %4192 = vmatprep.subr.bf16.mxu0 %v6151_v29  ;;  %v667_v47 = vld [vmem:[%s6891_s28 + $0xa30] sm:$0xff]  ;;  %v6134_v16 = vcombine.low %v671_v21, %v675_v63  ;;  %v5856_v25 = vcombine.low %v392_v15, %v396_v31  ;;  %v528_v29 = vld [vmem:[%s6891_s28 + $0x5d8] sm:$0xff] }
 0x1f6   : > { %4270 = vmatpush2.bf16.msra.mxu1 %v6262_v26  ;;  %v4613_v4 = vrot.slane %v4612_v62, 4  ;;  %v4625_v22 = vadd.f32 %v4624_v10, %v3728_v51  ;;  %v6127_v43 = vcombine.high %v663_v56, %v667_v47  ;;  %v5849_v26 = vcombine.high %v384_v27, %v388_v20  ;;  %v380_v35 = vld [vmem:[%s6891_s28 + $0x138] sm:$0xff] }
 0x1f7   : > { %4271 = vmatprep.subr.bf16.mxu1 %v6255_v13  ;;  %v532_v13 = vld [vmem:[%s6891_s28 + $0x5f8] sm:$0xff]  ;;  %v7724_v55 = vshrl.u32 %v4718_v1, 7  ;;  %v6126_v8 = vcombine.low %v663_v56, %v667_v47  ;;  %v5840_v21 = vcombine.low %v376_v18, %v380_v35 }
 0x1f8   : > { %v4614_v44 = vadd.f32 %v4613_v4, %v4612_v62  ;;  %v4626_v60 = vrot.slane %v4625_v22, 4  ;;  %4193 = vmatpush2.bf16.msra.mxu0 %v6150_v23  ;;  %v7729_v14 = vld [vmem:[%s6891_s28 + $0xd8] sm:$0xff]  ;;  %v5848_v62 = vcombine.low %v384_v27, %v388_v20  ;;  %v5993_v51 = vcombine.high %v528_v29, %v532_v13 }
 0x1f9   : > { %4194 = vmatprep.subr.bf16.mxu0 %v6143_v0  ;;  %9163 = vst [vmem:[#allocation54_spill] sm:$0xff] %v7724_v55  ;;  %v7732_v10 = vld [vmem:[%s6891_s28 + $0xf8] sm:$0xff]  ;;  %v5841_v0 = vcombine.high %v376_v18, %v380_v35  ;;  %v5992_v63 = vcombine.low %v528_v29, %v532_v13 }
 0x1fa   : > { %4272 = vmatpush2.bf16.msra.mxu1 %v6254_v41  ;;  %v4615_v7 = vrot.slane %v4614_v44, 2  ;;  %v4627_v58 = vadd.f32 %v4626_v60, %v4625_v22  ;;  %v520_v4 = vld [vmem:[%s6891_s28 + $0x598] sm:$0xff]  ;;  %v5833_v15 = vcombine.high %v7729_v14, %v7732_v10 }
 0x1fb   : > { %4314 = vmatprep.subr.bf16.mxu1 %v5865_v52  ;;  %v524_v22 = vld [vmem:[%s6891_s28 + $0x5b8] sm:$0xff]  ;;  %v7737_v52 = vadd.s32 48, %v7724_v55 }
 0x1fc   : > { %v4616_v37 = vadd.f32 %v4615_v7, %v4614_v44  ;;  %v4628_v6 = vrot.slane %v4627_v58, 2  ;;  %4195 = vmatpush2.bf16.msra.mxu0 %v6142_v34  ;;  %v7742_v31 = vld [vmem:[%s6891_s28 + $0x98] sm:$0xff] }
 0x1fd   : > { %4274 = vmatmul.mubr.bf16.vlgmr.msra.gmra.mxu1 %v9161_v57  ;;  %4196 = vmatprep.subr.bf16.mxu0 %v6135_v30  ;;  %9164 = vst [vmem:[#allocation55_spill] sm:$0xff] %v7737_v52  ;;  %v7745_v44 = vld [vmem:[%s6891_s28 + $0xb8] sm:$0xff]  ;;  %v5832_v30 = vcombine.low %v7729_v14, %v7732_v10  ;;  %vm4733_vm1 = vcmp.lt.s32.totalorder %v7737_v52, 49  ;;  %v5071_v52 = vld [vmem:[%s6898_s21] sm:$0xff] }
 0x1fe   : > { %4315 = vmatpush1.bf16.msra.mxu1 %v5864_v48  ;;  %v4617_v3 = vrot.slane %v4616_v37, 1  ;;  %v4629_v54 = vadd.f32 %v4628_v6, %v4627_v58  ;;  %6299 = vmatprep.mubr.msk.bf16.mxu1 %vm3425_vm0, %v9162_v17  ;;  %v5824_v56 = vcombine.low %v7742_v31, %v7745_v44  ;;  %v512_v47 = vld [vmem:[%s6891_s28 + $0x558] sm:$0xff]  ;;  %v9165_v6 = vld [vmem:[#allocation36_spill] sm:$0xff] }
 0x1ff   : > { %4316 = vmatprep.subr.bf16.mxu1 %v5857_v46  ;;  %v5985_v46 = vcombine.high %v520_v4, %v524_v22  ;;  %v516_v1 = vld [vmem:[%s6891_s28 + $0x578] sm:$0xff] }
 0x200   : > { %v4618_v11 = vadd.f32 %v4617_v3, %v4616_v37  ;;  %v4630_v12 = vrot.slane %v4629_v54, 1  ;;  %4197 = vmatpush2.bf16.msra.mxu0 %v6134_v16  ;;  %v9166_v16 = vld [vmem:[#allocation34_spill] sm:$0xff]  ;;  %v5976_v29 = vcombine.low %v512_v47, %v516_v1  ;;  %v7966_v57 = vld [vmem:[%s6891_s28 + $0x9d8] sm:$0xff] }
 0x201   : > { %4198 = vmatprep.subr.bf16.mxu0 %v6127_v43 }
 0x202   : > { %4317 = vmatpush1.bf16.msra.mxu1 %v5856_v25  ;;  %v4710_v23 = vmul.f32 0.020408163, %v4618_v11  ;;  %v4631_v41 = vadd.f32 %v4630_v12, %v4629_v54  ;;  %v508_v11 = vld [vmem:[%s6891_s28 + $0x538] sm:$0xff] }
 0x203   : > { %4318 = vmatprep.subr.bf16.mxu1 %v5849_v26 }
 0x204   : > { %v7748_v60 = vsub.f32 %v7621_v53, %v4710_v23  ;;  %v7751_v34 = vsub.f32 %v7609_v19, %v4710_v23  ;;  %v7754_v48 = vsub.f32 %v7624_v33, %v4710_v23  ;;  %4199 = vmatpush2.bf16.msra.mxu0 %v6126_v8  ;;  %v7759_v7 = vsub.f32 %v7641_v42, %v4710_v23 }
 0x205   : > { %v7761_v58 = vmul.f32 0.020408163, %v4631_v41  ;;  %4387 = vmatprep.subr.bf16.mxu0 %v5993_v51  ;;  %v5984_v53 = vcombine.low %v520_v4, %v524_v22  ;;  %v5825_v42 = vcombine.high %v7742_v31, %v7745_v44  ;;  %v7775_v27 = vsub.f32 %v7661_v5, %v4710_v23  ;;  %4284 = vmatmul.mubr.bf16.gmra.mxu1 %v9166_v16  ;;  %v9168_v41 = vld [vmem:[#allocation35_spill] sm:$0xff] }
 0x206   : > { %4319 = vmatpush1.bf16.msra.mxu1 %v5848_v62  ;;  %v4879_v19 = vmul.f32 %v7748_v60, %v7748_v60  ;;  %v4887_v33 = vmul.f32 %v7751_v34, %v7751_v34  ;;  %v4783_v20 = vsub.f32 %v7691_v32, %v4710_v23  ;;  %v4895_v25 = vmul.f32 %v7754_v48, %v7754_v48  ;;  %v7798_v32 = vld [vmem:[%s6891_s28 + $0x78] sm:$0xff] }
 0x207   : > { %4320 = vmatprep.subr.bf16.mxu1 %v5841_v0  ;;  %v7780_v37 = vsub.f32 %v7631_v39, %v7761_v58  ;;  %4201 = vmatmul.mubr.bf16.vlgmr.msra.gmra.mxu0 %v9165_v6  ;;  %v7788_v3 = vsub.f32 %v7616_v40, %v7761_v58  ;;  %v7792_v5 = vsub.f32 %v7634_v38, %v7761_v58  ;;  %v7795_v39 = vld [vmem:[%s6891_s28 + $0x58] sm:$0xff] }
 0x208   : > { %v4943_v43 = vadd.f32 %v4887_v33, %v4879_v19  ;;  %4388 = vmatpush1.bf16.msra.mxu0 %v5992_v63  ;;  %v7801_v54 = vsub.f32 %v7675_v50, %v4710_v23  ;;  %v4903_v26 = vmul.f32 %v7759_v7, %v7759_v7  ;;  %v5977_v40 = vcombine.high %v512_v47, %v516_v1  ;;  %v504_v50 = vld [vmem:[%s6891_s28 + $0x518] sm:$0xff] }
 0x209   : > { %v7807_v18 = vsub.f32 %v7652_v28, %v7761_v58  ;;  %v4880_v38 = vmul.f32 %v7780_v37, %v7780_v37  ;;  %v4888_v35 = vmul.f32 %v7788_v3, %v7788_v3  ;;  %v4911_v12 = vmul.f32 %v7775_v27, %v7775_v27  ;;  %4389 = vmatprep.subr.bf16.mxu0 %v5985_v46  ;;  %v9167_v28 = vld [vmem:[#allocation37_spill] sm:$0xff]  ;;  %v348_v19 = vld [vmem:[%s6891_s28 + $0x38] sm:$0xff] }
 0x20a   : > { %4321 = vmatpush1.bf16.msra.mxu1 %v5840_v21  ;;  %v4944_v13 = vadd.f32 %v4943_v43, %v4895_v25  ;;  %v7819_v8 = vsub.f32 %v7672_v61, %v7761_v58  ;;  %4210 = vmatprep.mubr.bf16.mxu0 %v9167_v28  ;;  %v5817_v14 = vcombine.high %v7795_v39, %v7798_v32  ;;  %v7826_v10 = vsel %vm4733_vm1, %v4783_v20, 0.0  ;;  %v7830_v61 = vpop.f32.mrf.mxu1  ;;  %v7839_v21 = vld [vmem:[%s6891_s28 + $0x18] sm:$0xff]  ;;  %v9170_v20 = vld [vmem:[#allocation38_spill] sm:$0xff] }
 0x20b   : > { %4322 = vmatprep.subr.bf16.mxu1 %v5833_v15  ;;  %v4896_v51 = vmul.f32 %v7792_v5, %v7792_v5  ;;  %v4956_v23 = vadd.f32 %v4888_v35, %v4880_v38  ;;  %6300 = vmatprep.mubr.msk.bf16.mxu1 %vm3425_vm0, %v9168_v41  ;;  %v4919_v0 = vmul.f32 %v7801_v54, %v7801_v54  ;;  %v496_v33 = vld [vmem:[%s6891_s28 + $0x4d8] sm:$0xff]  ;;  %v9177_v41 = vld [vmem:[#allocation45_spill] sm:$0xff] }
 0x20c   : > { %v4945_v62 = vadd.f32 %v4944_v13, %v4903_v26  ;;  %4390 = vmatpush1.bf16.msra.mxu0 %v5984_v53  ;;  %v4784_v4 = vsub.f32 %v7702_v9, %v7761_v58  ;;  %v5969_v22 = vcombine.high %v504_v50, %v508_v11  ;;  %v7843_v15 = vsub.f32 %v7689_v2, %v7761_v58  ;;  %v500_v47 = vld [vmem:[%s6891_s28 + $0x4f8] sm:$0xff]  ;;  %v7856_v43 = vpop.f32.mrf.mxu1 }
 0x20d   : > { %4391 = vmatprep.subr.bf16.mxu0 %v5977_v40  ;;  %v4904_v53 = vmul.f32 %v7807_v18, %v7807_v18  ;;  %v4957_v46 = vadd.f32 %v4956_v23, %v4896_v51  ;;  %v4927_v9 = vmul.f32 %v7826_v10, %v7826_v10  ;;  %v5968_v1 = vcombine.low %v504_v50, %v508_v11  ;;  %v488_v11 = vld [vmem:[%s6891_s28 + $0x498] sm:$0xff] }
 0x20e   : > { %4323 = vmatpush1.bf16.msra.mxu1 %v5832_v30  ;;  %v4946_v63 = vadd.f32 %v4945_v62, %v4911_v12  ;;  %v9169_v30 = vld [vmem:[#allocation40_spill] sm:$0xff]  ;;  %v4912_v2 = vmul.f32 %v7819_v8, %v7819_v8  ;;  %v7861_v26 = vsel %vm4733_vm1, %v4784_v4, 0.0  ;;  %v5816_v40 = vcombine.low %v7795_v39, %v7798_v32  ;;  %v492_v12 = vld [vmem:[%s6891_s28 + $0x4b8] sm:$0xff]  ;;  %v7881_v23 = vpop.f32.mrf.mxu1 }
 0x20f   : > { %4324 = vmatprep.subr.bf16.mxu1 %v5825_v42  ;;  %4211 = vmatmul.mubr.bf16.gmra.mxu0 %v9169_v30  ;;  %v4958_v58 = vadd.f32 %v4957_v46, %v4904_v53  ;;  %v9171_v42 = vld [vmem:[#allocation41_spill] sm:$0xff]  ;;  %v5809_v13 = vcombine.high %v7839_v21, %v348_v19  ;;  %v5961_v38 = vcombine.high %v496_v33, %v500_v47  ;;  %v9172_v62 = vld [vmem:[#allocation39_spill] sm:$0xff] }
 0x210   : > { %4294 = vmatmul.mubr.bf16.gmra.mxu1 %v9170_v20  ;;  %v4947_v25 = vadd.f32 %v4946_v63, %v4919_v0  ;;  %4392 = vmatpush1.bf16.msra.mxu0 %v5976_v29  ;;  %v4920_v35 = vmul.f32 %v7843_v15, %v7843_v15  ;;  %v464_v44 = vld [vmem:[%s6891_s28 + $0x3d8] sm:$0xff]  ;;  %v4928_v32 = vmul.f32 %v7861_v26, %v7861_v26 }
 0x211   : > { %4220 = vmatprep.mubr.bf16.mxu0 %v9171_v42  ;;  %4393 = vmatprep.subr.bf16.mxu0 %v5969_v22  ;;  %v4959_v50 = vadd.f32 %v4958_v58, %v4912_v2  ;;  %v5808_v4 = vcombine.low %v7839_v21, %v348_v19  ;;  %v5953_v22 = vcombine.high %v488_v11, %v492_v12  ;;  %v9173_v58 = vld [vmem:[#allocation43_spill] sm:$0xff]  ;;  %v7894_v19 = vpop.f32.mrf.mxu1 }
 0x212   : > { %4325 = vmatpush1.bf16.msra.mxu1 %v5824_v56  ;;  %v4948_v29 = vadd.f32 %v4947_v25, %v4927_v9  ;;  %6301 = vmatprep.mubr.msk.bf16.mxu1 %vm3425_vm0, %v9172_v62  ;;  %v468_v56 = vld [vmem:[%s6891_s28 + $0x3f8] sm:$0xff] }
 0x213   : > { %4326 = vmatprep.subr.bf16.mxu1 %v5817_v14  ;;  %v7875_v31 = vpop.f32.mrf.mxu0  ;;  %v4960_v51 = vadd.f32 %v4959_v50, %v4920_v35  ;;  %v5960_v14 = vcombine.low %v496_v33, %v500_v47  ;;  %v5929_v46 = vcombine.high %v464_v44, %v468_v56  ;;  %v480_v9 = vld [vmem:[%s6891_s28 + $0x458] sm:$0xff]  ;;  %v9174_v33 = vld [vmem:[#allocation42_spill] sm:$0xff] }
 0x214   : > { %v4950_v39 = vrot.slane %v4948_v29, 4  ;;  %4394 = vmatpush1.bf16.msra.mxu0 %v5968_v1  ;;  %v484_v25 = vld [vmem:[%s6891_s28 + $0x478] sm:$0xff] }
 0x215   : > { %v7883_v0 = vpop.f32.mrf.mxu0  ;;  %4395 = vmatprep.subr.bf16.mxu0 %v5961_v38  ;;  %v4961_v53 = vadd.f32 %v4960_v51, %v4928_v32  ;;  %v456_v1 = vld [vmem:[%s6891_s28 + $0x398] sm:$0xff]  ;;  %v5945_v50 = vcombine.high %v480_v9, %v484_v25 }
 0x216   : > { %4327 = vmatpush1.bf16.msra.mxu1 %v5816_v40  ;;  %v4951_v63 = vadd.f32 %v4950_v39, %v4948_v29  ;;  %v460_v35 = vld [vmem:[%s6891_s28 + $0x3b8] sm:$0xff]  ;;  %v5952_v40 = vcombine.low %v488_v11, %v492_v12  ;;  %v5928_v29 = vcombine.low %v464_v44, %v468_v56  ;;  %v5944_v56 = vcombine.low %v480_v9, %v484_v25 }
 0x217   : > { %4328 = vmatprep.subr.bf16.mxu1 %v5809_v13  ;;  %v7888_v2 = vpop.f32.mrf.mxu0  ;;  %4221 = vmatmul.mubr.bf16.gmra.mxu0 %v9173_v58  ;;  %v4963_v21 = vrot.slane %v4961_v53, 4  ;;  %v9175_v13 = vld [vmem:[#allocation44_spill] sm:$0xff]  ;;  %v5921_v51 = vcombine.high %v456_v1, %v460_v35  ;;  %v476_v62 = vld [vmem:[%s6891_s28 + $0x438] sm:$0xff]  ;;  %v7901_v58 = vpop.f32.mrf.mxu1 }
 0x218   : > { %4304 = vmatmul.mubr.bf16.gmra.mxu1 %v9174_v33  ;;  %v4952_v47 = vrot.slane %v4951_v63, 2  ;;  %4396 = vmatpush1.bf16.msra.mxu0 %v5960_v14  ;;  %v472_v33 = vld [vmem:[%s6891_s28 + $0x418] sm:$0xff]  ;;  %v9176_v14 = vld [vmem:[#allocation16_spill] sm:$0xff] }
 0x219   : > { %4230 = vmatprep.mubr.bf16.mxu0 %v9175_v13  ;;  %v7897_v38 = vpop.f32.mrf.mxu0  ;;  %4397 = vmatprep.subr.bf16.mxu0 %v5953_v22  ;;  %v4964_v32 = vadd.f32 %v4963_v21, %v4961_v53  ;;  %v448_v11 = vld [vmem:[%s6891_s28 + $0x358] sm:$0xff]  ;;  %v5920_v22 = vcombine.low %v456_v1, %v460_v35  ;;  %v7912_v42 = vpop.f32.mrf.mxu1  ;;  %v5936_v1 = vcombine.low %v472_v33, %v476_v62  ;;  %v9178_v35 = vld [vmem:[#allocation17_spill] sm:$0xff] }
 0x21a   : > { %4329 = vmatpush1.bf16.msra.mxu1 %v5808_v4  ;;  %v4953_v39 = vadd.f32 %v4952_v47, %v4951_v63  ;;  %4346 = vmatprep.mubr.bf16.mxu1 %v9176_v14  ;;  %v452_v12 = vld [vmem:[%s6891_s28 + $0x378] sm:$0xff]  ;;  %v5937_v63 = vcombine.high %v472_v33, %v476_v62 }
 0x21b   : > { %4330 = vmatprep.subr.bf16.mxu1 %v5929_v46  ;;  %v7906_v4 = vpop.f32.mrf.mxu0  ;;  %v4965_v44 = vrot.slane %v4964_v32, 2  ;;  %v5913_v21 = vcombine.high %v448_v11, %v452_v12  ;;  %v592_v14 = vld [vmem:[%s6891_s28 + $0x7d8] sm:$0xff] }
 0x21c   : > { %v4954_v13 = vrot.slane %v4953_v39, 1  ;;  %4398 = vmatpush1.bf16.msra.mxu0 %v5952_v40  ;;  %v596_v20 = vld [vmem:[%s6891_s28 + $0x7f8] sm:$0xff] }
 0x21d   : > { %4399 = vmatprep.subr.bf16.mxu0 %v5945_v50  ;;  %v7908_v53 = vpop.f32.mrf.mxu0  ;;  %v4966_v47 = vadd.f32 %v4965_v44, %v4964_v32  ;;  %v440_v30 = vld [vmem:[%s6891_s28 + $0x318] sm:$0xff] }
 0x21e   : > { %4331 = vmatpush2.bf16.msra.mxu1 %v5928_v29  ;;  %v4955_v46 = vadd.f32 %v4954_v13, %v4953_v39  ;;  %v444_v40 = vld [vmem:[%s6891_s28 + $0x338] sm:$0xff]  ;;  %v5912_v13 = vcombine.low %v448_v11, %v452_v12  ;;  %v6057_v29 = vcombine.high %v592_v14, %v596_v20  ;;  %v6056_v11 = vcombine.low %v592_v14, %v596_v20 }
 0x21f   : > { %4332 = vmatprep.subr.bf16.mxu1 %v5921_v51  ;;  %4231 = vmatmul.mubr.bf16.gmra.mxu0 %v9177_v41  ;;  %v4967_v25 = vrot.slane %v4966_v47, 1  ;;  %v7918_v50 = vpop.f32.mrf.mxu0  ;;  %v5905_v51 = vcombine.high %v440_v30, %v444_v40  ;;  %v584_v44 = vld [vmem:[%s6891_s28 + $0x798] sm:$0xff]  ;;  %v7922_v41 = vpop.f32.mrf.mxu1  ;;  %v5904_v12 = vcombine.low %v440_v30, %v444_v40 }
 0x220   : > { %v5047_v9 = vmul.f32 0.020408163, %v4955_v46  ;;  %4400 = vmatpush1.bf16.msra.mxu0 %v5944_v56  ;;  %4419 = vmatprep.mubr.bf16.mxu0 %v9178_v35  ;;  %9179 = vst [vmem:[#allocation56_spill] sm:$0xff] %v7918_v50  ;;  %v588_v46 = vld [vmem:[%s6891_s28 + $0x7b8] sm:$0xff]  ;;  %9180 = vst [vmem:[#allocation49_spill] sm:$0xff] %v7922_v41  ;;  %v9193_v41 = vld [vmem:[#allocation18_spill] sm:$0xff] }
 0x221   : > { %4401 = vmatprep.subr.bf16.mxu0 %v5937_v63  ;;  %v4968_v32 = vadd.f32 %v4967_v25, %v4966_v47  ;;  %v432_v56 = vld [vmem:[%s6891_s28 + $0x2d8] sm:$0xff]  ;;  %v7926_v63 = vpop.f32.mrf.mxu0  ;;  %v7930_v25 = vpop.f32.mrf.mxu1  ;;  %v6048_v30 = vcombine.low %v584_v44, %v588_v46 }
 0x222   : > { %4333 = vmatpush2.bf16.msra.mxu1 %v5920_v22  ;;  %v5055_v39 = vadd.f32 1e-05, %v5047_v9  ;;  %v436_v62 = vld [vmem:[%s6891_s28 + $0x2f8] sm:$0xff]  ;;  %v6049_v22 = vcombine.high %v584_v44, %v588_v46  ;;  %9181 = vst [vmem:[#allocation46_spill] sm:$0xff] %v7926_v63  ;;  %9182 = vst [vmem:[#allocation57_spill] sm:$0xff] %v7930_v25 }
 0x223   : > { %4334 = vmatprep.subr.bf16.mxu1 %v5913_v21  ;;  %v5048_v33 = vmul.f32 0.020408163, %v4968_v32  ;;  %v5897_v47 = vcombine.high %v432_v56, %v436_v62  ;;  %v576_v21 = vld [vmem:[%s6891_s28 + $0x758] sm:$0xff]  ;;  %v5896_v20 = vcombine.low %v432_v56, %v436_v62  ;;  %v7934_v40 = vpop.f32.mrf.mxu0  ;;  %v7939_v32 = vpop.f32.mrf.mxu1 }
 0x224   : > { %6454 = vrsqrt.f32 %v5055_v39  ;;  %4402 = vmatpush1.bf16.msra.mxu0 %v5936_v1  ;;  %v580_v9 = vld [vmem:[%s6891_s28 + $0x778] sm:$0xff]  ;;  %9183 = vst [vmem:[#allocation51_spill] sm:$0xff] %v7934_v40  ;;  %9184 = vst [vmem:[#allocation47_spill] sm:$0xff] %v7939_v32 }
 0x225   : > { %4403 = vmatprep.subr.bf16.mxu0 %v6057_v29  ;;  %v424_v35 = vld [vmem:[%s6891_s28 + $0x298] sm:$0xff]  ;;  %v5056_v1 = vadd.f32 1e-05, %v5048_v33  ;;  %v6041_v14 = vcombine.high %v576_v21, %v580_v9  ;;  %v6040_v46 = vcombine.low %v576_v21, %v580_v9  ;;  %v7950_v28 = vpop.f32.mrf.mxu1 }
 0x226   : > { %4335 = vmatpush2.bf16.msra.mxu1 %v5912_v13  ;;  %v428_v39 = vld [vmem:[%s6891_s28 + $0x2b8] sm:$0xff]  ;;  %v7937_v13 = vsub.s32 0, %v7724_v55  ;;  %9186 = vst [vmem:[#allocation52_spill] sm:$0xff] %v7950_v28 }
 0x227   : > { %4336 = vmatprep.subr.bf16.mxu1 %v5905_v51  ;;  %v5889_v29 = vcombine.high %v424_v35, %v428_v39  ;;  %v568_v51 = vld [vmem:[%s6891_s28 + $0x718] sm:$0xff]  ;;  %6456 = vrsqrt.f32 %v5056_v1  ;;  %v5888_v56 = vcombine.low %v424_v35, %v428_v39 }
 0x228   : > { %4404 = vmatpush2.bf16.msra.mxu0 %v6056_v11  ;;  %v572_v16 = vld [vmem:[%s6891_s28 + $0x738] sm:$0xff]  ;;  %v7946_v11 = vpop.f32.mrf.mxu0 }
 0x229   : > { %4405 = vmatprep.subr.bf16.mxu0 %v6049_v22  ;;  %v416_v33 = vld [vmem:[%s6891_s28 + $0x258] sm:$0xff]  ;;  %v6033_v62 = vcombine.high %v568_v51, %v572_v16  ;;  %9185 = vst [vmem:[#allocation58_spill] sm:$0xff] %v7946_v11  ;;  %v5079_v22 = vsub.s32 1, %v7724_v55 }
 0x22a   : > { %4337 = vmatpush2.bf16.msra.mxu1 %v5904_v12  ;;  %v420_v44 = vld [vmem:[%s6891_s28 + $0x278] sm:$0xff]  ;;  %v5076_v12 = vrot.slane %v5071_v52, %v7937_v13  ;;  %v7960_v55 = vpop.f32.mrf.mxu0 }
 0x22b   : > { %4338 = vmatprep.subr.bf16.mxu1 %v5897_v47  ;;  %v5881_v47 = vcombine.high %v416_v33, %v420_v44  ;;  %v560_v1 = vld [vmem:[%s6891_s28 + $0x6d8] sm:$0xff]  ;;  %9187 = vst [vmem:[#allocation48_spill] sm:$0xff] %v7960_v55 }
 0x22c   : > { %4406 = vmatpush2.bf16.msra.mxu0 %v6048_v30  ;;  %v564_v21 = vld [vmem:[%s6891_s28 + $0x6f8] sm:$0xff]  ;;  %v6032_v30 = vcombine.low %v568_v51, %v572_v16  ;;  %v7971_v16 = vrot.slane %v5071_v52, %v5079_v22  ;;  %v7973_v51 = vpop.f32.mrf.mxu1 }
 0x22d   : > { %4407 = vmatprep.subr.bf16.mxu0 %v6041_v14  ;;  %v408_v9 = vld [vmem:[%s6891_s28 + $0x218] sm:$0xff]  ;;  %v6025_v17 = vcombine.high %v560_v1, %v564_v21  ;;  %9188 = vst [vmem:[#allocation53_spill] sm:$0xff] %v7973_v51  ;;  %v6120_v51 = vcombine.low %v7966_v57, %v7969_v45 }
 0x22e   : > { %4339 = vmatpush2.bf16.msra.mxu1 %v5896_v20  ;;  %v412_v35 = vld [vmem:[%s6891_s28 + $0x238] sm:$0xff] }
 0x22f   : > { %4340 = vmatprep.subr.bf16.mxu1 %v5889_v29  ;;  %v5217_v39 = vld [vmem:[%s6901_s27] sm:$0xff]  ;;  %v5880_v29 = vcombine.low %v416_v33, %v420_v44  ;;  %v5872_v55 = vcombine.low %v408_v9, %v412_v35 }
 0x230   : > { %4408 = vmatpush2.bf16.msra.mxu0 %v6040_v46  ;;  %v7958_v20 = vld [vmem:[%s6891_s28 + $0x698] sm:$0xff]  ;;  %v5873_v46 = vcombine.high %v408_v9, %v412_v35 }
 0x231   : > { %v6455_v14 = vpop.eup %6454  ;;  %4409 = vmatprep.subr.bf16.mxu0 %v6033_v62  ;;  %v7963_v6 = vld [vmem:[%s6891_s28 + $0x6b8] sm:$0xff]  ;;  %v7982_v62 = vrot.slane %v5217_v39, %v5079_v22 }
 0x232   : > { %4341 = vmatpush2.bf16.msra.mxu1 %v5888_v56  ;;  %v5113_v36 = vmul.f32 %v6455_v14, %v5076_v12  ;;  %v7976_v33 = vld [vmem:[%s6891_s28 + $0x658] sm:$0xff]  ;;  %v5222_v56 = vrot.slane %v5217_v39, %v7937_v13  ;;  %v6024_v12 = vcombine.low %v560_v1, %v564_v21  ;;  %v6017_v14 = vcombine.high %v7958_v20, %v7963_v6 }
 0x233   : > { %4342 = vmatprep.subr.bf16.mxu1 %v5881_v47  ;;  %v7979_v44 = vld [vmem:[%s6891_s28 + $0x678] sm:$0xff]  ;;  %v6016_v47 = vcombine.low %v7958_v20, %v7963_v6  ;;  %v6121_v1 = vcombine.high %v7966_v57, %v7969_v45  ;;  %v8018_v57 = vpop.f32.mrf.mxu1 }
 0x234   : > { %v5124_v52 = vrot.slane %v5113_v36, %v7937_v13  ;;  %4410 = vmatpush2.bf16.msra.mxu0 %v6032_v30  ;;  %v7992_v11 = vld [vmem:[%s6891_s28 + $0x998] sm:$0xff]  ;;  %v7997_v36 = vpop.f32.mrf.mxu0  ;;  %v6009_v21 = vcombine.high %v7976_v33, %v7979_v44  ;;  %9190 = vst [vmem:[#allocation16_spill] sm:$0xff] %v8018_v57  ;;  %v6457_v40 = vpop.eup %6456 }
 0x235   : > { %v7995_v22 = vld [vmem:[%s6891_s28 + $0x9b8] sm:$0xff]  ;;  %4411 = vmatprep.subr.bf16.mxu0 %v6025_v17  ;;  %9189 = vst [vmem:[#allocation50_spill] sm:$0xff] %v7997_v36  ;;  %v8065_v24 = vpop.f32.mrf.mxu1 }
 0x236   : > { %4343 = vmatpush2.bf16.msra.mxu1 %v5880_v29  ;;  %v8006_v9 = vld [vmem:[%s6891_s28 + $0x618] sm:$0xff]  ;;  %v5153_v17 = vmul.f32 %v5124_v52, %v7748_v60  ;;  %v5161_v30 = vmul.f32 %v5124_v52, %v7751_v34  ;;  %v5169_v20 = vmul.f32 %v5124_v52, %v7754_v48  ;;  %v5177_v45 = vmul.f32 %v5124_v52, %v7759_v7 }
 0x237   : > { %v8009_v35 = vld [vmem:[%s6891_s28 + $0x638] sm:$0xff]  ;;  %4344 = vmatprep.subr.bf16.mxu1 %v5873_v46  ;;  %v5185_v28 = vmul.f32 %v5124_v52, %v7775_v27  ;;  %v5193_v60 = vmul.f32 %v5124_v52, %v7801_v54  ;;  %v5201_v34 = vmul.f32 %v5124_v52, %v7826_v10  ;;  %v5209_v48 = vmul.f32 0.0, %v5124_v52  ;;  %v8042_v10 = vpop.f32.mrf.mxu0  ;;  %9192 = vst [vmem:[#allocation59_spill] sm:$0xff] %v8065_v24 }
 0x238   : > { %v8012_v39 = vld [vmem:[%s6891_s28 + $0x958] sm:$0xff]  ;;  %4412 = vmatpush2.bf16.msra.mxu0 %v6024_v12  ;;  %v6112_v7 = vcombine.low %v7992_v11, %v7995_v22  ;;  %v6113_v46 = vcombine.high %v7992_v11, %v7995_v22  ;;  %v6001_v27 = vcombine.high %v8006_v9, %v8009_v35  ;;  %v8040_v54 = vadd.f32 %v5222_v56, %v5153_v17 }
 0x239   : > { %v8021_v29 = vld [vmem:[%s6891_s28 + $0x978] sm:$0xff]  ;;  %9191 = vst [vmem:[#allocation17_spill] sm:$0xff] %v8042_v10  ;;  %v8059_v32 = vadd.f32 %v5222_v56, %v5161_v30  ;;  %v8063_v10 = vadd.f32 %v5222_v56, %v5177_v45  ;;  %4413 = vmatprep.subr.bf16.mxu0 %v6017_v14  ;;  %v8076_v25 = vadd.f32 %v5222_v56, %v5185_v28  ;;  %v8091_v24 = vpop.f32.mrf.mxu0 }
 0x23a   : > { %v8024_v6 = vld [vmem:[%s6891_s28 + $0x918] sm:$0xff]  ;;  %4345 = vmatpush2.bf16.msra.mxu1 %v5872_v55  ;;  %v6105_v11 = vcombine.high %v8012_v39, %v8021_v29  ;;  %v8061_v55 = vadd.f32 %v5222_v56, %v5169_v20  ;;  %v8078_v50 = vadd.f32 %v5222_v56, %v5193_v60  ;;  %v8080_v30 = vadd.f32 %v5222_v56, %v5201_v34 }
 0x23b   : > { %v8027_v36 = vld [vmem:[%s6891_s28 + $0x938] sm:$0xff]  ;;  %4460 = vmatprep.subr.bf16.mxu1 %v6121_v1  ;;  %v8082_v20 = vadd.f32 %v5222_v56, %v5209_v48  ;;  %v5114_v45 = vmul.f32 %v6457_v40, %v7971_v16  ;;  %v5323_v28 = vmax.f32 %v8040_v54, 0.0  ;;  %v5331_v16 = vmax.f32 %v8059_v32, 0.0  ;;  %v8103_v48 = vpop.f32.mrf.mxu1 }
 0x23c   : > { %v8051_v22 = vld [vmem:[%s6891_s28 + $0xdd8] sm:$0xff]  ;;  %4414 = vmatpush2.bf16.msra.mxu0 %v6016_v47  ;;  %v6097_v14 = vcombine.high %v8024_v6, %v8027_v36  ;;  %v5339_v47 = vmax.f32 %v8061_v55, 0.0  ;;  %v5347_v60 = vmax.f32 %v8063_v10, 0.0  ;;  %v5363_v54 = vmax.f32 %v8078_v50, 0.0 }
 0x23d   : > { %v8054_v57 = vld [vmem:[%s6891_s28 + $0xdf8] sm:$0xff]  ;;  %4347 = vmatmul.mubr.bf16.vlgmr.msra.gmra.mxu1 %v9193_v41  ;;  %4415 = vmatprep.subr.bf16.mxu0 %v6009_v21  ;;  %v5128_v34 = vrot.slane %v5114_v45, %v7937_v13  ;;  %v5355_v21 = vmax.f32 %v8076_v25, 0.0  ;;  %v5371_v40 = vmax.f32 %v8080_v30, 0.0  ;;  %v5379_v32 = vmax.f32 %v8082_v20, 0.0  ;;  %v8120_v20 = vpop.f32.mrf.mxu0 }
 0x23e   : > { %v8057_v17 = vld [vmem:[%s6891_s28 + $0x8d8] sm:$0xff]  ;;  %v6248_v1 = vcombine.low %v8051_v22, %v8054_v57  ;;  %4461 = vmatpush1.bf16.msra.mxu1 %v6120_v51  ;;  %v6249_v56 = vcombine.high %v8051_v22, %v8054_v57  ;;  %v9194_v51 = vld [vmem:[#allocation20_spill] sm:$0xff] }
 0x23f   : > { %v8068_v12 = vld [vmem:[%s6891_s28 + $0x8f8] sm:$0xff]  ;;  %4462 = vmatprep.subr.bf16.mxu1 %v6113_v46  ;;  %4356 = vmatprep.mubr.bf16.mxu1 %v9194_v51  ;;  %v5154_v55 = vmul.f32 %v5128_v34, %v7780_v37  ;;  %v5162_v10 = vmul.f32 %v5128_v34, %v7788_v3  ;;  %v5170_v45 = vmul.f32 %v5128_v34, %v7792_v5  ;;  %v5210_v51 = vmul.f32 0.0, %v5128_v34 }
 0x240   : > { %v8071_v63 = vld [vmem:[%s6891_s28 + $0xd98] sm:$0xff]  ;;  %v5178_v41 = vmul.f32 %v5128_v34, %v7807_v18  ;;  %v9195_v46 = vcombine.low %v7976_v33, %v7979_v44  ;;  %v5186_v25 = vmul.f32 %v5128_v34, %v7819_v8  ;;  %v5194_v50 = vmul.f32 %v5128_v34, %v7843_v15  ;;  %v8127_v33 = vpop.f32.mrf.mxu1 }
 0x241   : > { %v8074_v52 = vld [vmem:[%s6891_s28 + $0xdb8] sm:$0xff]  ;;  %v5202_v30 = vmul.f32 %v5128_v34, %v7861_v26  ;;  %v5260_v37 = vadd.f32 %v7982_v62, %v5154_v55  ;;  %v5268_v3 = vadd.f32 %v7982_v62, %v5162_v10  ;;  %v5276_v5 = vadd.f32 %v7982_v62, %v5170_v45 }
 0x242   : > { %4416 = vmatpush2.bf16.msra.mxu0 %v9195_v46  ;;  %4463 = vmatpush1.bf16.msra.mxu1 %v6112_v7  ;;  %v5284_v18 = vadd.f32 %v7982_v62, %v5178_v41  ;;  %v5292_v8 = vadd.f32 %v7982_v62, %v5186_v25  ;;  %v5300_v15 = vadd.f32 %v7982_v62, %v5194_v50  ;;  %v9197_v41 = vld [vmem:[#allocation22_spill] sm:$0xff]  ;;  %v8137_v50 = vpop.f32.mrf.mxu0 }
 0x243   : > { %4417 = vmatprep.subr.bf16.mxu0 %v6001_v27  ;;  %4464 = vmatprep.subr.bf16.mxu1 %v6105_v11  ;;  %v5308_v26 = vadd.f32 %v7982_v62, %v5202_v30  ;;  %v5316_v44 = vadd.f32 %v7982_v62, %v5210_v51  ;;  %v5324_v7 = vmax.f32 %v5260_v37, 0.0  ;;  %v5332_v27 = vmax.f32 %v5268_v3, 0.0  ;;  %v8142_v37 = vpop.f32.mrf.mxu1  ;;  %v768_v3 = vld [vmem:[%s6891_s28 + $0xd58] sm:$0xff] }
 0x244   : > { %v5340_v34 = vmax.f32 %v5276_v5, 0.0  ;;  %v5348_v55 = vmax.f32 %v5284_v18, 0.0  ;;  %v9196_v10 = vcombine.low %v8006_v9, %v8009_v35  ;;  %v5356_v11 = vmax.f32 %v5292_v8, 0.0  ;;  %v772_v5 = vld [vmem:[%s6891_s28 + $0xd78] sm:$0xff] }
 0x245   : > { %4357 = vmatmul.mubr.bf16.gmra.mxu1 %v9197_v41  ;;  %v5364_v45 = vmax.f32 %v5300_v15, 0.0  ;;  %v5372_v46 = vmax.f32 %v5308_v26, 0.0  ;;  %v5380_v25 = vmax.f32 %v5316_v44, 0.0  ;;  %v9198_v62 = vcombine.low %v8012_v39, %v8021_v29  ;;  %v9199_v39 = vld [vmem:[#allocation19_spill] sm:$0xff] }
 0x246   : > { %4418 = vmatpush2.bf16.msra.mxu0 %v9196_v10  ;;  %v6346_v30 = vpack.c.bf16 %v5324_v7, %v5323_v28  ;;  %v6350_v9 = vpack.c.bf16 %v5332_v27, %v5331_v16  ;;  %v6354_v35 = vpack.c.bf16 %v5340_v34, %v5339_v47  ;;  %v6358_v51 = vpack.c.bf16 %v5348_v55, %v5347_v60  ;;  %v616_v29 = vld [vmem:[%s6891_s28 + $0x898] sm:$0xff] }
 0x247   : > { %4465 = vmatpush1.bf16.msra.mxu1 %v9198_v62  ;;  %4533 = vmatprep.subr.bf16.mxu0 %v6249_v56  ;;  %v6362_v18 = vpack.c.bf16 %v5356_v11, %v5355_v21  ;;  %v6366_v8 = vpack.c.bf16 %v5364_v45, %v5363_v54  ;;  %v6370_v15 = vpack.c.bf16 %v5372_v46, %v5371_v40  ;;  %v8146_v44 = vpop.f32.mrf.mxu0  ;;  %v620_v56 = vld [vmem:[%s6891_s28 + $0x8b8] sm:$0xff]  ;;  %v9200_v40 = vld [vmem:[#allocation21_spill] sm:$0xff] }
 0x248   : > { %4466 = vmatprep.subr.bf16.mxu1 %v6097_v14  ;;  %v6374_v26 = vpack.c.bf16 %v5380_v25, %v5379_v32  ;;  %5579 = vst [vmem:[%s8153_s7] sm:$0xff] %v6346_v30  ;;  %5583 = vst [vmem:[%s8153_s7 + $0x20] sm:$0xff] %v6350_v9  ;;  %v6240_v28 = vcombine.low %v8071_v63, %v8074_v52  ;;  %v9201_v16 = vcombine.low %v8024_v6, %v8027_v36  ;;  %v760_v36 = vld [vmem:[%s6891_s28 + $0xd18] sm:$0xff]  ;;  %v9204_v32 = vld [vmem:[#allocation24_spill] sm:$0xff] }
 0x249   : > { %4420 = vmatmul.mubr.bf16.vlgmr.msra.gmra.mxu0 %v9199_v39  ;;  %5587 = vst [vmem:[%s8153_s7 + $0x40] sm:$0xff] %v6354_v35  ;;  %5591 = vst [vmem:[%s8153_s7 + $0x60] sm:$0xff] %v6358_v51  ;;  %v8159_v14 = vpop.f32.mrf.mxu1  ;;  %v8174_v47 = vpop.f32.mrf.mxu0  ;;  %v6088_v57 = vcombine.low %v8057_v17, %v8068_v12  ;;  %v9202_v22 = vcombine.high %v8071_v63, %v8074_v52  ;;  %v9203_v21 = vcombine.high %v8057_v17, %v8068_v12  ;;  %v764_v6 = vld [vmem:[%s6891_s28 + $0xd38] sm:$0xff]  ;;  %v9205_v17 = vld [vmem:[#allocation26_spill] sm:$0xff] }
 0x24a   : > { %4534 = vmatpush1.bf16.msra.mxu0 %v6248_v1  ;;  %4429 = vmatprep.mubr.bf16.mxu0 %v9200_v40  ;;  %5595 = vst [vmem:[%s8153_s7 + $0x80] sm:$0xff] %v6362_v18  ;;  %5599 = vst [vmem:[%s8153_s7 + $0xa0] sm:$0xff] %v6366_v8  ;;  %v6233_v1 = vcombine.high %v768_v3, %v772_v5  ;;  %v6081_v54 = vcombine.high %v616_v29, %v620_v56  ;;  %v8192_v27 = vld [vmem:[%s6891_s28 + $0x858] sm:$0xff]  ;;  %v9206_v35 = vld [vmem:[#allocation28_spill] sm:$0xff] }
 0x24b   : > { %5603 = vst [vmem:[%s8153_s7 + $0xc0] sm:$0xff] %v6370_v15  ;;  %5607 = vst [vmem:[%s8153_s7 + $0xe0] sm:$0xff] %v6374_v26  ;;  %4467 = vmatpush1.bf16.msra.mxu1 %v9201_v16  ;;  %4535 = vmatprep.subr.bf16.mxu0 %v9202_v22  ;;  %v8181_v60 = vpop.f32.mrf.mxu1  ;;  %v8189_v7 = vpop.f32.mrf.mxu0  ;;  %v612_v63 = vld [vmem:[%s6891_s28 + $0x878] sm:$0xff]  ;;  %v6232_v12 = vcombine.low %v768_v3, %v772_v5  ;;  %v6080_v55 = vcombine.low %v616_v29, %v620_v56  ;;  %v9208_v16 = vld [vmem:[#allocation25_spill] sm:$0xff] }
 0x24c   : > { %4468 = vmatprep.subr.bf16.mxu1 %v9203_v21  ;;  %4366 = vmatprep.mubr.bf16.mxu1 %v9204_v32  ;;  %v6225_v10 = vcombine.high %v760_v36, %v764_v6  ;;  %v8199_v41 = vld [vmem:[%s6891_s28 + $0x818] sm:$0xff]  ;;  %v6073_v25 = vcombine.high %v8192_v27, %v612_v63  ;;  %v6072_v26 = vcombine.low %v8192_v27, %v612_v63 }
 0x24d   : > { %v3914_v52 = vpop.f32.mrf.mxu1  ;;  %4367 = vmatmul.mubr.bf16.gmra.mxu1 %v9205_v17  ;;  %v8196_v34 = vpop.f32.mrf.mxu0  ;;  %v8202_v11 = vld [vmem:[%s6891_s28 + $0x838] sm:$0xff]  ;;  %v6224_v39 = vcombine.low %v760_v36, %v764_v6  ;;  %v3842_v17 = vadd.f32 %v7888_v2, %v7881_v23  ;;  %v3838_v2 = vadd.f32 %v7875_v31, %v7830_v61  ;;  %v9209_v61 = vld [vmem:[#allocation49_spill] sm:$0xff]  ;;  %v9210_v31 = vld [vmem:[#allocation56_spill] sm:$0xff] }
 0x24e   : > { %4536 = vmatpush1.bf16.msra.mxu0 %v6240_v28  ;;  %v8205_v45 = vld [vmem:[%s6891_s28 + $0xcd8] sm:$0xff]  ;;  %4376 = vmatprep.mubr.bf16.mxu1 %v9206_v35  ;;  %v6064_v29 = vcombine.low %v8199_v41, %v8202_v11  ;;  %v6065_v22 = vcombine.high %v8199_v41, %v8202_v11  ;;  %v3848_v35 = vadd.f32 %v7906_v4, %v7901_v58 }
 0x24f   : > { %4469 = vmatpush1.bf16.msra.mxu1 %v6088_v57  ;;  %4537 = vmatprep.subr.bf16.mxu0 %v6233_v1  ;;  %v3916_v46 = vpop.f32.mrf.mxu1  ;;  %v8209_v62 = vld [vmem:[%s6891_s28 + $0xcf8] sm:$0xff]  ;;  %v8218_v51 = vpop.f32.mrf.mxu0  ;;  %v3852_v58 = vadd.f32 %v9210_v31, %v9209_v61  ;;  %v3911_v4 = vadd.f32 %v8159_v14, %v3838_v2  ;;  %v9214_v14 = vld [vmem:[#allocation29_spill] sm:$0xff]  ;;  %v9217_v31 = vld [vmem:[#allocation52_spill] sm:$0xff] }
 0x250   : > { %4470 = vmatprep.subr.bf16.mxu1 %v6081_v54  ;;  %v8212_v30 = vld [vmem:[%s6891_s28 + $0xbd8] sm:$0xff]  ;;  %v6216_v1 = vcombine.low %v8205_v45, %v8209_v62  ;;  %v6217_v21 = vcombine.high %v8205_v45, %v8209_v62  ;;  %v3844_v45 = vadd.f32 %v7897_v38, %v7894_v19  ;;  %v3840_v38 = vadd.f32 %v7883_v0, %v7856_v43  ;;  %v9212_v0 = vld [vmem:[#allocation57_spill] sm:$0xff] }
 0x251   : > { %v8215_v9 = vld [vmem:[%s6891_s28 + $0xbf8] sm:$0xff]  ;;  %v3920_v15 = vpop.f32.mrf.mxu1  ;;  %v8243_v57 = vpop.f32.mrf.mxu0 }
 0x252   : > { %v8221_v3 = vld [vmem:[%s6891_s28 + $0xc98] sm:$0xff]  ;;  %4538 = vmatpush1.bf16.msra.mxu0 %v6232_v12  ;;  %v6184_v32 = vcombine.low %v8212_v30, %v8215_v9  ;;  %v6185_v27 = vcombine.high %v8212_v30, %v8215_v9 }
 0x253   : > { %v8224_v5 = vld [vmem:[%s6891_s28 + $0xcb8] sm:$0xff]  ;;  %4471 = vmatpush1.bf16.msra.mxu1 %v6080_v55  ;;  %4539 = vmatprep.subr.bf16.mxu0 %v6225_v10  ;;  %v3922_v6 = vpop.f32.mrf.mxu1  ;;  %v3997_v55 = vpop.f32.mrf.mxu0 }
 0x254   : > { %v9207_v18 = vld [vmem:[#allocation23_spill] sm:$0xff]  ;;  %4472 = vmatprep.subr.bf16.mxu1 %v6073_v25  ;;  %v6208_v63 = vcombine.low %v8221_v3, %v8224_v5  ;;  %v6209_v12 = vcombine.high %v8221_v3, %v8224_v5  ;;  %v3915_v3 = vadd.f32 %v3914_v52, %v3842_v17  ;;  %v3850_v5 = vadd.f32 %v7908_v53, %v7912_v42  ;;  %v9213_v53 = vld [vmem:[#allocation46_spill] sm:$0xff] }
 0x255   : > { %4430 = vmatmul.mubr.bf16.gmra.mxu0 %v9207_v18  ;;  %v8228_v8 = vld [vmem:[%s6891_s28 + $0xb98] sm:$0xff]  ;;  %v3924_v25 = vpop.f32.mrf.mxu1  ;;  %4377 = vmatmul.mubr.bf16.gmra.mxu1 %v7061_v59  ;;  %v3999_v19 = vpop.f32.mrf.mxu0  ;;  %v3917_v18 = vadd.f32 %v3916_v46, %v3844_v45  ;;  %v3921_v52 = vadd.f32 %v3920_v15, %v3848_v35  ;;  %v3854_v46 = vadd.f32 %v9213_v53, %v9212_v0 }
 0x256   : > { %v8234_v56 = vld [vmem:[%s6891_s28 + $0xbb8] sm:$0xff]  ;;  %4439 = vmatprep.mubr.bf16.mxu0 %v9208_v16  ;;  %4540 = vmatpush1.bf16.msra.mxu0 %v6224_v39  ;;  %v8308_v2 = vadd.f32 %v8189_v7, %v3915_v3  ;;  %v3925_v35 = vadd.f32 %v3924_v25, %v3852_v58  ;;  %v9219_v7 = vld [vmem:[#allocation53_spill] sm:$0xff]  ;;  %v9220_v3 = vld [vmem:[#allocation48_spill] sm:$0xff]  ;;  %v8320_v25 = vadd.f32 %v8146_v44, %v3911_v4 }
 0x257   : > { %v8237_v28 = vld [vmem:[%s6891_s28 + $0xc58] sm:$0xff]  ;;  %v6176_v10 = vcombine.low %v8228_v8, %v8234_v56  ;;  %v6177_v41 = vcombine.high %v8228_v8, %v8234_v56  ;;  %4473 = vmatpush1.bf16.msra.mxu1 %v6072_v26  ;;  %4541 = vmatprep.subr.bf16.mxu0 %v6217_v21  ;;  %v3926_v59 = vpop.f32.mrf.mxu1  ;;  %v4003_v26 = vpop.f32.mrf.mxu0  ;;  %v3862_v0 = vadd.f32 %v9220_v3, %v9219_v7 }
 0x258   : > { %v8240_v40 = vld [vmem:[%s6891_s28 + $0xc78] sm:$0xff]  ;;  %4474 = vmatprep.subr.bf16.mxu1 %v6065_v22  ;;  %4492 = vmatprep.mubr.bf16.mxu1 %v7084_v49  ;;  %v3913_v49 = vadd.f32 %v8181_v60, %v3840_v38  ;;  %v3923_v22 = vadd.f32 %v3922_v6, %v3850_v5  ;;  %v8313_v6 = vadd.f32 %v8196_v34, %v3917_v18  ;;  %v9221_v18 = vld [vmem:[#allocation16_spill] sm:$0xff] }
 0x259   : > { %v8252_v54 = vld [vmem:[%s6891_s28 + $0xb58] sm:$0xff]  ;;  %v6200_v11 = vcombine.low %v8237_v28, %v8240_v40  ;;  %v6201_v62 = vcombine.high %v8237_v28, %v8240_v40  ;;  %v3930_v21 = vpop.f32.mrf.mxu1  ;;  %v4005_v61 = vpop.f32.mrf.mxu0  ;;  %v3872_v28 = vadd.f32 %v8120_v20, %v8127_v33 }
 0x25a   : > { %v8255_v36 = vld [vmem:[%s6891_s28 + $0xb78] sm:$0xff]  ;;  %4542 = vmatpush1.bf16.msra.mxu0 %v6216_v1  ;;  %v3927_v1 = vadd.f32 %v3926_v59, %v3854_v46  ;;  %v8334_v46 = vadd.f32 %v8174_v47, %v3913_v49 }
 0x25b   : > { %v6168_v23 = vcombine.low %v8252_v54, %v8255_v36  ;;  %v6169_v39 = vcombine.high %v8252_v54, %v8255_v36  ;;  %v8295_v16 = vld [vmem:[%s6891_s28 + $0xc18] sm:$0xff]  ;;  %4475 = vmatpush1.bf16.msra.mxu1 %v6064_v29  ;;  %4543 = vmatprep.subr.bf16.mxu0 %v6209_v12  ;;  %v3932_v38 = vpop.f32.mrf.mxu1  ;;  %v8323_v29 = vadd.f32 %v8218_v51, %v3921_v52  ;;  %v4007_v58 = vpop.f32.mrf.mxu0 }
 0x25c   : > { %v8298_v43 = vld [vmem:[%s6891_s28 + $0xc38] sm:$0xff]  ;;  %4476 = vmatprep.subr.bf16.mxu1 %v6185_v27  ;;  %v9222_v27 = vld [vmem:[#allocation50_spill] sm:$0xff]  ;;  %v4632_v51 = vadd.f32 %v8308_v2, %v8320_v25  ;;  %v8341_v52 = vadd.f32 %v3997_v55, %v3925_v35  ;;  %v8348_v49 = vadd.f32 %v3999_v19, %v3927_v1 }
 0x25d   : > { %v9211_v42 = vld [vmem:[#allocation27_spill] sm:$0xff]  ;;  %v6193_v5 = vcombine.high %v8295_v16, %v8298_v43  ;;  %v3864_v59 = vadd.f32 %v9222_v27, %v9221_v18  ;;  %v3934_v4 = vpop.f32.mrf.mxu1  ;;  %v4009_v47 = vpop.f32.mrf.mxu0  ;;  %v6192_v55 = vcombine.low %v8295_v16, %v8298_v43  ;;  %v3870_v16 = vadd.f32 %v8091_v24, %v8103_v48 }
 0x25e   : > { %4440 = vmatmul.mubr.bf16.gmra.mxu0 %v9211_v42  ;;  %v9215_v15 = vld [vmem:[#allocation47_spill] sm:$0xff]  ;;  %v9218_v42 = vld [vmem:[#allocation58_spill] sm:$0xff] }
 0x25f   : > { %4449 = vmatprep.mubr.bf16.mxu0 %v9214_v14  ;;  %v9216_v17 = vld [vmem:[#allocation51_spill] sm:$0xff]  ;;  %v3860_v60 = vadd.f32 %v9218_v42, %v9217_v31  ;;  %v8337_v14 = vadd.f32 %v8243_v57, %v3923_v22  ;;  %4544 = vmatpush1.bf16.msra.mxu0 %v6208_v63  ;;  %v4645_v57 = vadd.f32 %v8313_v6, %v8334_v46  ;;  %v3936_v63 = vpop.f32.mrf.mxu1 }
 0x260   : > { %v3858_v45 = vadd.f32 %v9216_v17, %v9215_v15  ;;  %v8326_v53 = vld [vmem:[%s6891_s28 + $0xf18] sm:$0xff]  ;;  %4477 = vmatpush2.bf16.msra.mxu1 %v6184_v32  ;;  %4545 = vmatprep.subr.bf16.mxu0 %v6201_v62  ;;  %v9224_v32 = vld [vmem:[#allocation17_spill] sm:$0xff]  ;;  %v4633_v62 = vadd.f32 %v4632_v51, %v8323_v29  ;;  %v3937_v19 = vadd.f32 %v3936_v63, %v3864_v59  ;;  %v4013_v17 = vpop.f32.mrf.mxu0 }
 0x261   : > { %v8329_v34 = vld [vmem:[%s6891_s28 + $0xf38] sm:$0xff]  ;;  %v3933_v44 = vadd.f32 %v3932_v38, %v3860_v60  ;;  %4478 = vmatprep.subr.bf16.mxu1 %v6177_v41  ;;  %v9225_v41 = vld [vmem:[#allocation30_spill] sm:$0xff]  ;;  %v4646_v43 = vadd.f32 %v4645_v57, %v8337_v14  ;;  %v3940_v42 = vpop.f32.mrf.mxu1 }
 0x262   : > { %v3931_v12 = vadd.f32 %v3930_v21, %v3858_v45  ;;  %v3935_v21 = vadd.f32 %v3934_v4, %v3862_v0  ;;  %v6289_v30 = vcombine.high %v8326_v53, %v8329_v34  ;;  %v9223_v9 = vld [vmem:[#allocation59_spill] sm:$0xff]  ;;  %v4634_v60 = vadd.f32 %v4633_v62, %v8341_v52  ;;  %v4015_v24 = vpop.f32.mrf.mxu0 }
 0x263   : > { %v3868_v22 = vadd.f32 %v9224_v32, %v9223_v9  ;;  %v696_v45 = vld [vmem:[%s6891_s28 + $0xb18] sm:$0xff]  ;;  %v8368_v31 = vadd.f32 %v4005_v61, %v3933_v44  ;;  %4546 = vmatpush1.bf16.msra.mxu0 %v6200_v11  ;;  %v4647_v40 = vadd.f32 %v4646_v43, %v8348_v49  ;;  %v3942_v11 = vpop.f32.mrf.mxu1  ;;  %v8390_v56 = vadd.f32 %v4009_v47, %v3937_v19 }
 0x264   : > { %v8360_v15 = vadd.f32 %v4003_v26, %v3931_v12  ;;  %v700_v35 = vld [vmem:[%s6891_s28 + $0xb38] sm:$0xff]  ;;  %v8376_v1 = vadd.f32 %v4007_v58, %v3935_v21  ;;  %4479 = vmatpush2.bf16.msra.mxu1 %v6176_v10  ;;  %4547 = vmatprep.subr.bf16.mxu0 %v6193_v5  ;;  %v3943_v10 = vadd.f32 %v3942_v11, %v3870_v16  ;;  %v4017_v0 = vpop.f32.mrf.mxu0 }
 0x265   : > { %v9226_v26 = vld [vmem:[#allocation31_spill] sm:$0xff]  ;;  %v3941_v38 = vadd.f32 %v3940_v42, %v3868_v22  ;;  %4480 = vmatprep.subr.bf16.mxu1 %v6169_v39  ;;  %v6160_v7 = vcombine.low %v696_v45, %v700_v35  ;;  %v6161_v3 = vcombine.high %v696_v45, %v700_v35  ;;  %v3874_v12 = vadd.f32 %v8137_v50, %v8142_v37  ;;  %v3944_v39 = vpop.f32.mrf.mxu1 }
 0x266   : > { %4450 = vmatmul.mubr.bf16.gmra.mxu0 %v9225_v41  ;;  %v816_v48 = vld [vmem:[%s6891_s28 + $0xed8] sm:$0xff]  ;;  %v4635_v8 = vadd.f32 %v4634_v60, %v8360_v15  ;;  %v4648_v58 = vadd.f32 %v4647_v40, %v8368_v31  ;;  %v6288_v18 = vcombine.low %v8326_v53, %v8329_v34  ;;  %v3945_v44 = vadd.f32 %v3944_v39, %v3872_v28  ;;  %v4019_v21 = vpop.f32.mrf.mxu0 }
 0x267   : > { %6302 = vmatprep.mubr.msk.bf16.mxu0 %vm3425_vm0, %v9226_v26  ;;  %v820_v61 = vld [vmem:[%s6891_s28 + $0xef8] sm:$0xff]  ;;  %v8392_v5 = vadd.f32 %v4013_v17, %v3941_v38  ;;  %4548 = vmatpush1.bf16.msra.mxu0 %v6192_v55  ;;  %v8402_v4 = vadd.f32 %v4015_v24, %v3943_v10  ;;  %v3946_v51 = vpop.f32.mrf.mxu1 }
 0x268   : > { %v688_v20 = vld [vmem:[%s6891_s28 + $0xad8] sm:$0xff]  ;;  %v6281_v27 = vcombine.high %v816_v48, %v820_v61  ;;  %v4636_v59 = vadd.f32 %v4635_v8, %v8376_v1  ;;  %4481 = vmatpush2.bf16.msra.mxu1 %v6168_v23  ;;  %4555 = vmatprep.subr.bf16.mxu0 %v6289_v30  ;;  %v4649_v53 = vadd.f32 %v4648_v58, %v8390_v56 }
 0x269   : > { %v692_v33 = vld [vmem:[%s6891_s28 + $0xaf8] sm:$0xff]  ;;  %4482 = vmatprep.subr.bf16.mxu1 %v6161_v3  ;;  %v3947_v57 = vadd.f32 %v3946_v51, %v3874_v12  ;;  %v4018_v63 = vadd.f32 %v4017_v0, %v3945_v44  ;;  %v6280_v36 = vcombine.low %v816_v48, %v820_v61 }
 0x26a   : > { %v808_v50 = vld [vmem:[%s6891_s28 + $0xe98] sm:$0xff]  ;;  %v6153_v47 = vcombine.high %v688_v20, %v692_v33  ;;  %v4637_v34 = vadd.f32 %v4636_v59, %v8392_v5  ;;  %v6152_v54 = vcombine.low %v688_v20, %v692_v33  ;;  %v4650_v30 = vadd.f32 %v4649_v53, %v8402_v4 }
 0x26b   : > { %v812_v37 = vld [vmem:[%s6891_s28 + $0xeb8] sm:$0xff]  ;;  %4556 = vmatpush2.bf16.msra.mxu0 %v6288_v18  ;;  %v4020_v22 = vadd.f32 %v4019_v21, %v3947_v57 }
 0x26c   : > { %v680_v55 = vld [vmem:[%s6891_s28 + $0xa98] sm:$0xff]  ;;  %v6273_v23 = vcombine.high %v808_v50, %v812_v37  ;;  %v4638_v32 = vadd.f32 %v4637_v34, %v4018_v63  ;;  %4483 = vmatpush2.bf16.msra.mxu1 %v6160_v7  ;;  %4557 = vmatprep.subr.bf16.mxu0 %v6281_v27  ;;  %v6272_v43 = vcombine.low %v808_v50, %v812_v37  ;;  %v9227_v63 = vld [vmem:[#allocation32_spill] sm:$0xff] }
 0x26d   : > { %v684_v9 = vld [vmem:[%s6891_s28 + $0xab8] sm:$0xff]  ;;  %4484 = vmatprep.subr.bf16.mxu1 %v6153_v47  ;;  %v4651_v35 = vadd.f32 %v4650_v30, %v4020_v22 }
 0x26e   : > { %v6145_v62 = vcombine.high %v680_v55, %v684_v9  ;;  %v800_v19 = vld [vmem:[%s6891_s28 + $0xe58] sm:$0xff]  ;;  %v4639_v45 = vrot.slane %v4638_v32, 4  ;;  %v6144_v60 = vcombine.low %v680_v55, %v684_v9  ;;  %v9229_v55 = vld [vmem:[#allocation33_spill] sm:$0xff] }
 0x26f   : > { %v804_v17 = vld [vmem:[%s6891_s28 + $0xe78] sm:$0xff]  ;;  %4558 = vmatpush2.bf16.msra.mxu0 %v6280_v36  ;;  %v4652_v26 = vrot.slane %v4651_v35, 4 }
 0x270   : > { %v672_v41 = vld [vmem:[%s6891_s28 + $0xa58] sm:$0xff]  ;;  %v4640_v42 = vadd.f32 %v4639_v45, %v4638_v32  ;;  %4485 = vmatpush2.bf16.msra.mxu1 %v6152_v54  ;;  %4559 = vmatprep.subr.bf16.mxu0 %v6273_v23  ;;  %v6265_v38 = vcombine.high %v800_v19, %v804_v17  ;;  %v6264_v3 = vcombine.low %v800_v19, %v804_v17 }
 0x271   : > { %v676_v16 = vld [vmem:[%s6891_s28 + $0xa78] sm:$0xff]  ;;  %4486 = vmatprep.subr.bf16.mxu1 %v6145_v62  ;;  %v4653_v40 = vadd.f32 %v4652_v26, %v4651_v35  ;;  %v9232_v26 = vld [vmem:[#allocation34_spill] sm:$0xff] }
 0x272   : > { %v6137_v24 = vcombine.high %v672_v41, %v676_v16  ;;  %v792_v48 = vld [vmem:[%s6891_s28 + $0xe18] sm:$0xff]  ;;  %v4641_v28 = vrot.slane %v4640_v42, 2  ;;  %v6136_v0 = vcombine.low %v672_v41, %v676_v16 }
 0x273   : > { %v796_v61 = vld [vmem:[%s6891_s28 + $0xe38] sm:$0xff]  ;;  %4560 = vmatpush2.bf16.msra.mxu0 %v6272_v43  ;;  %v4654_v10 = vrot.slane %v4653_v40, 2 }
 0x274   : > { %v664_v11 = vld [vmem:[%s6891_s28 + $0xa18] sm:$0xff]  ;;  %v4642_v8 = vadd.f32 %v4641_v28, %v4640_v42  ;;  %4487 = vmatpush2.bf16.msra.mxu1 %v6144_v60  ;;  %4561 = vmatprep.subr.bf16.mxu0 %v6265_v38  ;;  %v6257_v20 = vcombine.high %v792_v48, %v796_v61  ;;  %v6256_v39 = vcombine.low %v792_v48, %v796_v61  ;;  %v9233_v60 = vld [vmem:[#allocation40_spill] sm:$0xff]  ;;  %v9235_v61 = vld [vmem:[#allocation41_spill] sm:$0xff] }
 0x275   : > { %v668_v7 = vld [vmem:[%s6891_s28 + $0xa38] sm:$0xff]  ;;  %4488 = vmatprep.subr.bf16.mxu1 %v6137_v24  ;;  %v4655_v58 = vadd.f32 %v4654_v10, %v4653_v40 }
 0x276   : > { %v6129_v33 = vcombine.high %v664_v11, %v668_v7  ;;  %v4643_v12 = vrot.slane %v4642_v8, 1  ;;  %v6128_v59 = vcombine.low %v664_v11, %v668_v7  ;;  %v9234_v38 = vld [vmem:[#allocation35_spill] sm:$0xff] }
 0x277   : > { %4562 = vmatpush2.bf16.msra.mxu0 %v6264_v3  ;;  %v4656_v27 = vrot.slane %v4655_v58, 1 }
 0x278   : > { %v4644_v18 = vadd.f32 %v4643_v12, %v4642_v8  ;;  %4489 = vmatpush2.bf16.msra.mxu1 %v6136_v0  ;;  %4563 = vmatprep.subr.bf16.mxu0 %v6257_v20 }
 0x279   : > { %4490 = vmatprep.subr.bf16.mxu1 %v6129_v33  ;;  %v4657_v50 = vadd.f32 %v4656_v27, %v4655_v58  ;;  %v9237_v27 = vld [vmem:[#allocation43_spill] sm:$0xff] }
 0x27a   : > { %v4712_v44 = vmul.f32 0.020408163, %v4644_v18 }
 0x27b   : > { %4564 = vmatpush2.bf16.msra.mxu0 %v6256_v39  ;;  %v4713_v53 = vmul.f32 0.020408163, %v4657_v50  ;;  %v9236_v39 = vld [vmem:[#allocation38_spill] sm:$0xff] }
 0x27c   : > { %v8423_v37 = vsub.f32 %v8320_v25, %v4712_v44  ;;  %v8426_v51 = vsub.f32 %v8308_v2, %v4712_v44  ;;  %v8429_v21 = vsub.f32 %v8323_v29, %v4712_v44  ;;  %4491 = vmatpush2.bf16.msra.mxu1 %v6128_v59  ;;  %v8432_v47 = vsub.f32 %v8341_v52, %v4712_v44  ;;  %v9228_v29 = vld [vmem:[#allocation36_spill] sm:$0xff]  ;;  %v9238_v59 = vld [vmem:[#allocation39_spill] sm:$0xff] }
 0x27d   : > { %v8440_v25 = vsub.f32 %v8360_v15, %v4712_v44  ;;  %v8443_v2 = vsub.f32 %v8334_v46, %v4713_v53  ;;  %v8451_v54 = vsub.f32 %v8313_v6, %v4713_v53  ;;  %v8454_v36 = vsub.f32 %v8337_v14, %v4713_v53  ;;  %v9230_v15 = vld [vmem:[#allocation37_spill] sm:$0xff] }
 0x27e   : > { %v4881_v34 = vmul.f32 %v8423_v37, %v8423_v37  ;;  %v4889_v57 = vmul.f32 %v8426_v51, %v8426_v51  ;;  %4566 = vmatmul.mubr.bf16.vlgmr.msra.gmra.mxu0 %v9227_v63  ;;  %v4897_v52 = vmul.f32 %v8429_v21, %v8429_v21  ;;  %v8458_v46 = vsub.f32 %v8376_v1, %v4712_v44 }
 0x27f   : > { %4493 = vmatmul.mubr.bf16.vlgmr.msra.gmra.mxu1 %v9228_v29  ;;  %6303 = vmatprep.mubr.msk.bf16.mxu0 %vm3425_vm0, %v9229_v55  ;;  %v4785_v23 = vsub.f32 %v8392_v5, %v4712_v44  ;;  %v4905_v30 = vmul.f32 %v8432_v47, %v8432_v47  ;;  %v8464_v22 = vsub.f32 %v8348_v49, %v4713_v53 }
 0x280   : > { %v4969_v9 = vadd.f32 %v4889_v57, %v4881_v34  ;;  %4502 = vmatprep.mubr.bf16.mxu1 %v9230_v15  ;;  %v4882_v6 = vmul.f32 %v8443_v2, %v8443_v2  ;;  %v4890_v14 = vmul.f32 %v8451_v54, %v8451_v54  ;;  %v4913_v62 = vmul.f32 %v8440_v25, %v8440_v25 }
 0x281   : > { %v8473_v19 = vsub.f32 %v8368_v31, %v4713_v53  ;;  %v4898_v5 = vmul.f32 %v8454_v36, %v8454_v36  ;;  %v8479_v49 = vsel %vm4733_vm1, %v4785_v23, 0.0  ;;  %v4921_v35 = vmul.f32 %v8458_v46, %v8458_v46 }
 0x282   : > { %v4970_v32 = vadd.f32 %v4969_v9, %v4897_v52  ;;  %v4982_v17 = vadd.f32 %v4890_v14, %v4882_v6  ;;  %v4786_v41 = vsub.f32 %v8402_v4, %v4713_v53  ;;  %v8485_v43 = vsub.f32 %v8390_v56, %v4713_v53  ;;  %v9239_v53 = vld [vmem:[#allocation44_spill] sm:$0xff]  ;;  %v9240_v6 = vld [vmem:[#allocation42_spill] sm:$0xff]  ;;  %v9241_v14 = vld [vmem:[#allocation45_spill] sm:$0xff] }
 0x283   : > { %v4906_v31 = vmul.f32 %v8464_v22, %v8464_v22  ;;  %v4929_v24 = vmul.f32 %v8479_v49, %v8479_v49  ;;  %v4914_v4 = vmul.f32 %v8473_v19, %v8473_v19 }
 0x284   : > { %v4971_v1 = vadd.f32 %v4970_v32, %v4905_v30  ;;  %v4983_v42 = vadd.f32 %v4982_v17, %v4898_v5  ;;  %v8500_v28 = vsel %vm4733_vm1, %v4786_v41, 0.0  ;;  %v4922_v11 = vmul.f32 %v8485_v43, %v8485_v43 }
 0x285   : > { %v4930_v10 = vmul.f32 %v8500_v28, %v8500_v28 }
 0x286   : > { %v4972_v16 = vadd.f32 %v4971_v1, %v4913_v62  ;;  %4576 = vmatmul.mubr.bf16.gmra.mxu0 %v9232_v26  ;;  %v4984_v56 = vadd.f32 %v4983_v42, %v4906_v31 }
 0x287   : > { %4503 = vmatmul.mubr.bf16.gmra.mxu1 %v9233_v60  ;;  %6304 = vmatprep.mubr.msk.bf16.mxu0 %vm3425_vm0, %v9234_v38  ;;  %v8510_v58 = vpop.f32.mrf.mxu0 }
 0x288   : > { %v4973_v48 = vadd.f32 %v4972_v16, %v4921_v35  ;;  %4512 = vmatprep.mubr.bf16.mxu1 %v9235_v61  ;;  %v4985_v7 = vadd.f32 %v4984_v56, %v4914_v4  ;;  %v8549_v61 = vld [vmem:[%s6898_s21] sm:$0xff] }
 0x289   : > { %v8504_v3 = vpop.f32.mrf.mxu1  ;;  %v8521_v29 = vpop.f32.mrf.mxu0 }
 0x28a   : > { %v4974_v40 = vadd.f32 %v4973_v48, %v4929_v24  ;;  %v4986_v0 = vadd.f32 %v4985_v7, %v4922_v11  ;;  %v9242_v24 = vld [vmem:[#allocation54_spill] sm:$0xff] }
 0x28b   : > { %v8508_v20 = vpop.f32.mrf.mxu1  ;;  %v8527_v32 = vpop.f32.mrf.mxu0  ;;  %v5083_v48 = vsub.s32 2, %v9242_v24 }
 0x28c   : > { %v4976_v8 = vrot.slane %v4974_v40, 4  ;;  %v4987_v12 = vadd.f32 %v4986_v0, %v4930_v10 }
 0x28d   : > { %v8513_v18 = vpop.f32.mrf.mxu1  ;;  %v8533_v41 = vpop.f32.mrf.mxu0 }
 0x28e   : > { %v4977_v33 = vadd.f32 %v4976_v8, %v4974_v40  ;;  %4586 = vmatmul.mubr.bf16.gmra.mxu0 %v9236_v39  ;;  %v4989_v50 = vrot.slane %v4987_v12, 4  ;;  %v5084_v40 = vrot.slane %v8549_v61, %v5083_v48  ;;  %v8561_v39 = vld [vmem:[%s6901_s27] sm:$0xff] }
 0x28f   : > { %4513 = vmatmul.mubr.bf16.gmra.mxu1 %v9237_v27  ;;  %6305 = vmatprep.mubr.msk.bf16.mxu0 %vm3425_vm0, %v9238_v59  ;;  %v8519_v34 = vpop.f32.mrf.mxu1  ;;  %v8535_v31 = vpop.f32.mrf.mxu0  ;;  %9243 = vst [vmem:[#allocation18_spill] sm:$0xff] %v8561_v39  ;;  %v5230_v27 = vrot.slane %v8561_v39, %v5083_v48 }
 0x290   : > { %v4978_v44 = vrot.slane %v4977_v33, 2  ;;  %4522 = vmatprep.mubr.bf16.mxu1 %v9239_v53  ;;  %v4990_v63 = vadd.f32 %v4989_v50, %v4987_v12 }
 0x291   : > { %v8523_v55 = vpop.f32.mrf.mxu1  ;;  %v8539_v60 = vpop.f32.mrf.mxu0 }
 0x292   : > { %v4979_v57 = vadd.f32 %v4978_v44, %v4977_v33  ;;  %v4991_v9 = vrot.slane %v4990_v63, 2  ;;  %v5087_v33 = vsub.s32 3, %v9242_v24 }
 0x293   : > { %v8525_v15 = vpop.f32.mrf.mxu1  ;;  %v8544_v4 = vpop.f32.mrf.mxu0 }
 0x294   : > { %v4980_v52 = vrot.slane %v4979_v57, 1  ;;  %v4992_v30 = vadd.f32 %v4991_v9, %v4990_v63 }
 0x295   : > { %v8531_v5 = vpop.f32.mrf.mxu1  ;;  %v8552_v11 = vpop.f32.mrf.mxu0 }
 0x296   : > { %v4981_v23 = vadd.f32 %v4980_v52, %v4979_v57  ;;  %4596 = vmatmul.mubr.bf16.gmra.mxu0 %v9240_v6  ;;  %v4993_v1 = vrot.slane %v4992_v30, 1 }
 0x297   : > { %4523 = vmatmul.mubr.bf16.gmra.mxu1 %v9241_v14  ;;  %v8537_v42 = vpop.f32.mrf.mxu1  ;;  %v8558_v12 = vpop.f32.mrf.mxu0 }
 0x298   : > { %v5049_v62 = vmul.f32 0.020408163, %v4981_v23  ;;  %v4994_v35 = vadd.f32 %v4993_v1, %v4992_v30  ;;  %v5088_v30 = vrot.slane %v8549_v61, %v5087_v33 }
 0x299   : > { %v8541_v38 = vpop.f32.mrf.mxu1  ;;  %v8574_v6 = vpop.f32.mrf.mxu0 }
 0x29a   : > { %v5057_v17 = vadd.f32 1e-05, %v5049_v62  ;;  %v5050_v16 = vmul.f32 0.020408163, %v4994_v35 }
 0x29b   : > { %v8546_v56 = vpop.f32.mrf.mxu1 }
 0x29c   : > { %6458 = vrsqrt.f32 %v5057_v17  ;;  %v5058_v26 = vadd.f32 1e-05, %v5050_v16 }
 0x29d   : > { %v8554_v8 = vpop.f32.mrf.mxu1 }
 0x29e   : > { %6460 = vrsqrt.f32 %v5058_v26  ;;  %v5234_v26 = vrot.slane %v8561_v39, %v5087_v33 }
 0x29f   : > { %v8564_v59 = vpop.f32.mrf.mxu1 }
 0x2a9   : > { %v6459_v7 = vpop.eup %6458 }
 0x2aa   : > { %v5115_v10 = vmul.f32 %v6459_v7, %v5084_v40 }
 0x2ab   : > { %v6461_v14 = vpop.eup %6460 }
 0x2ac   : > { %v5132_v0 = vrot.slane %v5115_v10, %v7937_v13  ;;  %v5116_v16 = vmul.f32 %v6461_v14, %v5088_v30 }
 0x2ae   : > { %v5155_v44 = vmul.f32 %v5132_v0, %v8423_v37  ;;  %v5163_v50 = vmul.f32 %v5132_v0, %v8426_v51  ;;  %v5171_v53 = vmul.f32 %v5132_v0, %v8429_v21  ;;  %v5179_v57 = vmul.f32 %v5132_v0, %v8432_v47  ;;  %v8576_v37 = vpop.f32.mrf.mxu1 }
 0x2af   : > { %v5187_v63 = vmul.f32 %v5132_v0, %v8440_v25  ;;  %v5195_v52 = vmul.f32 %v5132_v0, %v8458_v46  ;;  %v5203_v9 = vmul.f32 %v5132_v0, %v8479_v49  ;;  %v5211_v23 = vmul.f32 0.0, %v5132_v0  ;;  %v8578_v46 = vpop.f32.mrf.mxu0 }
 0x2b0   : > { %v5261_v62 = vadd.f32 %v5230_v27, %v5155_v44  ;;  %v5269_v51 = vadd.f32 %v5230_v27, %v5163_v50  ;;  %v5277_v1 = vadd.f32 %v5230_v27, %v5171_v53  ;;  %v5285_v21 = vadd.f32 %v5230_v27, %v5179_v57  ;;  %v8581_v48 = vpop.f32.mrf.mxu1 }
 0x2b1   : > { %v5293_v17 = vadd.f32 %v5230_v27, %v5187_v63  ;;  %v5301_v47 = vadd.f32 %v5230_v27, %v5195_v52  ;;  %v5309_v35 = vadd.f32 %v5230_v27, %v5203_v9  ;;  %v5317_v25 = vadd.f32 %v5230_v27, %v5211_v23  ;;  %v8588_v33 = vpop.f32.mrf.mxu0 }
 0x2b2   : > { %v5325_v49 = vmax.f32 %v5261_v62, 0.0  ;;  %v5333_v40 = vmax.f32 %v5269_v51, 0.0  ;;  %v5341_v7 = vmax.f32 %v5277_v1, 0.0  ;;  %v5349_v10 = vmax.f32 %v5285_v21, 0.0  ;;  %v8593_v51 = vpop.f32.mrf.mxu1 }
 0x2b3   : > { %v5136_v0 = vrot.slane %v5116_v16, %v7937_v13  ;;  %v5357_v44 = vmax.f32 %v5293_v17, 0.0  ;;  %v5365_v50 = vmax.f32 %v5301_v47, 0.0  ;;  %v5373_v53 = vmax.f32 %v5309_v35, 0.0 }
 0x2b4   : > { %v5381_v57 = vmax.f32 %v5317_v25, 0.0 }
 0x2b5   : > { %v5156_v63 = vmul.f32 %v5136_v0, %v8443_v2  ;;  %v5164_v27 = vmul.f32 %v5136_v0, %v8451_v54  ;;  %v5172_v52 = vmul.f32 %v5136_v0, %v8454_v36  ;;  %v5180_v9 = vmul.f32 %v5136_v0, %v8464_v22 }
 0x2b6   : > { %v5188_v23 = vmul.f32 %v5136_v0, %v8473_v19  ;;  %v5196_v30 = vmul.f32 %v5136_v0, %v8485_v43  ;;  %v5204_v14 = vmul.f32 %v5136_v0, %v8500_v28  ;;  %v5212_v62 = vmul.f32 0.0, %v5136_v0  ;;  %v8595_v19 = vpop.f32.mrf.mxu0 }
 0x2b7   : > { %v5262_v1 = vadd.f32 %v5234_v26, %v5156_v63  ;;  %v5270_v21 = vadd.f32 %v5234_v26, %v5164_v27  ;;  %v5278_v2 = vadd.f32 %v5234_v26, %v5172_v52  ;;  %v5286_v17 = vadd.f32 %v5234_v26, %v5180_v9  ;;  %v8597_v27 = vpop.f32.mrf.mxu1 }
 0x2b8   : > { %v5294_v54 = vadd.f32 %v5234_v26, %v5188_v23  ;;  %v5302_v47 = vadd.f32 %v5234_v26, %v5196_v30  ;;  %v5310_v36 = vadd.f32 %v5234_v26, %v5204_v14  ;;  %v5318_v35 = vadd.f32 %v5234_v26, %v5212_v62 }
 0x2b9   : > { %v5326_v22 = vmax.f32 %v5262_v1, 0.0  ;;  %v5334_v25 = vmax.f32 %v5270_v21, 0.0  ;;  %v5342_v16 = vmax.f32 %v5278_v2, 0.0  ;;  %v5350_v39 = vmax.f32 %v5286_v17, 0.0  ;;  %v8603_v2 = vpop.f32.mrf.mxu0 }
 0x2ba   : > { %v5358_v43 = vmax.f32 %v5294_v54, 0.0  ;;  %v5366_v28 = vmax.f32 %v5302_v47, 0.0  ;;  %v5374_v0 = vmax.f32 %v5310_v36, 0.0  ;;  %v5382_v63 = vmax.f32 %v5318_v35, 0.0 }
 0x2bb   : > { %v6347_v52 = vpack.c.bf16 %v5326_v22, %v5325_v49  ;;  %v6351_v26 = vpack.c.bf16 %v5334_v25, %v5333_v40  ;;  %v6355_v9 = vpack.c.bf16 %v5342_v16, %v5341_v7  ;;  %v6359_v23 = vpack.c.bf16 %v5350_v39, %v5349_v10  ;;  %v8609_v40 = vpop.f32.mrf.mxu0 }
 0x2bc   : > { %v6363_v30 = vpack.c.bf16 %v5358_v43, %v5357_v44  ;;  %v6367_v14 = vpack.c.bf16 %v5366_v28, %v5365_v50  ;;  %v6371_v62 = vpack.c.bf16 %v5374_v0, %v5373_v53  ;;  %v6375_v1 = vpack.c.bf16 %v5382_v63, %v5381_v57 }
 0x2bd   : > { %v4275_v21 = vpop.f32.mrf.mxu1  ;;  %5580 = vst [vmem:[%s8153_s7 + $0x8] sm:$0xff] %v6347_v52  ;;  %5584 = vst [vmem:[%s8153_s7 + $0x28] sm:$0xff] %v6351_v26  ;;  %v8611_v39 = vpop.f32.mrf.mxu0  ;;  %v4134_v43 = vadd.f32 %v8513_v18, %v8527_v32  ;;  %v4136_v28 = vadd.f32 %v8519_v34, %v8533_v41  ;;  %v4130_v52 = vadd.f32 %v8504_v3, %v8510_v58 }
 0x2be   : > { %5588 = vst [vmem:[%s8153_s7 + $0x48] sm:$0xff] %v6355_v9  ;;  %5592 = vst [vmem:[%s8153_s7 + $0x68] sm:$0xff] %v6359_v23  ;;  %v4140_v26 = vadd.f32 %v8523_v55, %v8535_v31  ;;  %v4132_v23 = vadd.f32 %v8508_v20, %v8521_v29  ;;  %v4144_v34 = vadd.f32 %v8531_v5, %v8544_v4 }
 0x2bf   : > { %5596 = vst [vmem:[%s8153_s7 + $0x88] sm:$0xff] %v6363_v30  ;;  %5600 = vst [vmem:[%s8153_s7 + $0xa8] sm:$0xff] %v6367_v14  ;;  %v4277_v49 = vpop.f32.mrf.mxu1  ;;  %v4142_v30 = vadd.f32 %v8525_v15, %v8539_v60  ;;  %v4146_v3 = vadd.f32 %v8537_v42, %v8552_v11  ;;  %v4150_v20 = vadd.f32 %v8541_v38, %v8558_v12 }
 0x2c0   : > { %5604 = vst [vmem:[%s8153_s7 + $0xc8] sm:$0xff] %v6371_v62  ;;  %5608 = vst [vmem:[%s8153_s7 + $0xe8] sm:$0xff] %v6375_v1  ;;  %v4152_v60 = vadd.f32 %v8546_v56, %v8574_v6  ;;  %v4154_v42 = vadd.f32 %v8554_v8, %v8578_v46  ;;  %v4156_v38 = vadd.f32 %v8564_v59, %v8588_v33 }
 0x2c1   : > { %v4279_v7 = vpop.f32.mrf.mxu1  ;;  %v4160_v59 = vadd.f32 %v8576_v37, %v8595_v19 }
 0x2c3   : > { %v4281_v10 = vpop.f32.mrf.mxu1 }
 0x2c5   : > { %v4285_v50 = vpop.f32.mrf.mxu1 }
 0x2c7   : > { %v4202_v44 = vpop.f32.mrf.mxu0  ;;  %v4287_v57 = vpop.f32.mrf.mxu1 }
 0x2c8   : > { %v4203_v41 = vadd.f32 %v4202_v44, %v4130_v52 }
 0x2c9   : > { %v4204_v53 = vpop.f32.mrf.mxu0  ;;  %v4289_v54 = vpop.f32.mrf.mxu1 }
 0x2ca   : > { %v4205_v58 = vadd.f32 %v4204_v53, %v4132_v23  ;;  %v8639_v11 = vadd.f32 %v4275_v21, %v4203_v41 }
 0x2cb   : > { %v4206_v17 = vpop.f32.mrf.mxu0  ;;  %v4291_v36 = vpop.f32.mrf.mxu1 }
 0x2cc   : > { %v4207_v9 = vadd.f32 %v4206_v17, %v4134_v43  ;;  %v8645_v12 = vadd.f32 %v4277_v49, %v4205_v58 }
 0x2cd   : > { %v4208_v47 = vpop.f32.mrf.mxu0 }
 0x2ce   : > { %v4209_v14 = vadd.f32 %v4208_v47, %v4136_v28  ;;  %v8631_v29 = vadd.f32 %v4279_v7, %v4207_v9 }
 0x2cf   : > { %v4212_v35 = vpop.f32.mrf.mxu0 }
 0x2d0   : > { %v4295_v22 = vpop.f32.mrf.mxu1  ;;  %v4213_v62 = vadd.f32 %v4212_v35, %v4140_v26  ;;  %v8635_v1 = vadd.f32 %v4281_v10, %v4209_v14  ;;  %v4658_v6 = vadd.f32 %v8631_v29, %v8639_v11  ;;  %v4164_v26 = vadd.f32 %v8593_v51, %v8609_v40 }
 0x2d1   : > { %v4214_v25 = vpop.f32.mrf.mxu0 }
 0x2d2   : > { %v4297_v16 = vpop.f32.mrf.mxu1  ;;  %v4215_v55 = vadd.f32 %v4214_v25, %v4142_v30  ;;  %v8641_v53 = vadd.f32 %v4285_v50, %v4213_v62  ;;  %v4671_v8 = vadd.f32 %v8635_v1, %v8645_v12  ;;  %v4162_v25 = vadd.f32 %v8581_v48, %v8603_v2 }
 0x2d3   : > { %v4216_v0 = vpop.f32.mrf.mxu0  ;;  %v4166_v48 = vadd.f32 %v8597_v27, %v8611_v39 }
 0x2d4   : > { %v4299_v63 = vpop.f32.mrf.mxu1  ;;  %v4217_v15 = vadd.f32 %v4216_v0, %v4144_v34  ;;  %v8647_v7 = vadd.f32 %v4287_v57, %v4215_v55  ;;  %v4659_v33 = vadd.f32 %v4658_v6, %v8641_v53 }
 0x2d5   : > { %v4218_v18 = vpop.f32.mrf.mxu0 }
 0x2d6   : > { %v4301_v32 = vpop.f32.mrf.mxu1  ;;  %v4219_v5 = vadd.f32 %v4218_v18, %v4146_v3  ;;  %v4290_v10 = vadd.f32 %v4289_v54, %v4217_v15  ;;  %v4672_v54 = vadd.f32 %v4671_v8, %v8647_v7 }
 0x2d7   : > { %v4222_v31 = vpop.f32.mrf.mxu0 }
 0x2d8   : > { %v4305_v44 = vpop.f32.mrf.mxu1  ;;  %v4223_v17 = vadd.f32 %v4222_v31, %v4150_v20  ;;  %v8653_v46 = vadd.f32 %v4291_v36, %v4219_v5  ;;  %v4660_v28 = vadd.f32 %v4659_v33, %v4290_v10 }
 0x2d9   : > { %v4224_v4 = vpop.f32.mrf.mxu0 }
 0x2da   : > { %v4225_v47 = vadd.f32 %v4224_v4, %v4152_v60  ;;  %v4307_v50 = vpop.f32.mrf.mxu1  ;;  %v4296_v49 = vadd.f32 %v4295_v22, %v4223_v17  ;;  %v4673_v9 = vadd.f32 %v4672_v54, %v8653_v46 }
 0x2db   : > { %v4226_v56 = vpop.f32.mrf.mxu0 }
 0x2dc   : > { %v4227_v35 = vadd.f32 %v4226_v56, %v4154_v42  ;;  %v4298_v0 = vadd.f32 %v4297_v16, %v4225_v47  ;;  %v4309_v19 = vpop.f32.mrf.mxu1  ;;  %v4661_v23 = vadd.f32 %v4660_v28, %v4296_v49 }
 0x2dd   : > { %v4228_v21 = vpop.f32.mrf.mxu0 }
 0x2de   : > { %v4229_v57 = vadd.f32 %v4228_v21, %v4156_v38  ;;  %v4300_v52 = vadd.f32 %v4299_v63, %v4227_v35  ;;  %v4674_v18 = vadd.f32 %v4673_v9, %v4298_v0  ;;  %v4311_v62 = vpop.f32.mrf.mxu1 }
 0x2df   : > { %v4232_v43 = vpop.f32.mrf.mxu0 }
 0x2e0   : > { %v4233_v36 = vadd.f32 %v4232_v43, %v4160_v59  ;;  %v4302_v22 = vadd.f32 %v4301_v32, %v4229_v57  ;;  %v4662_v34 = vadd.f32 %v4661_v23, %v4300_v52 }
 0x2e1   : > { %v4234_v37 = vpop.f32.mrf.mxu0 }
 0x2e2   : > { %v4235_v30 = vadd.f32 %v4234_v37, %v4162_v25  ;;  %v4306_v14 = vadd.f32 %v4305_v44, %v4233_v36  ;;  %v4675_v51 = vadd.f32 %v4674_v18, %v4302_v22 }
 0x2e3   : > { %v4236_v2 = vpop.f32.mrf.mxu0 }
 0x2e4   : > { %v4237_v16 = vadd.f32 %v4236_v2, %v4164_v26  ;;  %v8666_v63 = vadd.f32 %v4307_v50, %v4235_v30  ;;  %v4663_v40 = vadd.f32 %v4662_v34, %v4306_v14 }
 0x2e5   : > { %v4238_v41 = vpop.f32.mrf.mxu0 }
 0x2e6   : > { %v4239_v3 = vadd.f32 %v4238_v41, %v4166_v48  ;;  %v4310_v58 = vadd.f32 %v4309_v19, %v4237_v16  ;;  %v4676_v55 = vadd.f32 %v4675_v51, %v8666_v63 }
 0x2e8   : > { %v4664_v32 = vadd.f32 %v4663_v40, %v4310_v58  ;;  %v4312_v31 = vadd.f32 %v4311_v62, %v4239_v3 }
 0x2ea   : > { %v4665_v20 = vrot.slane %v4664_v32, 4  ;;  %v4677_v15 = vadd.f32 %v4676_v55, %v4312_v31 }
 0x2ec   : > { %v4666_v60 = vadd.f32 %v4665_v20, %v4664_v32  ;;  %v4678_v27 = vrot.slane %v4677_v15, 4 }
 0x2ee   : > { %v4667_v39 = vrot.slane %v4666_v60, 2  ;;  %v4679_v5 = vadd.f32 %v4678_v27, %v4677_v15 }
 0x2f0   : > { %v4668_v4 = vadd.f32 %v4667_v39, %v4666_v60  ;;  %v4680_v44 = vrot.slane %v4679_v5, 2 }
 0x2f2   : > { %v4669_v42 = vrot.slane %v4668_v4, 1  ;;  %v4681_v17 = vadd.f32 %v4680_v44, %v4679_v5 }
 0x2f4   : > { %v4670_v38 = vadd.f32 %v4669_v42, %v4668_v4  ;;  %v4682_v56 = vrot.slane %v4681_v17, 1 }
 0x2f6   : > { %v4714_v6 = vmul.f32 0.020408163, %v4670_v38  ;;  %v4683_v47 = vadd.f32 %v4682_v56, %v4681_v17 }
 0x2f8   : > { %v8670_v35 = vsub.f32 %v8639_v11, %v4714_v6  ;;  %v8673_v8 = vsub.f32 %v8631_v29, %v4714_v6  ;;  %v8676_v21 = vsub.f32 %v8641_v53, %v4714_v6  ;;  %v8678_v50 = vsub.f32 %v4290_v10, %v4714_v6 }
 0x2f9   : > { %v4715_v59 = vmul.f32 0.020408163, %v4683_v47  ;;  %v8684_v25 = vsub.f32 %v4296_v49, %v4714_v6  ;;  %v8697_v43 = vsub.f32 %v4300_v52, %v4714_v6  ;;  %v4787_v28 = vsub.f32 %v4306_v14, %v4714_v6 }
 0x2fa   : > { %v4883_v33 = vmul.f32 %v8670_v35, %v8670_v35  ;;  %v4891_v57 = vmul.f32 %v8673_v8, %v8673_v8  ;;  %v4899_v29 = vmul.f32 %v8676_v21, %v8676_v21  ;;  %v4907_v49 = vmul.f32 %v8678_v50, %v8678_v50 }
 0x2fb   : > { %v8687_v11 = vsub.f32 %v8645_v12, %v4715_v59  ;;  %v8692_v53 = vsub.f32 %v8635_v1, %v4715_v59  ;;  %v8695_v10 = vsub.f32 %v8647_v7, %v4715_v59  ;;  %v8702_v12 = vsub.f32 %v8653_v46, %v4715_v59 }
 0x2fc   : > { %v4995_v54 = vadd.f32 %v4891_v57, %v4883_v33  ;;  %v4915_v7 = vmul.f32 %v8684_v25, %v8684_v25  ;;  %v8710_v52 = vsub.f32 %v4298_v0, %v4715_v59  ;;  %v8718_v46 = vsel %vm4733_vm1, %v4787_v28, 0.0 }
 0x2fd   : > { %v4884_v26 = vmul.f32 %v8687_v11, %v8687_v11  ;;  %v4892_v1 = vmul.f32 %v8692_v53, %v8692_v53  ;;  %v4900_v37 = vmul.f32 %v8695_v10, %v8695_v10  ;;  %v8714_v23 = vpop.f32.mrf.mxu1  ;;  %v4923_v30 = vmul.f32 %v8697_v43, %v8697_v43 }
 0x2fe   : > { %v4996_v36 = vadd.f32 %v4995_v54, %v4899_v29  ;;  %v4788_v14 = vsub.f32 %v8666_v63, %v4715_v59  ;;  %v8723_v2 = vsub.f32 %v4302_v22, %v4715_v59  ;;  %v4908_v0 = vmul.f32 %v8702_v12, %v8702_v12 }
 0x2ff   : > { %v5008_v19 = vadd.f32 %v4892_v1, %v4884_v26  ;;  %v4931_v34 = vmul.f32 %v8718_v46, %v8718_v46  ;;  %v4916_v41 = vmul.f32 %v8710_v52, %v8710_v52  ;;  %v8731_v51 = vpop.f32.mrf.mxu1 }
 0x300   : > { %v4997_v9 = vadd.f32 %v4996_v36, %v4907_v49  ;;  %v8735_v63 = vsel %vm4733_vm1, %v4788_v14, 0.0  ;;  %v4924_v40 = vmul.f32 %v8723_v2, %v8723_v2 }
 0x301   : > { %v5009_v18 = vadd.f32 %v5008_v19, %v4900_v37  ;;  %v4932_v32 = vmul.f32 %v8735_v63, %v8735_v63  ;;  %v8743_v20 = vpop.f32.mrf.mxu1 }
 0x302   : > { %v4998_v48 = vadd.f32 %v4997_v9, %v4915_v7 }
 0x303   : > { %v5010_v62 = vadd.f32 %v5009_v18, %v4908_v0  ;;  %v8749_v44 = vpop.f32.mrf.mxu1 }
 0x304   : > { %v4999_v16 = vadd.f32 %v4998_v48, %v4923_v30  ;;  %v5091_v48 = vsub.s32 4, %v9242_v24 }
 0x305   : > { %v5011_v3 = vadd.f32 %v5010_v62, %v4916_v41  ;;  %v8753_v56 = vpop.f32.mrf.mxu1 }
 0x306   : > { %v5000_v22 = vadd.f32 %v4999_v16, %v4931_v34  ;;  %v5092_v34 = vrot.slane %v8549_v61, %v5091_v48 }
 0x307   : > { %v5012_v31 = vadd.f32 %v5011_v3, %v4924_v40  ;;  %v8759_v54 = vpop.f32.mrf.mxu1 }
 0x308   : > { %v5002_v55 = vrot.slane %v5000_v22, 4 }
 0x309   : > { %v8739_v58 = vpop.f32.mrf.mxu0  ;;  %v5013_v27 = vadd.f32 %v5012_v31, %v4932_v32  ;;  %v8763_v7 = vpop.f32.mrf.mxu1  ;;  %v9244_v32 = vld [vmem:[#allocation18_spill] sm:$0xff] }
 0x30a   : > { %v5003_v60 = vadd.f32 %v5002_v55, %v5000_v22  ;;  %v5095_v55 = vsub.s32 5, %v9242_v24  ;;  %v5238_v31 = vrot.slane %v9244_v32, %v5091_v48 }
 0x30b   : > { %v8745_v15 = vpop.f32.mrf.mxu0  ;;  %v5015_v4 = vrot.slane %v5013_v27, 4  ;;  %v8767_v19 = vpop.f32.mrf.mxu1 }
 0x30c   : > { %v5004_v5 = vrot.slane %v5003_v60, 2 }
 0x30d   : > { %v8747_v39 = vpop.f32.mrf.mxu0  ;;  %v5016_v38 = vadd.f32 %v5015_v4, %v5013_v27  ;;  %v8772_v0 = vpop.f32.mrf.mxu1 }
 0x30e   : > { %v5005_v17 = vadd.f32 %v5004_v5, %v5003_v60 }
 0x30f   : > { %v8751_v42 = vpop.f32.mrf.mxu0  ;;  %v5017_v59 = vrot.slane %v5016_v38, 2  ;;  %v8777_v16 = vpop.f32.mrf.mxu1 }
 0x310   : > { %v5006_v47 = vrot.slane %v5005_v17, 1 }
 0x311   : > { %v5018_v29 = vadd.f32 %v5017_v59, %v5016_v38  ;;  %v8781_v40 = vpop.f32.mrf.mxu1 }
 0x312   : > { %v5007_v57 = vadd.f32 %v5006_v47, %v5005_v17 }
 0x313   : > { %v5019_v49 = vrot.slane %v5018_v29, 1  ;;  %v8792_v38 = vpop.f32.mrf.mxu1 }
 0x314   : > { %v5051_v28 = vmul.f32 0.020408163, %v5007_v57 }
 0x315   : > { %v8755_v6 = vpop.f32.mrf.mxu0  ;;  %v5020_v1 = vadd.f32 %v5019_v49, %v5018_v29 }
 0x316   : > { %v5059_v26 = vadd.f32 1e-05, %v5051_v28  ;;  %v5096_v28 = vrot.slane %v8549_v61, %v5095_v55 }
 0x317   : > { %v8757_v33 = vpop.f32.mrf.mxu0  ;;  %v5052_v9 = vmul.f32 0.020408163, %v5020_v1 }
 0x318   : > { %6462 = vrsqrt.f32 %v5059_v26 }
 0x319   : > { %v8761_v36 = vpop.f32.mrf.mxu0  ;;  %v5060_v30 = vadd.f32 1e-05, %v5052_v9  ;;  %v8800_v9 = vpop.f32.mrf.mxu1 }
 0x31b   : > { %v8765_v37 = vpop.f32.mrf.mxu0  ;;  %6464 = vrsqrt.f32 %v5060_v30 }
 0x31e   : > { %v8769_v14 = vpop.f32.mrf.mxu0 }
 0x320   : > { %v8774_v18 = vpop.f32.mrf.mxu0 }
 0x322   : > { %v8779_v62 = vpop.f32.mrf.mxu0 }
 0x324   : > { %v8786_v60 = vpop.f32.mrf.mxu0 }
 0x325   : > { %v6463_v41 = vpop.eup %6462 }
 0x326   : > { %v5117_v22 = vmul.f32 %v6463_v41, %v5092_v34 }
 0x328   : > { %v5140_v3 = vrot.slane %v5117_v22, %v7937_v13  ;;  %v6465_v49 = vpop.eup %6464 }
 0x329   : > { %v5118_v34 = vmul.f32 %v6465_v49, %v5096_v28 }
 0x32a   : > { %v5157_v27 = vmul.f32 %v5140_v3, %v8670_v35  ;;  %v5165_v5 = vmul.f32 %v5140_v3, %v8673_v8  ;;  %v5173_v4 = vmul.f32 %v5140_v3, %v8676_v21  ;;  %v5181_v17 = vmul.f32 %v5140_v3, %v8678_v50  ;;  %v8798_v35 = vpop.f32.mrf.mxu0 }
 0x32b   : > { %v5189_v47 = vmul.f32 %v5140_v3, %v8684_v25  ;;  %v5197_v59 = vmul.f32 %v5140_v3, %v8697_v43  ;;  %v5205_v57 = vmul.f32 %v5140_v3, %v8718_v46  ;;  %v5213_v29 = vmul.f32 0.0, %v5140_v3 }
 0x32c   : > { %v5263_v26 = vadd.f32 %v5238_v31, %v5157_v27  ;;  %v5271_v8 = vadd.f32 %v5238_v31, %v5165_v5  ;;  %v5279_v1 = vadd.f32 %v5238_v31, %v5173_v4  ;;  %v5287_v21 = vadd.f32 %v5238_v31, %v5181_v17  ;;  %v8803_v41 = vpop.f32.mrf.mxu0  ;;  %v8806_v5 = vpop.f32.mrf.mxu1 }
 0x32d   : > { %v5295_v50 = vadd.f32 %v5238_v31, %v5189_v47  ;;  %v5303_v30 = vadd.f32 %v5238_v31, %v5197_v59  ;;  %v5311_v48 = vadd.f32 %v5238_v31, %v5205_v57  ;;  %v5319_v25 = vadd.f32 %v5238_v31, %v5213_v29 }
 0x32e   : > { %v5327_v43 = vmax.f32 %v5263_v26, 0.0  ;;  %v5242_v46 = vrot.slane %v9244_v32, %v5095_v55  ;;  %v5335_v61 = vmax.f32 %v5271_v8, 0.0  ;;  %v5343_v22 = vmax.f32 %v5279_v1, 0.0  ;;  %v8815_v26 = vpop.f32.mrf.mxu0 }
 0x32f   : > { %v5351_v3 = vmax.f32 %v5287_v21, 0.0  ;;  %v5144_v27 = vrot.slane %v5118_v34, %v7937_v13  ;;  %v5359_v4 = vmax.f32 %v5295_v50, 0.0  ;;  %v5367_v17 = vmax.f32 %v5303_v30, 0.0 }
 0x330   : > { %v5375_v24 = vmax.f32 %v5311_v48, 0.0  ;;  %v5383_v47 = vmax.f32 %v5319_v25, 0.0 }
 0x331   : > { %v5158_v59 = vmul.f32 %v5144_v27, %v8687_v11  ;;  %v5166_v31 = vmul.f32 %v5144_v27, %v8692_v53  ;;  %v5174_v57 = vmul.f32 %v5144_v27, %v8695_v10  ;;  %v5182_v55 = vmul.f32 %v5144_v27, %v8702_v12  ;;  %v8817_v11 = vpop.f32.mrf.mxu1 }
 0x332   : > { %v5190_v32 = vmul.f32 %v5144_v27, %v8710_v52  ;;  %v5198_v29 = vmul.f32 %v5144_v27, %v8723_v2  ;;  %v5206_v28 = vmul.f32 %v5144_v27, %v8735_v63  ;;  %v5214_v49 = vmul.f32 0.0, %v5144_v27 }
 0x333   : > { %v5264_v8 = vadd.f32 %v5242_v46, %v5158_v59  ;;  %v5272_v1 = vadd.f32 %v5242_v46, %v5166_v31  ;;  %v5280_v21 = vadd.f32 %v5242_v46, %v5174_v57  ;;  %v5288_v50 = vadd.f32 %v5242_v46, %v5182_v55  ;;  %v8819_v31 = vpop.f32.mrf.mxu0 }
 0x334   : > { %v5296_v53 = vadd.f32 %v5242_v46, %v5190_v32  ;;  %v5304_v30 = vadd.f32 %v5242_v46, %v5198_v29  ;;  %v5312_v10 = vadd.f32 %v5242_v46, %v5206_v28  ;;  %v5320_v48 = vadd.f32 %v5242_v46, %v5214_v49  ;;  %v8821_v29 = vpop.f32.mrf.mxu1 }
 0x335   : > { %v5328_v12 = vmax.f32 %v5264_v8, 0.0  ;;  %v5336_v25 = vmax.f32 %v5272_v1, 0.0  ;;  %v5344_v52 = vmax.f32 %v5280_v21, 0.0  ;;  %v5352_v34 = vmax.f32 %v5288_v50, 0.0 }
 0x336   : > { %v5360_v2 = vmax.f32 %v5296_v53, 0.0  ;;  %v5368_v63 = vmax.f32 %v5304_v30, 0.0  ;;  %v5376_v27 = vmax.f32 %v5312_v10, 0.0  ;;  %v5384_v59 = vmax.f32 %v5320_v48, 0.0 }
 0x337   : > { %v6348_v57 = vpack.c.bf16 %v5328_v12, %v5327_v43  ;;  %v6352_v55 = vpack.c.bf16 %v5336_v25, %v5335_v61  ;;  %v6356_v46 = vpack.c.bf16 %v5344_v52, %v5343_v22  ;;  %v6360_v32 = vpack.c.bf16 %v5352_v34, %v5351_v3 }
 0x338   : > { %v6364_v28 = vpack.c.bf16 %v5360_v2, %v5359_v4  ;;  %v6368_v49 = vpack.c.bf16 %v5368_v63, %v5367_v17  ;;  %v6372_v8 = vpack.c.bf16 %v5376_v27, %v5375_v24  ;;  %v6376_v1 = vpack.c.bf16 %v5384_v59, %v5383_v47 }
 0x339   : > { %5581 = vst [vmem:[%s8153_s7 + $0x10] sm:$0xff] %v6348_v57  ;;  %5585 = vst [vmem:[%s8153_s7 + $0x30] sm:$0xff] %v6352_v55  ;;  %v4426_v10 = vadd.f32 %v8747_v39, %v8743_v20  ;;  %v4428_v12 = vadd.f32 %v8751_v42, %v8749_v44  ;;  %v4422_v52 = vadd.f32 %v8739_v58, %v8714_v23 }
 0x33a   : > { %5589 = vst [vmem:[%s8153_s7 + $0x50] sm:$0xff] %v6356_v46  ;;  %5593 = vst [vmem:[%s8153_s7 + $0x70] sm:$0xff] %v6360_v32  ;;  %v4432_v34 = vadd.f32 %v8755_v6, %v8753_v56  ;;  %v4424_v27 = vadd.f32 %v8745_v15, %v8731_v51  ;;  %v4434_v59 = vadd.f32 %v8757_v33, %v8759_v54 }
 0x33b   : > { %5597 = vst [vmem:[%s8153_s7 + $0x90] sm:$0xff] %v6364_v28  ;;  %5601 = vst [vmem:[%s8153_s7 + $0xb0] sm:$0xff] %v6368_v49  ;;  %v4436_v44 = vadd.f32 %v8761_v36, %v8763_v7  ;;  %v4438_v23 = vadd.f32 %v8765_v37, %v8767_v19  ;;  %v4442_v51 = vadd.f32 %v8769_v14, %v8772_v0 }
 0x33c   : > { %5605 = vst [vmem:[%s8153_s7 + $0xd0] sm:$0xff] %v6372_v8  ;;  %5609 = vst [vmem:[%s8153_s7 + $0xf0] sm:$0xff] %v6376_v1  ;;  %v4444_v46 = vadd.f32 %v8774_v18, %v8777_v16  ;;  %v4446_v37 = vadd.f32 %v8779_v62, %v8781_v40  ;;  %v4448_v0 = vadd.f32 %v8786_v60, %v8792_v38 }
 0x33d   : > { %v4452_v60 = vadd.f32 %v8798_v35, %v8800_v9  ;;  %v4456_v35 = vadd.f32 %v8815_v26, %v8817_v11 }
 0x33e   : > { %v4567_v21 = vpop.f32.mrf.mxu0 }
 0x33f   : > { %v4494_v50 = vpop.f32.mrf.mxu1 }
 0x340   : > { %v4569_v43 = vpop.f32.mrf.mxu0  ;;  %v4495_v42 = vadd.f32 %v4494_v50, %v4422_v52 }
 0x341   : > { %v4496_v61 = vpop.f32.mrf.mxu1 }
 0x342   : > { %v4571_v22 = vpop.f32.mrf.mxu0  ;;  %v4497_v58 = vadd.f32 %v4496_v61, %v4424_v27  ;;  %v8857_v19 = vadd.f32 %v4567_v21, %v4495_v42 }
 0x343   : > { %v4498_v3 = vpop.f32.mrf.mxu1 }
 0x344   : > { %v4573_v53 = vpop.f32.mrf.mxu0  ;;  %v4499_v2 = vadd.f32 %v4498_v3, %v4426_v10  ;;  %v8863_v8 = vadd.f32 %v4569_v43, %v4497_v58 }
 0x345   : > { %v4500_v30 = vpop.f32.mrf.mxu1 }
 0x346   : > { %v4577_v4 = vpop.f32.mrf.mxu0  ;;  %v4501_v20 = vadd.f32 %v4500_v30, %v4428_v12  ;;  %v8849_v15 = vadd.f32 %v4571_v22, %v4499_v2 }
 0x347   : > { %v4504_v17 = vpop.f32.mrf.mxu1 }
 0x348   : > { %v4579_v24 = vpop.f32.mrf.mxu0  ;;  %v4505_v57 = vadd.f32 %v4504_v17, %v4432_v34  ;;  %v8853_v36 = vadd.f32 %v4573_v53, %v4501_v20  ;;  %v4684_v16 = vadd.f32 %v8849_v15, %v8857_v19 }
 0x349   : > { %v4506_v47 = vpop.f32.mrf.mxu1 }
 0x34a   : > { %v4581_v48 = vpop.f32.mrf.mxu0  ;;  %v4507_v56 = vadd.f32 %v4506_v47, %v4434_v59  ;;  %v8859_v28 = vadd.f32 %v4577_v4, %v4505_v57  ;;  %v4697_v21 = vadd.f32 %v8853_v36, %v8863_v8  ;;  %v4454_v4 = vadd.f32 %v8803_v41, %v8806_v5 }
 0x34b   : > { %v4508_v25 = vpop.f32.mrf.mxu1  ;;  %v4458_v41 = vadd.f32 %v8819_v31, %v8821_v29 }
 0x34c   : > { %v4583_v63 = vpop.f32.mrf.mxu0  ;;  %v4509_v33 = vadd.f32 %v4508_v25, %v4436_v44  ;;  %v8865_v1 = vadd.f32 %v4579_v24, %v4507_v56  ;;  %v4685_v38 = vadd.f32 %v4684_v16, %v8859_v28 }
 0x34d   : > { %v4510_v39 = vpop.f32.mrf.mxu1 }
 0x34e   : > { %v4587_v55 = vpop.f32.mrf.mxu0  ;;  %v4511_v7 = vadd.f32 %v4510_v39, %v4438_v23  ;;  %v4582_v50 = vadd.f32 %v4581_v48, %v4509_v33  ;;  %v4698_v17 = vadd.f32 %v4697_v21, %v8865_v1 }
 0x34f   : > { %v4514_v6 = vpop.f32.mrf.mxu1 }
 0x350   : > { %v4589_v54 = vpop.f32.mrf.mxu0  ;;  %v4515_v49 = vadd.f32 %v4514_v6, %v4442_v51  ;;  %v8871_v22 = vadd.f32 %v4583_v63, %v4511_v7  ;;  %v4686_v47 = vadd.f32 %v4685_v38, %v4582_v50 }
 0x351   : > { %v4516_v32 = vpop.f32.mrf.mxu1 }
 0x352   : > { %v4591_v14 = vpop.f32.mrf.mxu0  ;;  %v4517_v61 = vadd.f32 %v4516_v32, %v4444_v46  ;;  %v4588_v43 = vadd.f32 %v4587_v55, %v4515_v49  ;;  %v4699_v9 = vadd.f32 %v4698_v17, %v8871_v22 }
 0x353   : > { %v4518_v18 = vpop.f32.mrf.mxu1 }
 0x354   : > { %v4519_v62 = vadd.f32 %v4518_v18, %v4446_v37  ;;  %v4593_v40 = vpop.f32.mrf.mxu0  ;;  %v8879_v10 = vadd.f32 %v4589_v54, %v4517_v61  ;;  %v4687_v34 = vadd.f32 %v4686_v47, %v4588_v43 }
 0x355   : > { %v4520_v3 = vpop.f32.mrf.mxu1 }
 0x356   : > { %v4521_v53 = vadd.f32 %v4520_v3, %v4448_v0  ;;  %v4597_v30 = vpop.f32.mrf.mxu0  ;;  %v4592_v48 = vadd.f32 %v4591_v14, %v4519_v62  ;;  %v4700_v20 = vadd.f32 %v4699_v9, %v8879_v10 }
 0x357   : > { %v4524_v24 = vpop.f32.mrf.mxu1 }
 0x358   : > { %v4525_v12 = vadd.f32 %v4524_v24, %v4452_v60  ;;  %v4599_v25 = vpop.f32.mrf.mxu0  ;;  %v4594_v2 = vadd.f32 %v4593_v40, %v4521_v53  ;;  %v4688_v39 = vadd.f32 %v4687_v34, %v4592_v48 }
 0x359   : > { %v4526_v52 = vpop.f32.mrf.mxu1 }
 0x35a   : > { %v4598_v63 = vadd.f32 %v4597_v30, %v4525_v12  ;;  %v4527_v27 = vadd.f32 %v4526_v52, %v4454_v4  ;;  %v4601_v59 = vpop.f32.mrf.mxu0  ;;  %v4701_v55 = vadd.f32 %v4700_v20, %v4594_v2 }
 0x35b   : > { %v4528_v5 = vpop.f32.mrf.mxu1 }
 0x35c   : > { %v4600_v44 = vadd.f32 %v4599_v25, %v4527_v27  ;;  %v4529_v42 = vadd.f32 %v4528_v5, %v4456_v35  ;;  %v4689_v26 = vadd.f32 %v4688_v39, %v4598_v63  ;;  %v4603_v58 = vpop.f32.mrf.mxu0 }
 0x35d   : > { %v4530_v57 = vpop.f32.mrf.mxu1 }
 0x35e   : > { %v4602_v11 = vadd.f32 %v4601_v59, %v4529_v42  ;;  %v4531_v23 = vadd.f32 %v4530_v57, %v4458_v41  ;;  %v4702_v56 = vadd.f32 %v4701_v55, %v4600_v44 }
 0x360   : > { %v4690_v6 = vadd.f32 %v4689_v26, %v4602_v11  ;;  %v4604_v51 = vadd.f32 %v4603_v58, %v4531_v23 }
 0x362   : > { %v4691_v33 = vrot.slane %v4690_v6, 4  ;;  %v4703_v54 = vadd.f32 %v4702_v56, %v4604_v51 }
 0x364   : > { %v4692_v46 = vadd.f32 %v4691_v33, %v4690_v6  ;;  %v4704_v31 = vrot.slane %v4703_v54, 4 }
 0x366   : > { %v4693_v29 = vrot.slane %v4692_v46, 2  ;;  %v4705_v7 = vadd.f32 %v4704_v31, %v4703_v54 }
 0x368   : > { %v4694_v32 = vadd.f32 %v4693_v29, %v4692_v46  ;;  %v4706_v37 = vrot.slane %v4705_v7, 2 }
 0x36a   : > { %v4695_v49 = vrot.slane %v4694_v32, 1  ;;  %v4707_v14 = vadd.f32 %v4706_v37, %v4705_v7 }
 0x36c   : > { %v4696_v0 = vadd.f32 %v4695_v49, %v4694_v32  ;;  %v4708_v18 = vrot.slane %v4707_v14, 1 }
 0x36e   : > { %v4716_v16 = vmul.f32 0.020408163, %v4696_v0  ;;  %v4709_v61 = vadd.f32 %v4708_v18, %v4707_v14  ;;  %v9245_v0 = vld [vmem:[#allocation54_spill] sm:$0xff] }
 0x36f   : > { %v5099_v18 = vsub.s32 6, %v9245_v0 }
 0x370   : > { %v8888_v62 = vsub.f32 %v8857_v19, %v4716_v16  ;;  %v8891_v40 = vsub.f32 %v8849_v15, %v4716_v16  ;;  %v8894_v21 = vsub.f32 %v8859_v28, %v4716_v16  ;;  %v8896_v3 = vsub.f32 %v4582_v50, %v4716_v16 }
 0x371   : > { %v4717_v60 = vmul.f32 0.020408163, %v4709_v61  ;;  %v8902_v30 = vsub.f32 %v4588_v43, %v4716_v16  ;;  %v4781_v17 = vsub.f32 %v4592_v48, %v4716_v16  ;;  %v4789_v24 = vsub.f32 %v4598_v63, %v4716_v16  ;;  %v6472_v16 = vld [vmem:[%s6898_s21] sm:$0xff] }
 0x372   : > { %v4885_v38 = vmul.f32 %v8888_v62, %v8888_v62  ;;  %v4893_v53 = vmul.f32 %v8891_v40, %v8891_v40  ;;  %v4901_v15 = vmul.f32 %v8894_v21, %v8894_v21  ;;  %v4909_v47 = vmul.f32 %v8896_v3, %v8896_v3 }
 0x373   : > { %v8905_v19 = vsub.f32 %v8863_v8, %v4717_v60  ;;  %v8910_v28 = vsub.f32 %v8853_v36, %v4717_v60  ;;  %v8913_v50 = vsub.f32 %v8865_v1, %v4717_v60  ;;  %v8918_v12 = vsub.f32 %v8871_v22, %v4717_v60 }
 0x374   : > { %v5021_v4 = vadd.f32 %v4893_v53, %v4885_v38  ;;  %v4917_v36 = vmul.f32 %v8902_v30, %v8902_v30  ;;  %v8927_v48 = vsub.f32 %v8879_v10, %v4717_v60  ;;  %v4869_v22 = vsel %vm4733_vm1, %v4789_v24, 0.0 }
 0x375   : > { %v4886_v8 = vmul.f32 %v8905_v19, %v8905_v19  ;;  %v4894_v25 = vmul.f32 %v8910_v28, %v8910_v28  ;;  %v4902_v35 = vmul.f32 %v8913_v50, %v8913_v50  ;;  %v4925_v52 = vmul.f32 %v4781_v17, %v4781_v17 }
 0x376   : > { %v5022_v43 = vadd.f32 %v5021_v4, %v4901_v15  ;;  %v4790_v34 = vsub.f32 %v4600_v44, %v4717_v60  ;;  %v8933_v27 = vsub.f32 %v4594_v2, %v4717_v60  ;;  %v4910_v41 = vmul.f32 %v8918_v12, %v8918_v12  ;;  %v6473_v4 = vld [vmem:[%s6901_s27] sm:$0xff] }
 0x377   : > { %v5034_v9 = vadd.f32 %v4894_v25, %v4886_v8  ;;  %v4933_v59 = vmul.f32 %v4869_v22, %v4869_v22  ;;  %v4918_v10 = vmul.f32 %v8927_v48, %v8927_v48  ;;  %v5100_v61 = vrot.slane %v6472_v16, %v5099_v18 }
 0x378   : > { %v5023_v1 = vadd.f32 %v5022_v43, %v4909_v47  ;;  %v8941_v42 = vsel %vm4733_vm1, %v4790_v34, 0.0  ;;  %v4926_v44 = vmul.f32 %v8933_v27, %v8933_v27  ;;  %v5103_v15 = vsub.s32 7, %v9245_v0 }
 0x379   : > { %v5035_v5 = vadd.f32 %v5034_v9, %v4902_v35  ;;  %v4934_v26 = vmul.f32 %v8941_v42, %v8941_v42  ;;  %v5246_v24 = vrot.slane %v6473_v4, %v5099_v18 }
 0x37a   : > { %v5024_v63 = vadd.f32 %v5023_v1, %v4917_v36 }
 0x37b   : > { %v5036_v39 = vadd.f32 %v5035_v5, %v4910_v41 }
 0x37c   : > { %v5025_v20 = vadd.f32 %v5024_v63, %v4925_v52  ;;  %v5104_v52 = vrot.slane %v6472_v16, %v5103_v15 }
 0x37d   : > { %v5037_v2 = vadd.f32 %v5036_v39, %v4918_v10 }
 0x37e   : > { %v5026_v57 = vadd.f32 %v5025_v20, %v4933_v59 }
 0x37f   : > { %v5038_v11 = vadd.f32 %v5037_v2, %v4926_v44 }
 0x380   : > { %v5028_v55 = vrot.slane %v5026_v57, 4 }
 0x381   : > { %v5039_v58 = vadd.f32 %v5038_v11, %v4934_v26 }
 0x382   : > { %v5029_v23 = vadd.f32 %v5028_v55, %v5026_v57 }
 0x383   : > { %v5041_v6 = vrot.slane %v5039_v58, 4 }
 0x384   : > { %v5030_v56 = vrot.slane %v5029_v23, 2 }
 0x385   : > { %v5042_v33 = vadd.f32 %v5041_v6, %v5039_v58 }
 0x386   : > { %v5031_v51 = vadd.f32 %v5030_v56, %v5029_v23 }
 0x387   : > { %v5043_v54 = vrot.slane %v5042_v33, 2 }
 0x388   : > { %v5032_v45 = vrot.slane %v5031_v51, 1 }
 0x389   : > { %v5044_v31 = vadd.f32 %v5043_v54, %v5042_v33 }
 0x38a   : > { %v5033_v46 = vadd.f32 %v5032_v45, %v5031_v51 }
 0x38b   : > { %v5045_v7 = vrot.slane %v5044_v31, 1 }
 0x38c   : > { %v5053_v29 = vmul.f32 0.020408163, %v5033_v46 }
 0x38d   : > { %v5046_v37 = vadd.f32 %v5045_v7, %v5044_v31 }
 0x38e   : > { %v5061_v32 = vadd.f32 1e-05, %v5053_v29 }
 0x38f   : > { %v5054_v49 = vmul.f32 0.020408163, %v5046_v37 }
 0x390   : > { %6466 = vrsqrt.f32 %v5061_v32 }
 0x391   : > { %v5062_v14 = vadd.f32 1e-05, %v5054_v49 }
 0x393   : > { %6468 = vrsqrt.f32 %v5062_v14 }
 0x39d   : > { %v6467_v60 = vpop.eup %6466 }
 0x39e   : > { %v5119_v38 = vmul.f32 %v6467_v60, %v5100_v61 }
 0x3a0   : > { %v5148_v53 = vrot.slane %v5119_v38, %v7937_v13  ;;  %v6469_v34 = vpop.eup %6468 }
 0x3a2   : > { %v5159_v47 = vmul.f32 %v5148_v53, %v8888_v62  ;;  %v5167_v43 = vmul.f32 %v5148_v53, %v8891_v40  ;;  %v5175_v8 = vmul.f32 %v5148_v53, %v8894_v21  ;;  %v5183_v25 = vmul.f32 %v5148_v53, %v8896_v3 }
 0x3a3   : > { %v5191_v36 = vmul.f32 %v5148_v53, %v8902_v30  ;;  %v5199_v1 = vmul.f32 %v5148_v53, %v4781_v17  ;;  %v5207_v35 = vmul.f32 %v5148_v53, %v4869_v22  ;;  %v5215_v9 = vmul.f32 0.0, %v5148_v53 }
 0x3a4   : > { %v5265_v63 = vadd.f32 %v5246_v24, %v5159_v47  ;;  %v5273_v41 = vadd.f32 %v5246_v24, %v5167_v43  ;;  %v5281_v5 = vadd.f32 %v5246_v24, %v5175_v8  ;;  %v5289_v59 = vadd.f32 %v5246_v24, %v5183_v25 }
 0x3a5   : > { %v5297_v20 = vadd.f32 %v5246_v24, %v5191_v36  ;;  %v5305_v10 = vadd.f32 %v5246_v24, %v5199_v1  ;;  %v5313_v62 = vadd.f32 %v5246_v24, %v5207_v35  ;;  %v5321_v39 = vadd.f32 %v5246_v24, %v5215_v9 }
 0x3a6   : > { %v5120_v40 = vmul.f32 %v6469_v34, %v5104_v52  ;;  %v5329_v57 = vmax.f32 %v5265_v63, 0.0  ;;  %v5250_v21 = vrot.slane %v6473_v4, %v5103_v15  ;;  %v5337_v44 = vmax.f32 %v5273_v41, 0.0 }
 0x3a7   : > { %v5345_v3 = vmax.f32 %v5281_v5, 0.0  ;;  %v5353_v2 = vmax.f32 %v5289_v59, 0.0  ;;  %v5361_v17 = vmax.f32 %v5297_v20, 0.0  ;;  %v5369_v22 = vmax.f32 %v5305_v10, 0.0 }
 0x3a8   : > { %v5152_v30 = vrot.slane %v5120_v40, %v7937_v13  ;;  %v5377_v55 = vmax.f32 %v5313_v62, 0.0  ;;  %v5385_v26 = vmax.f32 %v5321_v39, 0.0 }
 0x3aa   : > { %v5160_v11 = vmul.f32 %v5152_v30, %v8905_v19  ;;  %v5168_v23 = vmul.f32 %v5152_v30, %v8910_v28  ;;  %v5176_v58 = vmul.f32 %v5152_v30, %v8913_v50  ;;  %v5184_v56 = vmul.f32 %v5152_v30, %v8918_v12 }
 0x3ab   : > { %v5192_v6 = vmul.f32 %v5152_v30, %v8927_v48  ;;  %v5200_v51 = vmul.f32 %v5152_v30, %v8933_v27  ;;  %v5208_v13 = vmul.f32 %v5152_v30, %v8941_v42  ;;  %v5216_v33 = vmul.f32 0.0, %v5152_v30 }
 0x3ac   : > { %v5266_v45 = vadd.f32 %v5250_v21, %v5160_v11  ;;  %v5274_v54 = vadd.f32 %v5250_v21, %v5168_v23  ;;  %v5282_v46 = vadd.f32 %v5250_v21, %v5176_v58  ;;  %v5290_v31 = vadd.f32 %v5250_v21, %v5184_v56 }
 0x3ad   : > { %v5298_v19 = vadd.f32 %v5250_v21, %v5192_v6  ;;  %v5306_v29 = vadd.f32 %v5250_v21, %v5200_v51  ;;  %v5314_v28 = vadd.f32 %v5250_v21, %v5208_v13  ;;  %v5322_v7 = vadd.f32 %v5250_v21, %v5216_v33 }
 0x3ae   : > { %v5330_v50 = vmax.f32 %v5266_v45, 0.0  ;;  %v5338_v32 = vmax.f32 %v5274_v54, 0.0  ;;  %v5346_v12 = vmax.f32 %v5282_v46, 0.0  ;;  %v5354_v48 = vmax.f32 %v5290_v31, 0.0 }
 0x3af   : > { %v5362_v27 = vmax.f32 %v5298_v19, 0.0  ;;  %v5370_v42 = vmax.f32 %v5306_v29, 0.0  ;;  %v5378_v37 = vmax.f32 %v5314_v28, 0.0  ;;  %v5386_v49 = vmax.f32 %v5322_v7, 0.0 }
 0x3b0   : > { %v6349_v14 = vpack.c.bf16 %v5330_v50, %v5329_v57  ;;  %v6353_v0 = vpack.c.bf16 %v5338_v32, %v5337_v44  ;;  %v6357_v18 = vpack.c.bf16 %v5346_v12, %v5345_v3  ;;  %v6361_v16 = vpack.c.bf16 %v5354_v48, %v5353_v2 }
 0x3b1   : > { %v6365_v61 = vpack.c.bf16 %v5362_v27, %v5361_v17  ;;  %v6369_v60 = vpack.c.bf16 %v5370_v42, %v5369_v22  ;;  %v6373_v38 = vpack.c.bf16 %v5378_v37, %v5377_v55  ;;  %v6377_v53 = vpack.c.bf16 %v5386_v49, %v5385_v26 }
 0x3b2   : > { %5582 = vst [vmem:[%s8153_s7 + $0x18] sm:$0xff] %v6349_v14  ;;  %5586 = vst [vmem:[%s8153_s7 + $0x38] sm:$0xff] %v6353_v0 }
 0x3b3   : > { %5590 = vst [vmem:[%s8153_s7 + $0x58] sm:$0xff] %v6357_v18  ;;  %5594 = vst [vmem:[%s8153_s7 + $0x78] sm:$0xff] %v6361_v16 }
 0x3b4   : > { %5598 = vst [vmem:[%s8153_s7 + $0x98] sm:$0xff] %v6365_v61  ;;  %5602 = vst [vmem:[%s8153_s7 + $0xb8] sm:$0xff] %v6369_v60 }
 0x3b5   : > { %5606 = vst [vmem:[%s8153_s7 + $0xd8] sm:$0xff] %v6373_v38  ;;  %5610 = vst [vmem:[%s8153_s7 + $0xf8] sm:$0xff] %v6377_v53 }
 0x3b6   : > { %6597 = shalt.err (!%p6594_p10)
}
 0x3b7   : > { %s6598_s26 = scalar_lea.hbm %s8970_s14, 4096  ;;  %s6602_s11 = scalar_lea.hbm %s9027_s4, 8192 }
 0x3b8   : > { %p6599_p4 = scmp.ne.s32.totalorder %s8970_s14, %s6598_s26  ;;  %p6603_p13 = scmp.lt.s32.totalorder %s8970_s14, %s9027_s4 }
 0x3b9   : > { %p6604_p8 = scmp.lt.s32.totalorder %s6602_s11, %s6598_s26 }
 0x3ba   : > { %p6600_p7 = pnand %p6599_p4, %p9246_p3 }
 0x3bb   : > { %p6605_p6 = por %p6604_p8, %p6603_p13 }
 0x3bc   : > { %p6601_p11 = pneg %p6600_p7 }
 0x3be   : > { %p6606_p2 = pnand %p6605_p6, %p6601_p11 }
 0x3c0   : > { %6609 = shalt.err (!%p6606_p2)
}
 0x3c1   : > { %s6666_s27 = smov 512   ;;  %s6667_s10 = smov 1024  }
 0x3c2   : > { %s6668_s7 = smov 32  }
 0x3c3   : > { %6391 = dma.vmem_to_hbm [thread:$0]  (%p9246_p3), %s8972_s8, 4096, %s8970_s14, %s5612_s1, %s6666_s27, %s6667_s10, %s6668_s7  }
 0x3c4 PF: > { %s5640_s23 = sand.u32 1, %s6644_s15   ;;  %p9247_p12 = scmp.ne.s32.totalorder %s9094_s6, 0 }
 0x3c5   : > { %p9248_p0 = scmp.ge.s32.totalorder %s6656_s18, 2  ;;  %s5641_s13 = scalar_lea.sflag [#allocation4], %s5640_s23 }
 0x3c7   : > { %p6408_p1 = pnand %p9248_p0, %p9247_p12 }
 0x3c9   : > { %p6409_p5 = pneg %p6408_p1 }
 0x3cb   : > { %6639 = dma.done.wait (%p6409_p5), %s5641_s13, 4096  }
 0x3cc   : > { %6641 = vsyncadd (%p6409_p5), %s5641_s13, 4294963200  ;;  %s9249_s5 = sld [smem:[#allocation15_spill]]  ;;  %p21_p9 = scmp.ge.s32.totalorder %s6715_s19, 4  }
 0x3cd   : > { %s9250_s15 = smov %s6648_s16  ;;  %s9251_s16 = smov %s6652_s17 }
 0x3ce   : > { %s9253_s18 = smov %s6715_s19  ;;  %23 = sbr.rel (!%p21_p9) target bundleno = 10 (0xa), region = 110 }
 0x3d2   : > { %s9252_s17 = smov %s9249_s5 }
 0x3d3   :  { %5646 = vsyncpa [#allocation3], 1 }
 0x3d4   :  { %5648 = vsyncpa [#allocation3 + $0x1], 1 }
 0x3d5   :  { %5649 = vsyncpa [#allocation6], 1 }
 0x3d6   :  { %5651 = vsyncpa [#allocation6 + $0x1], 1 }
 0x3d7   :  { %5652 = vsyncpa [#allocation9], 1 }
 0x3d8   :  { %5654 = vsyncpa [#allocation9 + $0x1], 1 }
 0x3d9   :  { %5655 = vsyncpa [#allocation4], 1 }
 0x3da   :  { %5657 = vsyncpa [#allocation4 + $0x1], 1 }

</bundles_post_ra>
